<compile_context>
chip_gen: v7x
topology: tpu7x:2x2x1
jax: 0.10.0
libtpu: 0.0.40
codegen_flags: <defaults>
</compile_context>

<pallas_src>
import functools

import jax
import jax.numpy as jnp
from jax.experimental import pallas as pl
from jax.experimental.pallas import tpu as pltpu


def _lambda_layer_kernel(x_ref, w_ref, b_ref, r2_ref, out_ref, *,
                         heads, dim_k, dim_v):
    """One batch element per grid step.

    x_ref:  (1, C, N)          input, spatial flattened onto the lane axis
    w_ref:  (H*K + K + V, C)   stacked 1x1-conv weights, BN scale pre-folded
    b_ref:  (H*K + K + V, 1)   stacked BN biases (zero rows for k)
    r2_ref: (K*N, N)  bf16     pre-gathered rel-pos table, row = k*N + n, col = m
    out_ref:(1, H*V, N)
    """
    x = x_ref[0].astype(jnp.float32)                     # (C, N)
    n_sp = x.shape[-1]
    hk = heads * dim_k

    # Fused q/k/v 1x1-conv projection: ONE MXU launch instead of three.
    # (BN scale already folded into the weight rows; only the bias add remains.)
    proj = jnp.dot(w_ref[...], x, preferred_element_type=jnp.float32)
    proj = proj + b_ref[...]                             # (H*K + K + V, N)
    q = proj[:hk, :]                                     # (H*K, N)
    kk = proj[hk:hk + dim_k, :]                          # (K, N)
    vv = proj[hk + dim_k:, :]                            # (V, N)

    # Softmax over the spatial (lane) axis; the (K, N) divide is replaced by an
    # EUP reciprocal so the VPU slot stays free.
    kk = kk - jnp.max(kk, axis=-1, keepdims=True)
    ek = jnp.exp(kk)
    ks = ek * pl.reciprocal(jnp.sum(ek, axis=-1, keepdims=True), approx=True)

    # λc[v, k] = sum_m v[v, m] * softmax(k)[k, m]
    lam_c = jax.lax.dot_general(vv, ks, (((1,), (1,)), ((), ())),
                                preferred_element_type=jnp.float32)   # (V, K)

    # λp[v, k, n] = sum_m v[v, m] * rel_emb[n, m, k] — one bf16 MXU matmul
    # against the pre-gathered, bf16 (K*N, N) table (f32 accumulation).
    lam_p = jax.lax.dot_general(vv.astype(jnp.bfloat16), r2_ref[...],
                                (((1,), (1,)), ((), ())),
                                preferred_element_type=jnp.float32)   # (V, K*N)
    lam_p = lam_p.reshape(dim_v, dim_k, n_sp)            # (V, K, N)

    # Fused epilogue: Y[h,v,n] = sum_k q[h,k,n] * (λc[v,k] + λp[v,k,n]).
    # Folding λc into the position lambdas removes the per-head MXU calls
    # entirely; the per-head broadcast/K-reduce keeps live registers bounded
    # (a fully batched (H,V,K,N) f32 product would occupy the whole vreg file).
    lam = lam_c[:, :, None] + lam_p                      # (V, K, N)
    q_r = q.reshape(heads, dim_k, n_sp)                  # (H, K, N)
    y = jnp.stack(
        [jnp.sum(lam * q_r[h][None, :, :], axis=1) for h in range(heads)],
        axis=0)                                          # (H, V, N)
    # Single lane-dense store of the (H*V, N) slab.
    out_ref[0] = y.reshape(heads * dim_v, n_sp).astype(out_ref.dtype)


def prepare_lambda_params(params, *, heads, dim_k, n, dim_u=1, eps=1e-5):
    """Parameter-only preprocessing — run ONCE per parameter update, outside the
    per-forward hot path. Returns (w_all, b_all, r2_bf16, dim_v)."""
    assert dim_u == 1, "only dim_u == 1 (module default) is implemented"
    c = params["q_w"].shape[1]

    wq = params["q_w"].reshape(heads * dim_k, c)
    wk = params["k_w"].reshape(dim_u * dim_k, c)
    wv = params["v_w"].reshape(-1, c)
    dim_v = wv.shape[0] // dim_u

    # Fold BatchNorm (inference mode): scale into the conv weights, bias kept.
    q_scale = params["q_gamma"] / jnp.sqrt(params["q_var"] + eps)
    q_bias = params["q_beta"] - params["q_mean"] * q_scale
    v_scale = params["v_gamma"] / jnp.sqrt(params["v_var"] + eps)
    v_bias = params["v_beta"] - params["v_mean"] * v_scale
    wq = wq * q_scale[:, None]
    wv = wv * v_scale[:, None]

    # Stack q / k / v projections into one weight matrix (one MXU launch).
    w_all = jnp.concatenate([wq, wk, wv], axis=0).astype(jnp.float32)
    b_all = jnp.concatenate(
        [q_bias, jnp.zeros((dim_u * dim_k,), jnp.float32), v_bias],
        axis=0).astype(jnp.float32)[:, None]

    # Relative-position gather, hoisted out of the hot path; laid out so that
    # λp becomes a single matmul: r2[k*N + n, m] = rel_pos_emb[rel_n, rel_m, k, 0].
    n_sp = n * n
    ii, jj = jnp.meshgrid(jnp.arange(n), jnp.arange(n), indexing="ij")
    pos = jnp.stack([ii, jj], axis=-1).reshape(n_sp, 2)
    rel = pos[None, :, :] - pos[:, None, :] + (n - 1)                 # (N, M, 2)
    rel_emb = params["rel_pos_emb"][rel[..., 0], rel[..., 1], :, 0]   # (N, M, K)
    r2 = jnp.transpose(rel_emb, (2, 0, 1)).reshape(dim_k * n_sp, n_sp)
    # bf16: halves the dominant HBM->VMEM DMA and is MXU-native on all gens.
    r2 = r2.astype(jnp.bfloat16)

    return w_all, b_all, r2, dim_v


def lambda_layer_forward(x, w_all, b_all, r2, *, heads, dim_k, dim_v):
    """x: (b, dim, hh, ww) NCHW. Returns (b, heads*dim_v, hh, ww)."""
    b, c, hh, ww = x.shape
    assert hh == ww, "global-context branch requires square windows (n = hh = ww)"
    n_sp = hh * ww
    # Fail loudly on configs that would break lane density / sublane alignment.
    assert n_sp % 128 == 0, "hh*ww must be a multiple of 128 (lane-dense spatial axis)"
    assert dim_k % 8 == 0 and (heads * dim_k) % 8 == 0, (
        "dim_k and heads*dim_k must be multiples of 8 (sublane-aligned row slices)")
    r_rows = heads * dim_k + dim_k + dim_v
    assert w_all.shape == (r_rows, c) and b_all.shape == (r_rows, 1)
    assert r2.shape == (dim_k * n_sp, n_sp)

    x3 = x.reshape(b, c, n_sp)

    kernel = functools.partial(_lambda_layer_kernel,
                               heads=heads, dim_k=dim_k, dim_v=dim_v)

    # Grid-invariant operands: constant index_map + single buffering (no second
    # VMEM copy of the rel-pos table; it stays resident across grid steps).
    const = dict(pipeline_mode=pl.Buffered(buffer_count=1))

    # VMEM budget derived from actual resident blocks (portable across the
    # 128 MiB v5e/v6e vs 64 MiB v7x split); headroom for compiler scratch.
    bpe = jnp.dtype(x.dtype).itemsize
    resident = (2 * c * n_sp * bpe                      # x block, double-buffered
                + 2 * heads * dim_v * n_sp * bpe        # out block, double-buffered
                + w_all.size * jnp.dtype(w_all.dtype).itemsize
                + b_all.size * jnp.dtype(b_all.dtype).itemsize
                + r2.size * jnp.dtype(r2.dtype).itemsize)
    vmem_limit = int(min(64 * 1024 * 1024,
                         max(32 * 1024 * 1024, 2 * resident + 8 * 1024 * 1024)))

    out = pl.pallas_call(
        kernel,
        out_shape=jax.ShapeDtypeStruct((b, heads * dim_v, n_sp), x.dtype),
        grid=(b,),   # batch axis -> megacore parallelism on v7x (use even batches)
        in_specs=[
            pl.BlockSpec((1, c, n_sp), lambda i: (i, 0, 0)),
            pl.BlockSpec((r_rows, c), lambda i: (0, 0), **const),
            pl.BlockSpec((r_rows, 1), lambda i: (0, 0), **const),
            pl.BlockSpec((dim_k * n_sp, n_sp), lambda i: (0, 0), **const),
        ],
        out_specs=pl.BlockSpec((1, heads * dim_v, n_sp), lambda i: (i, 0, 0)),
        compiler_params=pltpu.CompilerParams(
            dimension_semantics=("parallel",),
            vmem_limit_bytes=vmem_limit,
        ),
    )(x3, w_all, b_all, r2)

    return out.reshape(b, heads * dim_v, hh, ww)


def _reference(x, params, *, heads, dim_k, dim_u=1, eps=1e-5):
    """Pure-JAX (f32, HIGHEST precision) LambdaLayer forward, r=None branch,
    inference-mode BN."""
    hp = jax.lax.Precision.HIGHEST
    b, c, hh, ww = x.shape
    n = hh
    n_sp = hh * ww
    wq = params["q_w"].reshape(heads * dim_k, c)
    wk = params["k_w"].reshape(dim_u * dim_k, c)
    wv = params["v_w"].reshape(-1, c)
    dim_v = wv.shape[0] // dim_u

    q_scale = params["q_gamma"] / jnp.sqrt(params["q_var"] + eps)
    q_bias = params["q_beta"] - params["q_mean"] * q_scale
    v_scale = params["v_gamma"] / jnp.sqrt(params["v_var"] + eps)
    v_bias = params["v_beta"] - params["v_mean"] * v_scale

    xf = x.reshape(b, c, n_sp)
    q = jnp.einsum("oc,bcn->bon", wq, xf, precision=hp)
    k = jnp.einsum("oc,bcn->bon", wk, xf, precision=hp)
    v = jnp.einsum("oc,bcn->bon", wv, xf, precision=hp)
    q = q * q_scale[None, :, None] + q_bias[None, :, None]
    v = v * v_scale[None, :, None] + v_bias[None, :, None]

    q = q.reshape(b, heads, dim_k, n_sp)
    k = k.reshape(b, dim_u, dim_k, n_sp)
    v = v.reshape(b, dim_u, dim_v, n_sp)
    k = jax.nn.softmax(k, axis=-1)

    lam_c = jnp.einsum("bukm,buvm->bkv", k, v, precision=hp)
    yc = jnp.einsum("bhkn,bkv->bhvn", q, lam_c, precision=hp)

    ii, jj = jnp.meshgrid(jnp.arange(n), jnp.arange(n), indexing="ij")
    pos = jnp.stack([ii, jj], axis=-1).reshape(n_sp, 2)
    rel = pos[None, :, :] - pos[:, None, :] + (n - 1)
    rel_emb = params["rel_pos_emb"][rel[..., 0], rel[..., 1]]     # (N, M, K, U)
    lam_p = jnp.einsum("nmku,buvm->bnkv", rel_emb, v, precision=hp)
    yp = jnp.einsum("bhkn,bnkv->bhvn", q, lam_p, precision=hp)

    return (yc + yp).reshape(b, heads * dim_v, hh, ww)


if __name__ == "__main__":
    # Small deterministic config: dim=16, dim_k=16, heads=4, dim_u=1,
    # dim_out=dim=16 -> dim_v=4; spatial 16x16 -> N=256 (lane-dense).
    b, dim, hh, ww = 2, 16, 16, 16
    dim_k, heads, dim_u = 16, 4, 1
    dim_out = dim
    dim_v = dim_out // heads
    n = hh
    rel_len = 2 * n - 1

    key = jax.random.PRNGKey(0)
    ks = jax.random.split(key, 12)
    x = jax.random.normal(ks[0], (b, dim, hh, ww), dtype=jnp.float32)
    params = {
        # nn.Conv2d(in, out, 1, bias=False) weights: (out, in, 1, 1)
        "q_w": 0.1 * jax.random.normal(ks[1], (dim_k * heads, dim, 1, 1), jnp.float32),
        "k_w": 0.1 * jax.random.normal(ks[2], (dim_k * dim_u, dim, 1, 1), jnp.float32),
        "v_w": 0.1 * jax.random.normal(ks[3], (dim_v * dim_u, dim, 1, 1), jnp.float32),
        # BatchNorm2d params / running stats
        "q_gamma": 1.0 + 0.1 * jax.random.normal(ks[4], (dim_k * heads,), jnp.float32),
        "q_beta": 0.1 * jax.random.normal(ks[5], (dim_k * heads,), jnp.float32),
        "q_mean": 0.1 * jax.random.normal(ks[6], (dim_k * heads,), jnp.float32),
        "q_var": jax.random.uniform(ks[7], (dim_k * heads,), jnp.float32, 0.5, 1.5),
        "v_gamma": 1.0 + 0.1 * jax.random.normal(ks[8], (dim_v * dim_u,), jnp.float32),
        "v_beta": 0.1 * jax.random.normal(ks[9], (dim_v * dim_u,), jnp.float32),
        "v_mean": 0.1 * jax.random.normal(ks[10], (dim_v * dim_u,), jnp.float32),
        "v_var": jax.random.uniform(ks[11], (dim_v * dim_u,), jnp.float32, 0.5, 1.5),
        # rel_pos_emb: (2n-1, 2n-1, dim_k, dim_u)
        "rel_pos_emb": 0.1 * jax.random.normal(
            jax.random.PRNGKey(1), (rel_len, rel_len, dim_k, dim_u), jnp.float32),
    }

    # Parameter-only prep: done once, reused across forward calls.
    w_all, b_all, r2, dim_v_p = prepare_lambda_params(
        params, heads=heads, dim_k=dim_k, n=n, dim_u=dim_u)
    assert dim_v_p == dim_v

    fwd = jax.jit(functools.partial(
        lambda_layer_forward, heads=heads, dim_k=dim_k, dim_v=dim_v))
    out = fwd(x, w_all, b_all, r2)
    jax.block_until_ready(out)

    ref = _reference(x, params, heads=heads, dim_k=dim_k, dim_u=dim_u)
    assert out.shape == (b, dim_out, hh, ww)
    # Loose tolerance vs. the full-f32 reference: the kernel deliberately runs
    # the rel-pos table / λp matmul in bfloat16 (with f32 accumulation) and uses
    # an approximate EUP reciprocal. Structural bugs would produce O(1) errors.
    max_err = float(jnp.max(jnp.abs(out - ref)))
    assert jnp.allclose(out, ref, atol=5e-2, rtol=5e-2), (
        "max abs err = %g" % max_err)

    print("KERNEL_OK")
</pallas_src>

<mosaic_0001>
module attributes {stable_mosaic.version = 11 : i64} {
  func.func @_lambda_layer_kernel(%arg0: i32, %arg1: memref<1x16x256xf32, #tpu.memory_space<vmem>>, %arg2: memref<84x16xf32, #tpu.memory_space<vmem>>, %arg3: memref<84x1xf32, #tpu.memory_space<vmem>>, %arg4: memref<4096x256xbf16, #tpu.memory_space<vmem>>, %arg5: memref<1x16x256xf32, #tpu.memory_space<vmem>>) attributes {dimension_semantics = [#tpu.dimension_semantics<parallel>], iteration_bounds = array<i64: 2>, scalar_prefetch = 0 : i64, scratch_operands = 0 : i64, tpu.core_type = #tpu.core_type<tc>, window_params = [{transform_indices = @transform_0, window_bounds = array<i64: 1, 16, 256>}, {pipeline_mode = #tpu.pipeline_mode<synchronous>, transform_indices = @transform_1, window_bounds = array<i64: 84, 16>}, {pipeline_mode = #tpu.pipeline_mode<synchronous>, transform_indices = @transform_2, window_bounds = array<i64: 84, 1>}, {pipeline_mode = #tpu.pipeline_mode<synchronous>, transform_indices = @transform_3, window_bounds = array<i64: 4096, 256>}, {transform_indices = @transform_4, window_bounds = array<i64: 1, 16, 256>}]} {
    %c0 = arith.constant 0 : index
    %c0_0 = arith.constant 0 : index
    %c0_1 = arith.constant 0 : index
    %0 = vector.load %arg1[%c0, %c0_0, %c0_1] : memref<1x16x256xf32, #tpu.memory_space<vmem>>, vector<1x16x256xf32>
    %1 = vector.shape_cast %0 : vector<1x16x256xf32> to vector<16x256xf32>
    %c0_2 = arith.constant 0 : index
    %c0_3 = arith.constant 0 : index
    %2 = vector.load %arg2[%c0_2, %c0_3] : memref<84x16xf32, #tpu.memory_space<vmem>>, vector<84x16xf32>
    %cst = arith.constant dense<0.000000e+00> : vector<84x256xf32>
    %3 = tpu.matmul %2, %1, %cst {dimension_numbers = #tpu.dot_dimension_numbers<[1], [0], [0], [1], [0, 0, 1, 1], [], []>} : vector<84x16xf32>, vector<16x256xf32>, vector<84x256xf32> -> vector<84x256xf32>
    %c0_4 = arith.constant 0 : index
    %c0_5 = arith.constant 0 : index
    %4 = vector.load %arg3[%c0_4, %c0_5] : memref<84x1xf32, #tpu.memory_space<vmem>>, vector<84x1xf32>
    %5 = vector.broadcast %4 : vector<84x1xf32> to vector<84x256xf32>
    %6 = arith.addf %3, %5 : vector<84x256xf32>
    %7 = vector.extract_strided_slice %6 {offsets = [0, 0], sizes = [64, 256], strides = [1, 1]} : vector<84x256xf32> to vector<64x256xf32>
    %8 = vector.extract_strided_slice %6 {offsets = [64, 0], sizes = [16, 256], strides = [1, 1]} : vector<84x256xf32> to vector<16x256xf32>
    %9 = vector.extract_strided_slice %6 {offsets = [80, 0], sizes = [4, 256], strides = [1, 1]} : vector<84x256xf32> to vector<4x256xf32>
    %cst_6 = arith.constant dense<0xFF800000> : vector<16xf32>
    %10 = vector.multi_reduction <maximumf>, %8, %cst_6 [1] : vector<16x256xf32> to vector<16xf32>
    %11 = vector.shape_cast %10 : vector<16xf32> to vector<16x1xf32>
    %12 = vector.broadcast %11 : vector<16x1xf32> to vector<16x256xf32>
    %13 = arith.subf %8, %12 : vector<16x256xf32>
    %14 = math.exp %13 : vector<16x256xf32>
    %cst_7 = arith.constant dense<0.000000e+00> : vector<16xf32>
    %15 = vector.multi_reduction <add>, %14, %cst_7 [1] : vector<16x256xf32> to vector<16xf32>
    %16 = vector.shape_cast %15 : vector<16xf32> to vector<16x1xf32>
    %17 = tpu.reciprocal %16 {approx = true} : vector<16x1xf32> -> vector<16x1xf32>
    %18 = vector.broadcast %17 : vector<16x1xf32> to vector<16x256xf32>
    %19 = arith.mulf %14, %18 : vector<16x256xf32>
    %cst_8 = arith.constant dense<0.000000e+00> : vector<4x16xf32>
    %20 = tpu.matmul %9, %19, %cst_8 {dimension_numbers = #tpu.dot_dimension_numbers<[1], [1], [0], [0], [0, 0, 1, 0], [], []>} : vector<4x256xf32>, vector<16x256xf32>, vector<4x16xf32> -> vector<4x16xf32>
    %21 = arith.truncf %9 : vector<4x256xf32> to vector<4x256xbf16>
    %c0_9 = arith.constant 0 : index
    %c0_10 = arith.constant 0 : index
    %22 = vector.load %arg4[%c0_9, %c0_10] : memref<4096x256xbf16, #tpu.memory_space<vmem>>, vector<4096x256xbf16>
    %cst_11 = arith.constant dense<0.000000e+00> : vector<4x4096xf32>
    %23 = tpu.matmul %21, %22, %cst_11 {dimension_numbers = #tpu.dot_dimension_numbers<[1], [1], [0], [0], [0, 0, 1, 0], [], []>} : vector<4x256xbf16>, vector<4096x256xbf16>, vector<4x4096xf32> -> vector<4x4096xf32>
    %24 = vector.shape_cast %23 : vector<4x4096xf32> to vector<4x16x256xf32>
    %25 = vector.shape_cast %20 : vector<4x16xf32> to vector<4x16x1xf32>
    %26 = vector.broadcast %25 : vector<4x16x1xf32> to vector<4x16x256xf32>
    %27 = arith.addf %26, %24 : vector<4x16x256xf32>
    %28 = vector.shape_cast %7 : vector<64x256xf32> to vector<4x16x256xf32>
    %29 = vector.extract_strided_slice %28 {offsets = [0, 0, 0], sizes = [1, 16, 256], strides = [1, 1, 1]} : vector<4x16x256xf32> to vector<1x16x256xf32>
    %30 = vector.shape_cast %29 : vector<1x16x256xf32> to vector<16x256xf32>
    %31 = vector.shape_cast %30 : vector<16x256xf32> to vector<1x16x256xf32>
    %32 = vector.broadcast %31 : vector<1x16x256xf32> to vector<4x16x256xf32>
    %33 = arith.mulf %27, %32 : vector<4x16x256xf32>
    %cst_12 = arith.constant dense<0.000000e+00> : vector<4x256xf32>
    %34 = vector.multi_reduction <add>, %33, %cst_12 [1] : vector<4x16x256xf32> to vector<4x256xf32>
    %35 = vector.extract_strided_slice %28 {offsets = [1, 0, 0], sizes = [1, 16, 256], strides = [1, 1, 1]} : vector<4x16x256xf32> to vector<1x16x256xf32>
    %36 = vector.shape_cast %35 : vector<1x16x256xf32> to vector<16x256xf32>
    %37 = vector.shape_cast %36 : vector<16x256xf32> to vector<1x16x256xf32>
    %38 = vector.broadcast %37 : vector<1x16x256xf32> to vector<4x16x256xf32>
    %39 = arith.mulf %27, %38 : vector<4x16x256xf32>
    %cst_13 = arith.constant dense<0.000000e+00> : vector<4x256xf32>
    %40 = vector.multi_reduction <add>, %39, %cst_13 [1] : vector<4x16x256xf32> to vector<4x256xf32>
    %41 = vector.extract_strided_slice %28 {offsets = [2, 0, 0], sizes = [1, 16, 256], strides = [1, 1, 1]} : vector<4x16x256xf32> to vector<1x16x256xf32>
    %42 = vector.shape_cast %41 : vector<1x16x256xf32> to vector<16x256xf32>
    %43 = vector.shape_cast %42 : vector<16x256xf32> to vector<1x16x256xf32>
    %44 = vector.broadcast %43 : vector<1x16x256xf32> to vector<4x16x256xf32>
    %45 = arith.mulf %27, %44 : vector<4x16x256xf32>
    %cst_14 = arith.constant dense<0.000000e+00> : vector<4x256xf32>
    %46 = vector.multi_reduction <add>, %45, %cst_14 [1] : vector<4x16x256xf32> to vector<4x256xf32>
    %47 = vector.extract_strided_slice %28 {offsets = [3, 0, 0], sizes = [1, 16, 256], strides = [1, 1, 1]} : vector<4x16x256xf32> to vector<1x16x256xf32>
    %48 = vector.shape_cast %47 : vector<1x16x256xf32> to vector<16x256xf32>
    %49 = vector.shape_cast %48 : vector<16x256xf32> to vector<1x16x256xf32>
    %50 = vector.broadcast %49 : vector<1x16x256xf32> to vector<4x16x256xf32>
    %51 = arith.mulf %27, %50 : vector<4x16x256xf32>
    %cst_15 = arith.constant dense<0.000000e+00> : vector<4x256xf32>
    %52 = vector.multi_reduction <add>, %51, %cst_15 [1] : vector<4x16x256xf32> to vector<4x256xf32>
    %53 = vector.shape_cast %34 : vector<4x256xf32> to vector<1x4x256xf32>
    %54 = vector.shape_cast %40 : vector<4x256xf32> to vector<1x4x256xf32>
    %55 = vector.shape_cast %46 : vector<4x256xf32> to vector<1x4x256xf32>
    %56 = vector.shape_cast %52 : vector<4x256xf32> to vector<1x4x256xf32>
    %57 = tpu.concatenate %53, %54, %55, %56 in 0 : vector<1x4x256xf32>, vector<1x4x256xf32>, vector<1x4x256xf32>, vector<1x4x256xf32> -> vector<4x4x256xf32>
    %58 = vector.shape_cast %57 : vector<4x4x256xf32> to vector<16x256xf32>
    %c0_16 = arith.constant 0 : index
    %c0_17 = arith.constant 0 : index
    %c0_18 = arith.constant 0 : index
    %59 = vector.load %arg5[%c0_16, %c0_17, %c0_18] : memref<1x16x256xf32, #tpu.memory_space<vmem>>, vector<1x16x256xf32>
    %60 = vector.shape_cast %59 : vector<1x16x256xf32> to vector<16x256xf32>
    %61 = vector.shape_cast %58 : vector<16x256xf32> to vector<1x16x256xf32>
    tpu.vector_store %arg5[%c0_16, %c0_17, %c0_18], %61 {strides = array<i32>} : memref<1x16x256xf32, #tpu.memory_space<vmem>>, vector<1x16x256xf32>,
    return
  }
  func.func @transform_0(%arg0: i32) -> (i32, i32, i32) {
    %c0_i32 = arith.constant 0 : i32
    %c0_i32_0 = arith.constant 0 : i32
    %c0_i32_1 = arith.constant 0 : i32
    return %arg0, %c0_i32, %c0_i32_0 : i32, i32, i32
  }
  func.func @transform_1(%arg0: i32) -> (i32, i32) {
    %c0_i32 = arith.constant 0 : i32
    %c0_i32_0 = arith.constant 0 : i32
    %c0_i32_1 = arith.constant 0 : i32
    return %c0_i32, %c0_i32_0 : i32, i32
  }
  func.func @transform_2(%arg0: i32) -> (i32, i32) {
    %c0_i32 = arith.constant 0 : i32
    %c0_i32_0 = arith.constant 0 : i32
    %c0_i32_1 = arith.constant 0 : i32
    return %c0_i32, %c0_i32_0 : i32, i32
  }
  func.func @transform_3(%arg0: i32) -> (i32, i32) {
    %c0_i32 = arith.constant 0 : i32
    %c0_i32_0 = arith.constant 0 : i32
    %c0_i32_1 = arith.constant 0 : i32
    return %c0_i32, %c0_i32_0 : i32, i32
  }
  func.func @transform_4(%arg0: i32) -> (i32, i32, i32) {
    %c0_i32 = arith.constant 0 : i32
    %c0_i32_0 = arith.constant 0 : i32
    %c0_i32_1 = arith.constant 0 : i32
    return %arg0, %c0_i32, %c0_i32_0 : i32, i32, i32
  }
}

</mosaic_0001>

<bundles_post_ra>
// kernel: lambda_layer_forward.1
= control target key start
LH: loop header
LB: loop body
LE: loop exit
PB: predicated region body
PF: predicated region fallthrough
CT: control target
= control target key end

     0   :  { %9 = vsyncpa [#allocation3], 0  ;;  %s6648_s15 = smov 0   ;;  %s7313_s0 = inlined_call_operand.vmem [shape: f32[2,16,256], index: 0, kind: input, shape index: {}]   ;;  %s7314_s1 = inlined_call_operand.vmem [shape: f32[84,16], index: 1, kind: input, shape index: {}]   ;;  %s7315_s2 = inlined_call_operand.vmem [shape: f32[84,1], index: 2, kind: input, shape index: {}]   ;;  %s7316_s3 = inlined_call_operand.hbm [shape: bf16[4096,256], index: 3, kind: input, shape index: {}]   ;;  %s7317_s4 = inlined_call_operand.vmem [shape: f32[2,16,256], index: 4, kind: output, shape index: {}]  }
   0x1 LB: > { %s6654_s16 = sadd.s32 4294967295, %s6614_s15   ;;  %p5193_p0 = scmp.ge.s32.totalorder %s6614_s15, 1  ;;  %s6614_s15 = sphi %s6648_s15, %s15_s15  }
   0x2   : > { %p135_p1 = scmp.lt.s32.totalorder %s6614_s15, 3  ;;  %s6616_s17 = smov [#allocation2]  }
   0x3   : > { %s153_s18 = sshll.u32 %s6616_s17, 4  ;;  %p7318_p3 = scmp.eq.s32.totalorder %s6654_s16, 0  ;;  %s154_s18 = int_to_ptr.vmem [resolvable:$true] %s153_s18 }
   0x4   : > { %p6658_p2 = pnand %p5193_p0, %p135_p1  ;;  %s6576_s23 = scalar_lea.hbm %s7316_s3, 65536 }
   0x5   : > { %p6577_p6 = scmp.ne.s32.totalorder %s7316_s3, %s6576_s23  ;;  %p6583_p10 = scmp.lt.u32.totalorder %s6576_s23, %s7316_s3 }
   0x6   : > { %s7322_s19 = scalar_select %p6658_p2, 1, 0 }
   0x7   : > { %p5773_p4 = pneg %p6658_p2 }
   0x9   : > { %p6667_p5 = pnand %p7318_p3, %p5773_p4 }
   0xb   : > { %p6578_p7 = pneg %p6667_p5 }
   0xd   : > { %p6579_p8 = pnand %p6578_p7, %p6577_p6 }
   0xf   : > { %p6580_p9 = pneg %p6579_p8 }
  0x11   : > { %p6585_p11 = pnand %p6583_p10, %p6580_p9 }
  0x13   : > { %6588 = shalt.err (!%p6585_p11)
}
  0x14   : > { %s6589_s28 = scalar_lea.vmem %s154_s18, 65536  ;;  %p6597_p1 = scmp.lt.s32.totalorder %s154_s18, %s154_s18 }
  0x15   : > { %p6590_p12 = scmp.ne.s32.totalorder %s154_s18, %s6589_s28  ;;  %p6598_p4 = scmp.lt.s32.totalorder %s6589_s28, %s6589_s28 }
  0x17   : > { %p6592_p13 = pnand %p6590_p12, %p6578_p7  ;;  %p6599_p3 = por %p6598_p4, %p6597_p1 }
  0x19   : > { %p6593_p0 = pneg %p6592_p13 }
  0x1b   : > { %p6600_p2 = pnand %p6599_p3, %p6593_p0 }
  0x1d   : > { %6603 = shalt.err (!%p6600_p2)
}
  0x1e   : > { %s6617_s29 = smov 128   ;;  %s6618_s30 = smov 8  }
  0x1f   : > { %5776 = dma.hbm_to_vmem [thread:$0]  (!%p6667_p5), %s7316_s3, 65536, %s154_s18, [#allocation3], %s6617_s29, %s6617_s29, %s6618_s30  }
  0x20   : > { %p7324_p6 = scmp.ne.s32.totalorder %s7322_s19, 0 }
  0x22   : > { %177 = sbr.rel (%p7324_p6) target bundleno = 1965 (0x7ad), region = 36 }
  0x29   : > { %p7325_p8 = scmp.eq.s32.totalorder %s6654_s16, 0 }
  0x2b   : > { %6609 = dma.done.wait (%p7325_p8), [#allocation3], 65536   ;;  %p7326_p7 = pmov %p7325_p8 }
  0x2c   : > { %p203_p2 = scmp.lt.s32.totalorder %s6654_s16, 1  ;;  %v6619_v0 = vmov 0.0   ;;  %v6620_v1 = vmov 0   ;;  %v217_v8 = vld [vmem:[%s7314_s1] sm:$0xff]  ;;  %vm294_vm0 = vcmask 130048   ;;  %v237_v10 = vld [vmem:[%s7315_s2 + $0x48] sm:$0xff] }
  0x2d   : > { %6611 = vsyncadd (%p7326_p7), [#allocation3], 4294901760  ;;  %392 = vmatprep.mubr.f32.mxu0 %v6619_v0  ;;  %5794 = vset.pattern.permute.xlu0 %v6620_v1  ;;  %v236_v9 = vld [vmem:[%s7315_s2 + $0x40] sm:$0xff]  ;;  %v218_v11 = vld [vmem:[%s7314_s1 + $0x8] sm:$0xff]  ;;  %vm5054_vm1 = vcmask 1041409   ;;  %vm5057_vm2 = vcmask 1042434  }
  0x2e   : > { %s7352_s16 = smov (!%p203_p2, %s6654_s16), 1  ;;  %5795 = vset.pattern.permute.xlu1 %v6620_v1  ;;  %281 = vperm.xlu0 %5794, %v236_v9   ;;  %v219_v12 = vld [vmem:[%s7314_s1 + $0x10] sm:$0xff]  ;;  %v220_v13 = vld [vmem:[%s7314_s1 + $0x18] sm:$0xff]  ;;  %v221_v14 = vld [vmem:[%s7314_s1 + $0x20] sm:$0xff]  ;;  %vm5060_vm3 = vcmask 1043459   ;;  %vm5063_vm4 = vcmask 1044484  }
  0x2f   : > { %s5759_s7 = sshll.u32 %s7352_s16, 5  ;;  %v222_v15 = vld [vmem:[%s7314_s1 + $0x28] sm:$0xff]  ;;  %v223_v16 = vld [vmem:[%s7314_s1 + $0x30] sm:$0xff]  ;;  %v224_v17 = vld [vmem:[%s7314_s1 + $0x38] sm:$0xff]  ;;  %vm5066_vm5 = vcmask 1045509   ;;  %vm5069_vm6 = vcmask 1046534  }
  0x30   : > { %s207_s10 = scalar_lea.vmem %s7313_s0, %s5759_s7  ;;  %v225_v18 = vld [vmem:[%s7314_s1 + $0x40] sm:$0xff]  ;;  %v226_v19 = vld [vmem:[%s7314_s1 + $0x48] sm:$0xff]  ;;  %v227_v20 = vld [vmem:[%s7314_s1 + $0x50] sm:$0xf]  ;;  %vm5072_vm7 = vcmask 1047559   ;;  %s7230_s11 = scalar_lea.vmem %s7317_s4, %s5759_s7 }
  0x31   : > { %v214_v2 = vld [vmem:[%s207_s10 + $0x8] sm:$0xff]  ;;  %v216_v3 = vld [vmem:[%s207_s10 + $0x18] sm:$0xff]  ;;  %v213_v4 = vld [vmem:[%s207_s10] sm:$0xff] }
  0x32   : > { %v5761_v5 = vpack.c.bf16 %v216_v3, %v214_v2  ;;  %v215_v6 = vld [vmem:[%s207_s10 + $0x10] sm:$0xff]  ;;  %286 = vperm.xlu0 %5794, %v237_v10   ;;  %v5798_v49 = vld [vmem:[#allocation2 + $0x4] ss:$8 sps:$4 sm:$0xff]   ;;  %v5796_v50 = vld [vmem:[#allocation2] ss:$8 sps:$4 sm:$0xff]  }
  0x33   : > { %v5763_v7 = vpack.c.bf16 %v215_v6, %v213_v4  ;;  %v5801_v51 = vld [vmem:[#allocation2 + $0x14] ss:$8 sps:$4 sm:$0xff]   ;;  %v5799_v52 = vld [vmem:[#allocation2 + $0x10] ss:$8 sps:$4 sm:$0xff]   ;;  %v5804_v53 = vld [vmem:[#allocation2 + $0x24] ss:$8 sps:$4 sm:$0xff]  }
  0x34   : > { %5762 = vmatprep.subr.bf16.mxu0 %v5761_v5  ;;  %v5802_v54 = vld [vmem:[#allocation2 + $0x20] ss:$8 sps:$4 sm:$0xff]   ;;  %v5807_v55 = vld [vmem:[#allocation2 + $0x34] ss:$8 sps:$4 sm:$0xff]   ;;  %v5805_v56 = vld [vmem:[#allocation2 + $0x30] ss:$8 sps:$4 sm:$0xff]  }
  0x35   : > { %5764 = vmatpush1.bf16.msra.mxu0 %v5763_v7  ;;  %v5810_v57 = vld [vmem:[#allocation2 + $0x44] ss:$8 sps:$4 sm:$0xff]   ;;  %v5808_v58 = vld [vmem:[#allocation2 + $0x40] ss:$8 sps:$4 sm:$0xff]   ;;  %v5813_v59 = vld [vmem:[#allocation2 + $0x54] ss:$8 sps:$4 sm:$0xff]  }
  0x36   : > { %3633 = vmatprep.subr.bf16.mxu0 %v5798_v49  ;;  %v5811_v60 = vld [vmem:[#allocation2 + $0x50] ss:$8 sps:$4 sm:$0xff]   ;;  %v5816_v61 = vld [vmem:[#allocation2 + $0x64] ss:$8 sps:$4 sm:$0xff]   ;;  %v5814_v62 = vld [vmem:[#allocation2 + $0x60] ss:$8 sps:$4 sm:$0xff]  }
  0x37   : > { %v5819_v63 = vld [vmem:[#allocation2 + $0x74] ss:$8 sps:$4 sm:$0xff]   ;;  %v5822_v1 = vld [vmem:[#allocation2 + $0x84] ss:$8 sps:$4 sm:$0xff]   ;;  %v5820_v2 = vld [vmem:[#allocation2 + $0x80] ss:$8 sps:$4 sm:$0xff]  }
  0x38   : > { %5202 = vmatmul.mubr.msk.f32.vlgmr.msra.gmra.mrb[0].mxu0 %vm294_vm0, %v217_v8  ;;  %v5825_v3 = vld [vmem:[#allocation2 + $0x94] ss:$8 sps:$4 sm:$0xff]   ;;  %v5823_v4 = vld [vmem:[#allocation2 + $0x90] ss:$8 sps:$4 sm:$0xff]   ;;  %v5828_v5 = vld [vmem:[#allocation2 + $0xa4] ss:$8 sps:$4 sm:$0xff]  }
  0x39   : > { %398 = vmatprep.mubr.f32.mxu0 %v6619_v0  ;;  %v5826_v6 = vld [vmem:[#allocation2 + $0xa0] ss:$8 sps:$4 sm:$0xff]   ;;  %v5831_v7 = vld [vmem:[#allocation2 + $0xb4] ss:$8 sps:$4 sm:$0xff]   ;;  %v238_v49 = vld [vmem:[%s7315_s2 + $0x50] sm:$0xf] }
  0x3c   : > { %5203 = vmatmul.mubr.msk.f32.gmra.mrb[2].mxu0 %vm294_vm0, %v218_v11  ;;  %v5829_v11 = vld [vmem:[#allocation2 + $0xb0] ss:$8 sps:$4 sm:$0xff]  }
  0x3d   : > { %404 = vmatprep.mubr.f32.mxu0 %v6619_v0 }
  0x3e   : > { %3634 = vmatpush1.bf16.xpose.msra.mxu0 %v5796_v50 }
  0x3f   : > { %3635 = vmatprep.subr.bf16.mxu0 %v5801_v51  ;;  %v233_v51 = vld [vmem:[%s7315_s2 + $0x28] sm:$0xff] }
  0x40   : > { %5204 = vmatmul.mubr.msk.f32.gmra.mrb[4].mxu0 %vm294_vm0, %v219_v12 }
  0x41   : > { %410 = vmatprep.mubr.f32.mxu0 %v6619_v0 }
  0x44   : > { %5205 = vmatmul.mubr.msk.f32.gmra.mrb[6].mxu0 %vm294_vm0, %v220_v13 }
  0x45   : > { %416 = vmatprep.mubr.f32.mxu0 %v6619_v0 }
  0x46   : > { %3636 = vmatpush1.bf16.xpose.msra.mxu0 %v5799_v52 }
  0x47   : > { %3637 = vmatprep.subr.bf16.mxu0 %v5804_v53  ;;  %v228_v53 = vld [vmem:[%s7315_s2] sm:$0xff] }
  0x48   : > { %5206 = vmatmul.mubr.msk.f32.gmra.mrb[8].mxu0 %vm294_vm0, %v221_v14  ;;  %v5834_v14 = vld [vmem:[#allocation2 + $0xc4] ss:$8 sps:$4 sm:$0xff]  }
  0x49   : > { %422 = vmatprep.mubr.f32.mxu0 %v6619_v0 }
  0x4c   : > { %5207 = vmatmul.mubr.msk.f32.gmra.mrb[10].mxu0 %vm294_vm0, %v222_v15 }
  0x4d   : > { %428 = vmatprep.mubr.f32.mxu0 %v6619_v0 }
  0x4e   : > { %3638 = vmatpush1.bf16.xpose.msra.mxu0 %v5802_v54  ;;  %v5846_v54 = vld [vmem:[#allocation2 + $0x204] ss:$8 sps:$4 sm:$0xff]  }
  0x4f   : > { %3639 = vmatprep.subr.bf16.mxu0 %v5807_v55  ;;  %v229_v55 = vld [vmem:[%s7315_s2 + $0x8] sm:$0xff] }
  0x50   : > { %5208 = vmatmul.mubr.msk.f32.gmra.mrb[12].mxu0 %vm294_vm0, %v223_v16 }
  0x51   : > { %434 = vmatprep.mubr.f32.mxu0 %v6619_v0 }
  0x54   : > { %5209 = vmatmul.mubr.msk.f32.gmra.mrb[14].mxu0 %vm294_vm0, %v224_v17 }
  0x55   : > { %440 = vmatprep.mubr.f32.mxu0 %v6619_v0 }
  0x56   : > { %3640 = vmatpush1.bf16.xpose.msra.mxu0 %v5805_v56  ;;  %v232_v56 = vld [vmem:[%s7315_s2 + $0x20] sm:$0xff] }
  0x57   : > { %3641 = vmatprep.subr.bf16.mxu0 %v5810_v57  ;;  %v230_v57 = vld [vmem:[%s7315_s2 + $0x10] sm:$0xff] }
  0x58   : > { %5210 = vmatmul.mubr.msk.f32.gmra.mrb[16].mxu0 %vm294_vm0, %v225_v18 }
  0x59   : > { %446 = vmatprep.mubr.f32.mxu0 %v6619_v0 }
  0x5c   : > { %5211 = vmatmul.mubr.msk.f32.gmra.mrb[18].mxu0 %vm294_vm0, %v226_v19 }
  0x5d   : > { %452 = vmatprep.mubr.f32.mxu0 %v6619_v0  ;;  %v5817_v0 = vld [vmem:[#allocation2 + $0x70] ss:$8 sps:$4 sm:$0xff]  }
  0x5e   : > { %3642 = vmatpush1.bf16.xpose.msra.mxu0 %v5808_v58  ;;  %v231_v58 = vld [vmem:[%s7315_s2 + $0x18] sm:$0xff] }
  0x5f   : > { %3643 = vmatprep.subr.bf16.mxu0 %v5813_v59  ;;  %v234_v59 = vld [vmem:[%s7315_s2 + $0x30] sm:$0xff] }
  0x60   : > { %5212 = vmatmul.mubr.msk.f32.gmra.mrb[20].mxu0 %vm294_vm0, %v227_v20  ;;  %v5832_v20 = vld [vmem:[#allocation2 + $0xc0] ss:$8 sps:$4 sm:$0xff]  }
  0x66   : > { %3644 = vmatpush1.bf16.xpose.msra.mxu0 %v5811_v60  ;;  %v235_v60 = vld [vmem:[%s7315_s2 + $0x38] sm:$0xff] }
  0x67   : > { %3645 = vmatprep.subr.bf16.mxu0 %v5816_v61 }
  0x6e   : > { %3646 = vmatpush1.bf16.xpose.msra.mxu0 %v5814_v62 }
  0x6f   : > { %3647 = vmatprep.subr.bf16.mxu0 %v5819_v63 }
  0x76   : > { %3648 = vmatpush1.bf16.xpose.msra.mxu0 %v5817_v0 }
  0x77   : > { %3649 = vmatprep.subr.bf16.mxu0 %v5822_v1 }
  0x7e   : > { %3650 = vmatpush1.bf16.xpose.msra.mxu0 %v5820_v2 }
  0x7f   : > { %3651 = vmatprep.subr.bf16.mxu0 %v5825_v3 }
  0x86   : > { %3652 = vmatpush1.bf16.xpose.msra.mxu0 %v5823_v4  ;;  %v5844_v4 = vld [vmem:[#allocation2 + $0x200] ss:$8 sps:$4 sm:$0xff]  }
  0x87   : > { %3653 = vmatprep.subr.bf16.mxu0 %v5828_v5 }
  0x8e   : > { %3654 = vmatpush1.bf16.xpose.msra.mxu0 %v5826_v6  ;;  %v5849_v6 = vld [vmem:[#allocation2 + $0x214] ss:$8 sps:$4 sm:$0xff]  }
  0x8f   : > { %3655 = vmatprep.subr.bf16.mxu0 %v5831_v7 }
  0x96   : > { %3656 = vmatpush1.bf16.xpose.msra.mxu0 %v5829_v11 }
  0x97   : > { %3657 = vmatprep.subr.bf16.mxu0 %v5834_v14 }
  0x9e   : > { %3658 = vmatpush1.bf16.xpose.msra.mxu0 %v5832_v20  ;;  %v5855_v20 = vld [vmem:[#allocation2 + $0x224] ss:$8 sps:$4 sm:$0xff]  }
  0xad   : > { %v282_v37 = vpop.permute.xlu0 %281 }
  0xb1   : > { %v287_v42 = vpop.permute.xlu0 %286 }
 0x10b   : > { %v6753_v21 = vpop.f32.mrb[0].mxu0 }
 0x10c   : > { %v6755_v22 = vpop.f32.mrb[1].mxu0 }
 0x10f   : > { %v6757_v23 = vpop.f32.mrb[2].mxu0 }
 0x110   : > { %v6759_v24 = vpop.f32.mrb[3].mxu0 }
 0x113   : > { %v6761_v25 = vpop.f32.mrb[4].mxu0 }
 0x114   : > { %v6763_v26 = vpop.f32.mrb[5].mxu0 }
 0x117   : > { %v6765_v27 = vpop.f32.mrb[6].mxu0 }
 0x118   : > { %v6767_v28 = vpop.f32.mrb[7].mxu0 }
 0x11b   : > { %v6769_v29 = vpop.f32.mrb[8].mxu0 }
 0x11c   : > { %v6771_v30 = vpop.f32.mrb[9].mxu0 }
 0x11f   : > { %v6773_v31 = vpop.f32.mrb[10].mxu0 }
 0x120   : > { %v6775_v32 = vpop.f32.mrb[11].mxu0 }
 0x121   : > { %7327 = vst [vmem:[#allocation5_spill] sm:$0xff] %v6775_v32 }
 0x123   : > { %v6777_v33 = vpop.f32.mrb[12].mxu0 }
 0x124   : > { %v6779_v34 = vpop.f32.mrb[13].mxu0 }
 0x127   : > { %v6781_v35 = vpop.f32.mrb[14].mxu0 }
 0x128   : > { %v6783_v36 = vpop.f32.mrb[15].mxu0 }
 0x129   : > { %7328 = vst [vmem:[#allocation6_spill] sm:$0xff] %v6783_v36 }
 0x12b   : > { %v442_v38 = vpop.f32.mrb[16].mxu0 }
 0x12c   : > { %v443_v39 = vadd.f32 %v442_v38, %v282_v37  ;;  %v444_v40 = vpop.f32.mrb[17].mxu0 }
 0x12d   : > { %v445_v41 = vadd.f32 %v444_v40, %v282_v37  ;;  %v5837_v37 = vld [vmem:[#allocation2 + $0xd4] ss:$8 sps:$4 sm:$0xff]  }
 0x12e   : > { %3659 = vmatprep.subr.bf16.mxu0 %v5837_v37 }
 0x12f   : > { %v448_v43 = vpop.f32.mrb[18].mxu0  ;;  %v459_v44 = vmax.f32 %v443_v39, %v445_v41 }
 0x130   : > { %v6785_v45 = vadd.f32 %v448_v43, %v287_v42  ;;  %v450_v46 = vpop.f32.mrb[19].mxu0  ;;  %v5840_v43 = vld [vmem:[#allocation2 + $0xe4] ss:$8 sps:$4 sm:$0xff]  }
 0x131   : > { %v6787_v47 = vadd.f32 %v450_v46, %v287_v42  ;;  %460 = vmax.xlane.f32.xlu1 %v459_v44  ;;  %v5838_v46 = vld [vmem:[#allocation2 + $0xe0] ss:$8 sps:$4 sm:$0xff]  }
 0x133   : > { %v462_v48 = vmax.f32 %v6785_v45, %v6787_v47  ;;  %v454_v50 = vpop.f32.mrb[20].mxu0 }
 0x134   : > { %v456_v52 = vpop.f32.mrb[21].mxu0 }
 0x135   : > { %463 = vmax.xlane.f32.xlu1 %v462_v48  ;;  %v5841_v48 = vld [vmem:[#allocation2 + $0xf0] ss:$8 sps:$4 sm:$0xff]  }
 0x1be   : > { %v461_v8 = vpop.xlane.xlu1 %460 }
 0x1bf   : > { %v465_v9 = vsub.f32 %v443_v39, %v461_v8  ;;  %v466_v10 = vsub.f32 %v445_v41, %v461_v8  ;;  %v5835_v41 = vld [vmem:[#allocation2 + $0xd0] ss:$8 sps:$4 sm:$0xff]  }
 0x1c0   : > { %3660 = vmatpush1.bf16.xpose.msra.mxu0 %v5835_v41  ;;  %v5853_v41 = vld [vmem:[#allocation2 + $0x220] ss:$8 sps:$4 sm:$0xff]  }
 0x1c1   : > { %v469_v12 = vmul.f32 1.442695, %v465_v9  ;;  %v471_v13 = vmul.f32 1.442695, %v466_v10  ;;  %3661 = vmatprep.subr.bf16.mxu0 %v5840_v43  ;;  %v5864_v43 = vld [vmem:[#allocation2 + $0x124] ss:$8 sps:$4 sm:$0xff]  }
 0x1c2   : > { %v464_v15 = vpop.xlane.xlu1 %463 }
 0x1c3   : > { %6564 = vpow2.f32 %v469_v12  ;;  %v467_v16 = vsub.f32 %v6785_v45, %v464_v15  ;;  %v468_v17 = vsub.f32 %v6787_v47, %v464_v15  ;;  %v5843_v47 = vld [vmem:[#allocation2 + $0xf4] ss:$8 sps:$4 sm:$0xff]  }
 0x1c4   : > { %6566 = vpow2.f32 %v471_v13 }
 0x1c5   : > { %v473_v18 = vmul.f32 1.442695, %v467_v16  ;;  %v475_v19 = vmul.f32 1.442695, %v468_v17  ;;  %v5852_v17 = vld [vmem:[#allocation2 + $0x104] ss:$8 sps:$4 sm:$0xff]  }
 0x1c7   : > { %6568 = vpow2.f32 %v473_v18  ;;  %v5847_v18 = vld [vmem:[#allocation2 + $0x210] ss:$8 sps:$4 sm:$0xff]  }
 0x1c8   : > { %6570 = vpow2.f32 %v475_v19  ;;  %3662 = vmatpush1.bf16.xpose.msra.mxu0 %v5838_v46  ;;  %v5870_v46 = vld [vmem:[#allocation2 + $0x134] ss:$8 sps:$4 sm:$0xff]  }
 0x1c9   : > { %3663 = vmatprep.subr.bf16.mxu0 %v5843_v47  ;;  %v5865_v47 = vld [vmem:[#allocation2 + $0x240] ss:$8 sps:$4 sm:$0xff]  }
 0x1cd   : > { %v6793_v38 = vpop.eup %6564 }
 0x1ce   : > { %v6567_v39 = vpop.eup %6566 }
 0x1cf   : > { %v477_v40 = vadd.f32 %v6567_v39, %v6793_v38 }
 0x1d0   : > { %3664 = vmatpush1.bf16.xpose.msra.mxu0 %v5841_v48  ;;  %v5873_v48 = vld [vmem:[#allocation2 + $0x254] ss:$8 sps:$4 sm:$0xff]  }
 0x1d1   : > { %v6569_v42 = vpop.eup %6568  ;;  %478 = vadd.xlane.f32.xlu0 %v477_v40  ;;  %3715 = vmatprep.subr.bf16.mxu0 %v5846_v54  ;;  %v5858_v40 = vld [vmem:[#allocation2 + $0x114] ss:$8 sps:$4 sm:$0xff]  }
 0x1d2   : > { %v6571_v44 = vpop.eup %6570  ;;  %v5882_v54 = vld [vmem:[#allocation2 + $0x154] ss:$8 sps:$4 sm:$0xff]  }
 0x1d3   : > { %v480_v45 = vadd.f32 %v6571_v44, %v6569_v42 }
 0x1d5   : > { %481 = vadd.xlane.f32.xlu1 %v480_v45  ;;  %v5867_v45 = vld [vmem:[#allocation2 + $0x244] ss:$8 sps:$4 sm:$0xff]  }
 0x1e6   : > { %291 = vperm.xlu1 %5795, %v238_v49   ;;  %v5868_v49 = vld [vmem:[#allocation2 + $0x130] ss:$8 sps:$4 sm:$0xff]  }
 0x1e7   : > { %266 = vperm.xlu0 %5794, %v233_v51   ;;  %v5871_v51 = vld [vmem:[#allocation2 + $0x250] ss:$8 sps:$4 sm:$0xff]  }
 0x1ea   : > { %241 = vperm.xlu1 %5795, %v228_v53   ;;  %v5874_v53 = vld [vmem:[#allocation2 + $0x140] ss:$8 sps:$4 sm:$0xff]  }
 0x1ee   : > { %246 = vperm.xlu1 %5795, %v229_v55   ;;  %v5877_v55 = vld [vmem:[#allocation2 + $0x260] ss:$8 sps:$4 sm:$0xff]  }
 0x1f2   : > { %261 = vperm.xlu1 %5795, %v232_v56   ;;  %v5885_v56 = vld [vmem:[#allocation2 + $0x274] ss:$8 sps:$4 sm:$0xff]  }
 0x1f6   : > { %251 = vperm.xlu1 %5795, %v230_v57   ;;  %v5880_v57 = vld [vmem:[#allocation2 + $0x150] ss:$8 sps:$4 sm:$0xff]  }
 0x1fa   : > { %256 = vperm.xlu1 %5795, %v231_v58   ;;  %v5888_v58 = vld [vmem:[#allocation2 + $0x164] ss:$8 sps:$4 sm:$0xff]  }
 0x1fe   : > { %271 = vperm.xlu1 %5795, %v234_v59   ;;  %v5883_v59 = vld [vmem:[#allocation2 + $0x270] ss:$8 sps:$4 sm:$0xff]  }
 0x202   : > { %276 = vperm.xlu1 %5795, %v235_v60   ;;  %v5891_v60 = vld [vmem:[#allocation2 + $0x284] ss:$8 sps:$4 sm:$0xff]  }
 0x25e   : > { %v479_v61 = vpop.xlane.xlu0 %478 }
 0x25f   : > { %6572 = vrcp.f32 %v479_v61  ;;  %v5886_v61 = vld [vmem:[#allocation2 + $0x160] ss:$8 sps:$4 sm:$0xff]  }
 0x262   : > { %v482_v62 = vpop.xlane.xlu1 %481 }
 0x263   : > { %6574 = vrcp.f32 %v482_v62  ;;  %v5894_v62 = vld [vmem:[#allocation2 + $0x174] ss:$8 sps:$4 sm:$0xff]  }
 0x266   : > { %v292_v63 = vpop.permute.xlu1 %291 }
 0x267   : > { %v455_v0 = vadd.f32 %v454_v50, %v292_v63  ;;  %v457_v1 = vadd.f32 %v456_v52, %v292_v63  ;;  %v5876_v50 = vld [vmem:[#allocation2 + $0x144] ss:$8 sps:$4 sm:$0xff]   ;;  %v5889_v63 = vld [vmem:[#allocation2 + $0x280] ss:$8 sps:$4 sm:$0xff]  }
 0x268   : > { %v5879_v52 = vld [vmem:[#allocation2 + $0x264] ss:$8 sps:$4 sm:$0xff]  }
 0x269   : > { %v6823_v2 = vpack.c.bf16 %v455_v0, %v455_v0  ;;  %v6825_v3 = vpack.c.bf16 %v457_v1, %v457_v1  ;;  %553 = vmatprep.mubr.f32.mxu1 %v457_v1  ;;  %v6573_v7 = vpop.eup %6572  ;;  %v5892_v1 = vld [vmem:[#allocation2 + $0x170] ss:$8 sps:$4 sm:$0xff]  }
 0x26a   : > { %v6827_v5 = vpop.permute.xlu1 %241  ;;  %v486_v11 = vmul.f32 %v6573_v7, %v6567_v39  ;;  %v485_v13 = vmul.f32 %v6573_v7, %v6793_v38  ;;  %v5850_v39 = vld [vmem:[#allocation2 + $0x100] ss:$8 sps:$4 sm:$0xff]   ;;  %v5903_v7 = vld [vmem:[#allocation2 + $0x2a4] ss:$8 sps:$4 sm:$0xff]  }
 0x26b   : > { %v6831_v8 = vadd.f32 %v6755_v22, %v6827_v5  ;;  %3665 = vmatprep.mubr.bf16.mxu0 %v6825_v3 }
 0x26c   : > { %3666 = vmatmul.mubr.bf16.vlgmr.msra.gmra.mrb[24].mxu0 %v6823_v2 }
 0x26d   : > { %v6575_v9 = vpop.eup %6574  ;;  %3716 = vmatpush1.bf16.xpose.msra.mxu0 %v5844_v4  ;;  %3747 = vmatprep.mubr.bf16.mxu0 %v6825_v3  ;;  %v5900_v4 = vld [vmem:[#allocation2 + $0x184] ss:$8 sps:$4 sm:$0xff]  }
 0x26e   : > { %v6836_v10 = vpop.permute.xlu1 %246  ;;  %v488_v12 = vmul.f32 %v6575_v9, %v6571_v44  ;;  %v487_v14 = vmul.f32 %v6575_v9, %v6569_v42  ;;  %3717 = vmatprep.subr.bf16.mxu0 %v5849_v6  ;;  %v5861_v42 = vld [vmem:[#allocation2 + $0x234] ss:$8 sps:$4 sm:$0xff]   ;;  %v5859_v44 = vld [vmem:[#allocation2 + $0x230] ss:$8 sps:$4 sm:$0xff]   ;;  %v5898_v9 = vld [vmem:[#allocation2 + $0x180] ss:$8 sps:$4 sm:$0xff]  }
 0x26f   : > { %v6841_v22 = vadd.f32 %v6759_v24, %v6836_v10  ;;  %v5895_v6 = vld [vmem:[#allocation2 + $0x290] ss:$8 sps:$4 sm:$0xff]  }
 0x270   : > { %v5765_v15 = vpack.c.bf16 %v488_v12, %v486_v11  ;;  %v5767_v16 = vpack.c.bf16 %v487_v14, %v485_v13  ;;  %v5906_v11 = vld [vmem:[#allocation2 + $0x194] ss:$8 sps:$4 sm:$0xff]   ;;  %v5901_v12 = vld [vmem:[#allocation2 + $0x2a0] ss:$8 sps:$4 sm:$0xff]   ;;  %v5904_v14 = vld [vmem:[#allocation2 + $0x190] ss:$8 sps:$4 sm:$0xff]  }
 0x271   : > { %v5909_v13 = vld [vmem:[#allocation2 + $0x2b4] ss:$8 sps:$4 sm:$0xff]  }
 0x272   : > { %5766 = vmatprep.subr.bf16.mxu1 %v5765_v15  ;;  %v6843_v19 = vpop.permute.xlu1 %261  ;;  %v5912_v15 = vld [vmem:[#allocation2 + $0x1a4] ss:$8 sps:$4 sm:$0xff]  }
 0x273   : > { %v6847_v37 = vadd.f32 %v6771_v30, %v6843_v19  ;;  %5768 = vmatpush1.bf16.xpose.msra.mxu1 %v5767_v16  ;;  %v5856_v30 = vld [vmem:[#allocation2 + $0x110] ss:$8 sps:$4 sm:$0xff]  }
 0x274   : > { %3674 = vmatprep.subr.bf16.mxu1 %v5852_v17  ;;  %v5907_v16 = vld [vmem:[#allocation2 + $0x2b0] ss:$8 sps:$4 sm:$0xff]   ;;  %v5915_v17 = vld [vmem:[#allocation2 + $0x2c4] ss:$8 sps:$4 sm:$0xff]  }
 0x275   : > { %3718 = vmatpush1.bf16.xpose.msra.mxu0 %v5847_v18  ;;  %v5910_v18 = vld [vmem:[#allocation2 + $0x1a0] ss:$8 sps:$4 sm:$0xff]  }
 0x276   : > { %v6849_v38 = vpop.permute.xlu1 %251  ;;  %3719 = vmatprep.subr.bf16.mxu0 %v5855_v20  ;;  %v5918_v20 = vld [vmem:[#allocation2 + $0x1b4] ss:$8 sps:$4 sm:$0xff]  }
 0x277   : > { %v6853_v24 = vadd.f32 %v6763_v26, %v6849_v38  ;;  %v5862_v26 = vld [vmem:[#allocation2 + $0x120] ss:$8 sps:$4 sm:$0xff]  }
 0x27a   : > { %554 = vmatmul.mubr.f32.vlgmr.msra.gmra.mrb[0].mxu1 %v455_v0  ;;  %v5897_v0 = vld [vmem:[#allocation2 + $0x294] ss:$8 sps:$4 sm:$0xff]  }
 0x27b   : > { %3675 = vmatpush1.bf16.xpose.msra.mxu1 %v5850_v39  ;;  %3706 = vmatprep.mubr.bf16.mxu1 %v6825_v3  ;;  %v5913_v39 = vld [vmem:[#allocation2 + $0x2c0] ss:$8 sps:$4 sm:$0xff]  }
 0x27c   : > { %3676 = vmatprep.subr.bf16.mxu1 %v5858_v40  ;;  %v5921_v40 = vld [vmem:[#allocation2 + $0x2d4] ss:$8 sps:$4 sm:$0xff]  }
 0x27d   : > { %3720 = vmatpush1.bf16.xpose.msra.mxu0 %v5853_v41  ;;  %v5916_v41 = vld [vmem:[#allocation2 + $0x1b0] ss:$8 sps:$4 sm:$0xff]  }
 0x27e   : > { %3721 = vmatprep.subr.bf16.mxu0 %v5861_v42  ;;  %v5924_v42 = vld [vmem:[#allocation2 + $0x1c4] ss:$8 sps:$4 sm:$0xff]  }
 0x283   : > { %3677 = vmatpush1.bf16.xpose.msra.mxu1 %v5856_v30  ;;  %v5919_v30 = vld [vmem:[#allocation2 + $0x2d0] ss:$8 sps:$4 sm:$0xff]  }
 0x284   : > { %3678 = vmatprep.subr.bf16.mxu1 %v5864_v43  ;;  %v5927_v43 = vld [vmem:[#allocation2 + $0x2e4] ss:$8 sps:$4 sm:$0xff]  }
 0x285   : > { %3722 = vmatpush1.bf16.xpose.msra.mxu0 %v5859_v44  ;;  %v5922_v44 = vld [vmem:[#allocation2 + $0x1c0] ss:$8 sps:$4 sm:$0xff]  }
 0x286   : > { %3723 = vmatprep.subr.bf16.mxu0 %v5867_v45  ;;  %v5930_v45 = vld [vmem:[#allocation2 + $0x1d4] ss:$8 sps:$4 sm:$0xff]  }
 0x28b   : > { %3679 = vmatpush1.bf16.xpose.msra.mxu1 %v5862_v26  ;;  %v5925_v26 = vld [vmem:[#allocation2 + $0x2e0] ss:$8 sps:$4 sm:$0xff]  }
 0x28c   : > { %3680 = vmatprep.subr.bf16.mxu1 %v5870_v46  ;;  %v5933_v46 = vld [vmem:[#allocation2 + $0x2f4] ss:$8 sps:$4 sm:$0xff]  }
 0x28d   : > { %3724 = vmatpush1.bf16.xpose.msra.mxu0 %v5865_v47  ;;  %v5928_v47 = vld [vmem:[#allocation2 + $0x1d0] ss:$8 sps:$4 sm:$0xff]  }
 0x28e   : > { %3725 = vmatprep.subr.bf16.mxu0 %v5873_v48  ;;  %v5936_v48 = vld [vmem:[#allocation2 + $0x1e4] ss:$8 sps:$4 sm:$0xff]  }
 0x293   : > { %3681 = vmatpush1.bf16.xpose.msra.mxu1 %v5868_v49  ;;  %v5931_v49 = vld [vmem:[#allocation2 + $0x2f0] ss:$8 sps:$4 sm:$0xff]  }
 0x294   : > { %3682 = vmatprep.subr.bf16.mxu1 %v5876_v50  ;;  %v5939_v50 = vld [vmem:[#allocation2 + $0x404] ss:$8 sps:$4 sm:$0xff]  }
 0x295   : > { %3726 = vmatpush1.bf16.xpose.msra.mxu0 %v5871_v51  ;;  %v5934_v51 = vld [vmem:[#allocation2 + $0x1e0] ss:$8 sps:$4 sm:$0xff]  }
 0x296   : > { %3727 = vmatprep.subr.bf16.mxu0 %v5879_v52  ;;  %v5942_v52 = vld [vmem:[#allocation2 + $0x1f4] ss:$8 sps:$4 sm:$0xff]  }
 0x29b   : > { %3683 = vmatpush1.bf16.xpose.msra.mxu1 %v5874_v53  ;;  %v5937_v53 = vld [vmem:[#allocation2 + $0x400] ss:$8 sps:$4 sm:$0xff]  }
 0x29c   : > { %3684 = vmatprep.subr.bf16.mxu1 %v5882_v54  ;;  %v5945_v54 = vld [vmem:[#allocation2 + $0x414] ss:$8 sps:$4 sm:$0xff]  }
 0x29d   : > { %3728 = vmatpush1.bf16.xpose.msra.mxu0 %v5877_v55  ;;  %v5940_v55 = vld [vmem:[#allocation2 + $0x1f0] ss:$8 sps:$4 sm:$0xff]  }
 0x29e   : > { %3729 = vmatprep.subr.bf16.mxu0 %v5885_v56  ;;  %v5948_v56 = vld [vmem:[#allocation2 + $0x304] ss:$8 sps:$4 sm:$0xff]  }
 0x2a3   : > { %3685 = vmatpush1.bf16.xpose.msra.mxu1 %v5880_v57  ;;  %v5943_v57 = vld [vmem:[#allocation2 + $0x410] ss:$8 sps:$4 sm:$0xff]  }
 0x2a4   : > { %3686 = vmatprep.subr.bf16.mxu1 %v5888_v58  ;;  %v5951_v58 = vld [vmem:[#allocation2 + $0x424] ss:$8 sps:$4 sm:$0xff]  }
 0x2a5   : > { %3730 = vmatpush1.bf16.xpose.msra.mxu0 %v5883_v59  ;;  %v5946_v59 = vld [vmem:[#allocation2 + $0x300] ss:$8 sps:$4 sm:$0xff]  }
 0x2a6   : > { %3731 = vmatprep.subr.bf16.mxu0 %v5891_v60  ;;  %v5954_v60 = vld [vmem:[#allocation2 + $0x314] ss:$8 sps:$4 sm:$0xff]  }
 0x2ab   : > { %3687 = vmatpush1.bf16.xpose.msra.mxu1 %v5886_v61  ;;  %v5949_v61 = vld [vmem:[#allocation2 + $0x420] ss:$8 sps:$4 sm:$0xff]  }
 0x2ac   : > { %3688 = vmatprep.subr.bf16.mxu1 %v5894_v62  ;;  %v5957_v62 = vld [vmem:[#allocation2 + $0x434] ss:$8 sps:$4 sm:$0xff]  }
 0x2ad   : > { %3732 = vmatpush1.bf16.xpose.msra.mxu0 %v5889_v63  ;;  %v5952_v63 = vld [vmem:[#allocation2 + $0x310] ss:$8 sps:$4 sm:$0xff]  }
 0x2ae   : > { %3733 = vmatprep.subr.bf16.mxu0 %v5897_v0  ;;  %v5960_v0 = vld [vmem:[#allocation2 + $0x324] ss:$8 sps:$4 sm:$0xff]  }
 0x2b3   : > { %3689 = vmatpush1.bf16.xpose.msra.mxu1 %v5892_v1  ;;  %v5955_v1 = vld [vmem:[#allocation2 + $0x430] ss:$8 sps:$4 sm:$0xff]  }
 0x2b4   : > { %3690 = vmatprep.subr.bf16.mxu1 %v5900_v4  ;;  %v5963_v4 = vld [vmem:[#allocation2 + $0x444] ss:$8 sps:$4 sm:$0xff]  }
 0x2b5   : > { %3734 = vmatpush1.bf16.xpose.msra.mxu0 %v5895_v6  ;;  %v5958_v6 = vld [vmem:[#allocation2 + $0x320] ss:$8 sps:$4 sm:$0xff]  }
 0x2b6   : > { %3735 = vmatprep.subr.bf16.mxu0 %v5903_v7  ;;  %v5966_v7 = vld [vmem:[#allocation2 + $0x334] ss:$8 sps:$4 sm:$0xff]  }
 0x2bb   : > { %3691 = vmatpush1.bf16.xpose.msra.mxu1 %v5898_v9  ;;  %v5961_v9 = vld [vmem:[#allocation2 + $0x440] ss:$8 sps:$4 sm:$0xff]  }
 0x2bc   : > { %3692 = vmatprep.subr.bf16.mxu1 %v5906_v11  ;;  %v5969_v11 = vld [vmem:[#allocation2 + $0x454] ss:$8 sps:$4 sm:$0xff]  }
 0x2bd   : > { %3736 = vmatpush1.bf16.xpose.msra.mxu0 %v5901_v12  ;;  %v5964_v12 = vld [vmem:[#allocation2 + $0x330] ss:$8 sps:$4 sm:$0xff]  }
 0x2be   : > { %3737 = vmatprep.subr.bf16.mxu0 %v5909_v13  ;;  %v5972_v13 = vld [vmem:[#allocation2 + $0x344] ss:$8 sps:$4 sm:$0xff]  }
 0x2c3   : > { %3693 = vmatpush1.bf16.xpose.msra.mxu1 %v5904_v14  ;;  %v5967_v14 = vld [vmem:[#allocation2 + $0x450] ss:$8 sps:$4 sm:$0xff]  }
 0x2c4   : > { %3694 = vmatprep.subr.bf16.mxu1 %v5912_v15  ;;  %v5975_v15 = vld [vmem:[#allocation2 + $0x464] ss:$8 sps:$4 sm:$0xff]  }
 0x2c5   : > { %3738 = vmatpush1.bf16.xpose.msra.mxu0 %v5907_v16  ;;  %v5970_v16 = vld [vmem:[#allocation2 + $0x340] ss:$8 sps:$4 sm:$0xff]  }
 0x2c6   : > { %3739 = vmatprep.subr.bf16.mxu0 %v5915_v17  ;;  %v5978_v17 = vld [vmem:[#allocation2 + $0x354] ss:$8 sps:$4 sm:$0xff]  }
 0x2cb   : > { %3695 = vmatpush1.bf16.xpose.msra.mxu1 %v5910_v18  ;;  %v5973_v18 = vld [vmem:[#allocation2 + $0x460] ss:$8 sps:$4 sm:$0xff]  }
 0x2cc   : > { %3696 = vmatprep.subr.bf16.mxu1 %v5918_v20  ;;  %v5981_v20 = vld [vmem:[#allocation2 + $0x474] ss:$8 sps:$4 sm:$0xff]  }
 0x2cd   : > { %3740 = vmatpush1.bf16.xpose.msra.mxu0 %v5913_v39  ;;  %v5976_v39 = vld [vmem:[#allocation2 + $0x350] ss:$8 sps:$4 sm:$0xff]  }
 0x2ce   : > { %3741 = vmatprep.subr.bf16.mxu0 %v5921_v40  ;;  %v5984_v40 = vld [vmem:[#allocation2 + $0x364] ss:$8 sps:$4 sm:$0xff]  }
 0x2d3   : > { %3697 = vmatpush1.bf16.xpose.msra.mxu1 %v5916_v41  ;;  %v5979_v41 = vld [vmem:[#allocation2 + $0x470] ss:$8 sps:$4 sm:$0xff]  }
 0x2d4   : > { %3698 = vmatprep.subr.bf16.mxu1 %v5924_v42  ;;  %v5987_v42 = vld [vmem:[#allocation2 + $0x484] ss:$8 sps:$4 sm:$0xff]  }
 0x2d5   : > { %3742 = vmatpush1.bf16.xpose.msra.mxu0 %v5919_v30  ;;  %v5982_v30 = vld [vmem:[#allocation2 + $0x360] ss:$8 sps:$4 sm:$0xff]  }
 0x2d6   : > { %3743 = vmatprep.subr.bf16.mxu0 %v5927_v43  ;;  %v5990_v43 = vld [vmem:[#allocation2 + $0x374] ss:$8 sps:$4 sm:$0xff]  }
 0x2db   : > { %3699 = vmatpush1.bf16.xpose.msra.mxu1 %v5922_v44  ;;  %v5985_v44 = vld [vmem:[#allocation2 + $0x480] ss:$8 sps:$4 sm:$0xff]  }
 0x2dc   : > { %3700 = vmatprep.subr.bf16.mxu1 %v5930_v45  ;;  %v5993_v45 = vld [vmem:[#allocation2 + $0x494] ss:$8 sps:$4 sm:$0xff]  }
 0x2dd   : > { %3744 = vmatpush1.bf16.xpose.msra.mxu0 %v5925_v26  ;;  %v5988_v26 = vld [vmem:[#allocation2 + $0x370] ss:$8 sps:$4 sm:$0xff]  }
 0x2de   : > { %3745 = vmatprep.subr.bf16.mxu0 %v5933_v46  ;;  %v5996_v46 = vld [vmem:[#allocation2 + $0x384] ss:$8 sps:$4 sm:$0xff]  }
 0x2e3   : > { %3701 = vmatpush1.bf16.xpose.msra.mxu1 %v5928_v47  ;;  %v5991_v47 = vld [vmem:[#allocation2 + $0x490] ss:$8 sps:$4 sm:$0xff]  }
 0x2e4   : > { %3702 = vmatprep.subr.bf16.mxu1 %v5936_v48  ;;  %v5999_v48 = vld [vmem:[#allocation2 + $0x4a4] ss:$8 sps:$4 sm:$0xff]  }
 0x2e5   : > { %3746 = vmatpush1.bf16.xpose.msra.mxu0 %v5931_v49  ;;  %v5994_v49 = vld [vmem:[#allocation2 + $0x380] ss:$8 sps:$4 sm:$0xff]  }
 0x2e6   : > { %3797 = vmatprep.subr.bf16.mxu0 %v5939_v50  ;;  %v6002_v50 = vld [vmem:[#allocation2 + $0x394] ss:$8 sps:$4 sm:$0xff]  }
 0x2eb   : > { %3703 = vmatpush1.bf16.xpose.msra.mxu1 %v5934_v51  ;;  %v5997_v51 = vld [vmem:[#allocation2 + $0x4a0] ss:$8 sps:$4 sm:$0xff]  }
 0x2ec   : > { %3748 = vmatmul.mubr.bf16.vlgmr.msra.gmra.mrb[28].mxu0 %v6823_v2  ;;  %3704 = vmatprep.subr.bf16.mxu1 %v5942_v52  ;;  %v6005_v52 = vld [vmem:[#allocation2 + $0x4b4] ss:$8 sps:$4 sm:$0xff]  }
 0x2ed   : > { %3798 = vmatpush1.bf16.xpose.msra.mxu0 %v5937_v53  ;;  %3829 = vmatprep.mubr.bf16.mxu0 %v6825_v3  ;;  %v6000_v53 = vld [vmem:[#allocation2 + $0x390] ss:$8 sps:$4 sm:$0xff]  }
 0x2ee   : > { %3799 = vmatprep.subr.bf16.mxu0 %v5945_v54 }
 0x2f3   : > { %3705 = vmatpush1.bf16.xpose.msra.mxu1 %v5940_v55  ;;  %v6008_v55 = vld [vmem:[#allocation2 + $0x3a4] ss:$8 sps:$4 sm:$0xff]  }
 0x2f4   : > { %3756 = vmatprep.subr.bf16.mxu1 %v5948_v56 }
 0x2f5   : > { %3800 = vmatpush1.bf16.xpose.msra.mxu0 %v5943_v57  ;;  %v6003_v57 = vld [vmem:[#allocation2 + $0x4b0] ss:$8 sps:$4 sm:$0xff]  }
 0x2f6   : > { %3801 = vmatprep.subr.bf16.mxu0 %v5951_v58 }
 0x2fa   : > { %3707 = vmatmul.mubr.bf16.vlgmr.msra.gmra.mrb[4].mxu1 %v6823_v2 }
 0x2fb   : > { %3757 = vmatpush1.bf16.xpose.msra.mxu1 %v5946_v59  ;;  %3788 = vmatprep.mubr.bf16.mxu1 %v6825_v3  ;;  %v6011_v59 = vld [vmem:[#allocation2 + $0x4c4] ss:$8 sps:$4 sm:$0xff]  }
 0x2fc   : > { %3758 = vmatprep.subr.bf16.mxu1 %v5954_v60 }
 0x2fd   : > { %3802 = vmatpush1.bf16.xpose.msra.mxu0 %v5949_v61  ;;  %v4358_v61 = vlaneseq }
 0x2fe   : > { %3803 = vmatprep.subr.bf16.mxu0 %v5957_v62 }
 0x2ff   : > { %v6864_v62 = vshrl.u32 %v4358_v61, 7  ;;  %v6048_v61 = vld [vmem:[#allocation2 + $0x510] ss:$8 sps:$4 sm:$0xff]  }
 0x303   : > { %3759 = vmatpush1.bf16.xpose.msra.mxu1 %v5952_v63  ;;  %v6006_v63 = vld [vmem:[#allocation2 + $0x3a0] ss:$8 sps:$4 sm:$0xff]  }
 0x304   : > { %3760 = vmatprep.subr.bf16.mxu1 %v5960_v0  ;;  %v6014_v0 = vld [vmem:[#allocation2 + $0x3b4] ss:$8 sps:$4 sm:$0xff]  }
 0x305   : > { %3804 = vmatpush1.bf16.xpose.msra.mxu0 %v5955_v1  ;;  %v6009_v1 = vld [vmem:[#allocation2 + $0x4c0] ss:$8 sps:$4 sm:$0xff]  }
 0x306   : > { %3805 = vmatprep.subr.bf16.mxu0 %v5963_v4  ;;  %v4638_v4 = vsub.s32 1, %v6864_v62 }
 0x30b   : > { %3761 = vmatpush1.bf16.xpose.msra.mxu1 %v5958_v6  ;;  %v6017_v6 = vld [vmem:[#allocation2 + $0x4d4] ss:$8 sps:$4 sm:$0xff]  }
 0x30c   : > { %3762 = vmatprep.subr.bf16.mxu1 %v5966_v7 }
 0x30d   : > { %3806 = vmatpush1.bf16.xpose.msra.mxu0 %v5961_v9 }
 0x30e   : > { %3807 = vmatprep.subr.bf16.mxu0 %v5969_v11 }
 0x313   : > { %3763 = vmatpush1.bf16.xpose.msra.mxu1 %v5964_v12  ;;  %v4649_v12 = vsub.s32 2, %v6864_v62 }
 0x314   : > { %3764 = vmatprep.subr.bf16.mxu1 %v5972_v13  ;;  %v6012_v13 = vld [vmem:[#allocation2 + $0x3b0] ss:$8 sps:$4 sm:$0xff]  }
 0x315   : > { %3808 = vmatpush1.bf16.xpose.msra.mxu0 %v5967_v14  ;;  %v6015_v14 = vld [vmem:[#allocation2 + $0x4d0] ss:$8 sps:$4 sm:$0xff]  }
 0x316   : > { %3809 = vmatprep.subr.bf16.mxu0 %v5975_v15  ;;  %v6020_v15 = vld [vmem:[#allocation2 + $0x3c4] ss:$8 sps:$4 sm:$0xff]  }
 0x31b   : > { %3765 = vmatpush1.bf16.xpose.msra.mxu1 %v5970_v16 }
 0x31c   : > { %3766 = vmatprep.subr.bf16.mxu1 %v5978_v17  ;;  %v4627_v17 = vsub.s32 0, %v6864_v62 }
 0x31d   : > { %3810 = vmatpush1.bf16.xpose.msra.mxu0 %v5973_v18  ;;  %v6023_v18 = vld [vmem:[#allocation2 + $0x4e4] ss:$8 sps:$4 sm:$0xff]  }
 0x31e   : > { %3811 = vmatprep.subr.bf16.mxu0 %v5981_v20 }
 0x323   : > { %3767 = vmatpush1.bf16.xpose.msra.mxu1 %v5976_v39  ;;  %v4660_v39 = vsub.s32 3, %v6864_v62 }
 0x324   : > { %3768 = vmatprep.subr.bf16.mxu1 %v5984_v40  ;;  %v6018_v40 = vld [vmem:[#allocation2 + $0x3c0] ss:$8 sps:$4 sm:$0xff]  }
 0x325   : > { %3812 = vmatpush1.bf16.xpose.msra.mxu0 %v5979_v41  ;;  %v6021_v41 = vld [vmem:[#allocation2 + $0x4e0] ss:$8 sps:$4 sm:$0xff]  }
 0x326   : > { %3813 = vmatprep.subr.bf16.mxu0 %v5987_v42  ;;  %v6026_v42 = vld [vmem:[#allocation2 + $0x3d4] ss:$8 sps:$4 sm:$0xff]  }
 0x32b   : > { %3769 = vmatpush1.bf16.xpose.msra.mxu1 %v5982_v30 }
 0x32c   : > { %3770 = vmatprep.subr.bf16.mxu1 %v5990_v43  ;;  %v6029_v43 = vld [vmem:[#allocation2 + $0x4f4] ss:$8 sps:$4 sm:$0xff]  }
 0x32d   : > { %3814 = vmatpush1.bf16.xpose.msra.mxu0 %v5985_v44  ;;  %v6024_v44 = vld [vmem:[#allocation2 + $0x3d0] ss:$8 sps:$4 sm:$0xff]  }
 0x32e   : > { %3815 = vmatprep.subr.bf16.mxu0 %v5993_v45  ;;  %v6032_v45 = vld [vmem:[#allocation2 + $0x3e4] ss:$8 sps:$4 sm:$0xff]  }
 0x333   : > { %3771 = vmatpush1.bf16.xpose.msra.mxu1 %v5988_v26  ;;  %v6027_v26 = vld [vmem:[#allocation2 + $0x4f0] ss:$8 sps:$4 sm:$0xff]  }
 0x334   : > { %3772 = vmatprep.subr.bf16.mxu1 %v5996_v46  ;;  %v6035_v46 = vld [vmem:[#allocation2 + $0x604] ss:$8 sps:$4 sm:$0xff]  }
 0x335   : > { %3816 = vmatpush1.bf16.xpose.msra.mxu0 %v5991_v47  ;;  %v6030_v47 = vld [vmem:[#allocation2 + $0x3e0] ss:$8 sps:$4 sm:$0xff]  }
 0x336   : > { %3817 = vmatprep.subr.bf16.mxu0 %v5999_v48  ;;  %v6038_v48 = vld [vmem:[#allocation2 + $0x3f4] ss:$8 sps:$4 sm:$0xff]  }
 0x33b   : > { %3773 = vmatpush1.bf16.xpose.msra.mxu1 %v5994_v49  ;;  %v6033_v49 = vld [vmem:[#allocation2 + $0x600] ss:$8 sps:$4 sm:$0xff]  }
 0x33c   : > { %3774 = vmatprep.subr.bf16.mxu1 %v6002_v50  ;;  %v6041_v50 = vld [vmem:[#allocation2 + $0x614] ss:$8 sps:$4 sm:$0xff]  }
 0x33d   : > { %3818 = vmatpush1.bf16.xpose.msra.mxu0 %v5997_v51  ;;  %v6036_v51 = vld [vmem:[#allocation2 + $0x3f0] ss:$8 sps:$4 sm:$0xff]  }
 0x33e   : > { %3819 = vmatprep.subr.bf16.mxu0 %v6005_v52  ;;  %v6044_v52 = vld [vmem:[#allocation2 + $0x504] ss:$8 sps:$4 sm:$0xff]  }
 0x33f   : > { %v6860_v54 = vpop.f32.mrb[24].mxu0 }
 0x340   : > { %v6862_v56 = vpop.f32.mrb[25].mxu0 }
 0x341   : > { %v3671_v58 = vpop.f32.mrb[26].mxu0 }
 0x342   : > { %v3672_v60 = vpop.f32.mrb[27].mxu0  ;;  %v6050_v58 = vld [vmem:[#allocation2 + $0x514] ss:$8 sps:$4 sm:$0xff]  }
 0x343   : > { %3775 = vmatpush1.bf16.xpose.msra.mxu1 %v6000_v53  ;;  %v6039_v53 = vld [vmem:[#allocation2 + $0x610] ss:$8 sps:$4 sm:$0xff]   ;;  %v6053_v60 = vld [vmem:[#allocation2 + $0x634] ss:$8 sps:$4 sm:$0xff]  }
 0x344   : > { %3776 = vmatprep.subr.bf16.mxu1 %v6008_v55  ;;  %v6047_v55 = vld [vmem:[#allocation2 + $0x624] ss:$8 sps:$4 sm:$0xff]  }
 0x345   : > { %3820 = vmatpush1.bf16.xpose.msra.mxu0 %v6003_v57  ;;  %v6042_v57 = vld [vmem:[#allocation2 + $0x500] ss:$8 sps:$4 sm:$0xff]  }
 0x346   : > { %3821 = vmatprep.subr.bf16.mxu0 %v6011_v59  ;;  %v6045_v59 = vld [vmem:[#allocation2 + $0x620] ss:$8 sps:$4 sm:$0xff]  }
 0x34b   : > { %3777 = vmatpush1.bf16.xpose.msra.mxu1 %v6006_v63  ;;  %v6056_v63 = vld [vmem:[#allocation2 + $0x524] ss:$8 sps:$4 sm:$0xff]  }
 0x34c   : > { %3778 = vmatprep.subr.bf16.mxu1 %v6014_v0  ;;  %v6051_v0 = vld [vmem:[#allocation2 + $0x630] ss:$8 sps:$4 sm:$0xff]  }
 0x34d   : > { %3822 = vmatpush1.bf16.xpose.msra.mxu0 %v6009_v1  ;;  %v555_v7 = vpop.f32.mrb[0].mxu1  ;;  %v6059_v1 = vld [vmem:[#allocation2 + $0x644] ss:$8 sps:$4 sm:$0xff]  }
 0x34e   : > { %v557_v9 = vpop.f32.mrb[1].mxu1  ;;  %v4639_v11 = vrot.slane %v555_v7, %v4638_v4  ;;  %3823 = vmatprep.subr.bf16.mxu0 %v6017_v6  ;;  %v4650_v16 = vrot.slane %v555_v7, %v4649_v12  ;;  %v4628_v20 = vrot.slane %v555_v7, %v4627_v17  ;;  %v4661_v30 = vrot.slane %v555_v7, %v4660_v39  ;;  %v6054_v4 = vld [vmem:[#allocation2 + $0x520] ss:$8 sps:$4 sm:$0xff]   ;;  %v6062_v6 = vld [vmem:[#allocation2 + $0x534] ss:$8 sps:$4 sm:$0xff]  }
 0x34f   : > { %v6057_v7 = vld [vmem:[#allocation2 + $0x640] ss:$8 sps:$4 sm:$0xff]   ;;  %v6065_v9 = vld [vmem:[#allocation2 + $0x654] ss:$8 sps:$4 sm:$0xff]   ;;  %v6068_v12 = vld [vmem:[#allocation2 + $0x544] ss:$8 sps:$4 sm:$0xff]  }
 0x350   : > { %4645 = vbcast.lane.b32.xlu0 %v4639_v11, 264  ;;  %4641 = vbcast.lane.b32.xlu1 %v4639_v11, 256  ;;  %v6060_v11 = vld [vmem:[#allocation2 + $0x530] ss:$8 sps:$4 sm:$0xff]   ;;  %v6069_v17 = vld [vmem:[#allocation2 + $0x660] ss:$8 sps:$4 sm:$0xff]  }
 0x351   : > { %v6080_v39 = vld [vmem:[#allocation2 + $0x564] ss:$8 sps:$4 sm:$0xff]  }
 0x353   : > { %3779 = vmatpush1.bf16.xpose.msra.mxu1 %v6012_v13  ;;  %v6063_v13 = vld [vmem:[#allocation2 + $0x650] ss:$8 sps:$4 sm:$0xff]  }
 0x354   : > { %4656 = vbcast.lane.b32.xlu0 %v4650_v16, 264  ;;  %4652 = vbcast.lane.b32.xlu1 %v4650_v16, 256  ;;  %v6074_v16 = vld [vmem:[#allocation2 + $0x554] ss:$8 sps:$4 sm:$0xff]  }
 0x355   : > { %3824 = vmatpush1.bf16.xpose.msra.mxu0 %v6015_v14  ;;  %3780 = vmatprep.subr.bf16.mxu1 %v6020_v15  ;;  %v6071_v14 = vld [vmem:[#allocation2 + $0x664] ss:$8 sps:$4 sm:$0xff]   ;;  %v6066_v15 = vld [vmem:[#allocation2 + $0x540] ss:$8 sps:$4 sm:$0xff]  }
 0x356   : > { %3825 = vmatprep.subr.bf16.mxu0 %v6023_v18  ;;  %v6077_v18 = vld [vmem:[#allocation2 + $0x674] ss:$8 sps:$4 sm:$0xff]  }
 0x358   : > { %4634 = vbcast.lane.b32.xlu0 %v4628_v20, 264  ;;  %4630 = vbcast.lane.b32.xlu1 %v4628_v20, 256  ;;  %v6072_v20 = vld [vmem:[#allocation2 + $0x550] ss:$8 sps:$4 sm:$0xff]  }
 0x35b   : > { %3781 = vmatpush1.bf16.xpose.msra.mxu1 %v6018_v40  ;;  %v6075_v40 = vld [vmem:[#allocation2 + $0x670] ss:$8 sps:$4 sm:$0xff]  }
 0x35c   : > { %4667 = vbcast.lane.b32.xlu0 %v4661_v30, 264  ;;  %4663 = vbcast.lane.b32.xlu1 %v4661_v30, 256  ;;  %v6086_v30 = vld [vmem:[#allocation2 + $0x574] ss:$8 sps:$4 sm:$0xff]  }
 0x35d   : > { %3826 = vmatpush1.bf16.xpose.msra.mxu0 %v6021_v41  ;;  %3782 = vmatprep.subr.bf16.mxu1 %v6026_v42  ;;  %v6083_v41 = vld [vmem:[#allocation2 + $0x684] ss:$8 sps:$4 sm:$0xff]   ;;  %v6078_v42 = vld [vmem:[#allocation2 + $0x560] ss:$8 sps:$4 sm:$0xff]  }
 0x35e   : > { %3827 = vmatprep.subr.bf16.mxu0 %v6029_v43  ;;  %v6081_v43 = vld [vmem:[#allocation2 + $0x680] ss:$8 sps:$4 sm:$0xff]  }
 0x363   : > { %3783 = vmatpush1.bf16.xpose.msra.mxu1 %v6024_v44  ;;  %v6089_v44 = vld [vmem:[#allocation2 + $0x694] ss:$8 sps:$4 sm:$0xff]  }
 0x364   : > { %3784 = vmatprep.subr.bf16.mxu1 %v6032_v45  ;;  %v6084_v45 = vld [vmem:[#allocation2 + $0x570] ss:$8 sps:$4 sm:$0xff]  }
 0x365   : > { %3828 = vmatpush1.bf16.xpose.msra.mxu0 %v6027_v26  ;;  %v6092_v26 = vld [vmem:[#allocation2 + $0x584] ss:$8 sps:$4 sm:$0xff]  }
 0x366   : > { %3879 = vmatprep.subr.bf16.mxu0 %v6035_v46  ;;  %v6087_v46 = vld [vmem:[#allocation2 + $0x690] ss:$8 sps:$4 sm:$0xff]  }
 0x36b   : > { %3785 = vmatpush1.bf16.xpose.msra.mxu1 %v6030_v47  ;;  %v6095_v47 = vld [vmem:[#allocation2 + $0x6a4] ss:$8 sps:$4 sm:$0xff]  }
 0x36c   : > { %3830 = vmatmul.mubr.bf16.vlgmr.msra.gmra.mrb[32].mxu0 %v6823_v2  ;;  %3786 = vmatprep.subr.bf16.mxu1 %v6038_v48  ;;  %v6621_v48 = vmov 1983009808  }
 0x36d   : > { %3880 = vmatpush1.bf16.xpose.msra.mxu0 %v6033_v49  ;;  %3911 = vmatprep.mubr.bf16.mxu0 %v6825_v3  ;;  %v4356_v49 = vunpack.c.l.s4 %v6621_v48  ;;  %v6134_v48 = vld [vmem:[#allocation2 + $0x5f4] ss:$8 sps:$4 sm:$0xff]  }
 0x36e   : > { %3881 = vmatprep.subr.bf16.mxu0 %v6041_v50  ;;  %v6090_v50 = vld [vmem:[#allocation2 + $0x580] ss:$8 sps:$4 sm:$0xff]  }
 0x373   : > { %3787 = vmatpush1.bf16.xpose.msra.mxu1 %v6036_v51  ;;  %v6098_v51 = vld [vmem:[#allocation2 + $0x594] ss:$8 sps:$4 sm:$0xff]  }
 0x374   : > { %3838 = vmatprep.subr.bf16.mxu1 %v6044_v52  ;;  %v6093_v52 = vld [vmem:[#allocation2 + $0x6a0] ss:$8 sps:$4 sm:$0xff]  }
 0x375   : > { %3882 = vmatpush1.bf16.xpose.msra.mxu0 %v6039_v53  ;;  %v4357_v53 = vunpack.c.0.s8 %v4356_v49  ;;  %v6129_v49 = vld [vmem:[#allocation2 + $0x800] ss:$8 sps:$4 sm:$0xff]  }
 0x376   : > { %3883 = vmatprep.subr.bf16.mxu0 %v6047_v55  ;;  %v6101_v55 = vld [vmem:[#allocation2 + $0x6b4] ss:$8 sps:$4 sm:$0xff]  }
 0x37a   : > { %3789 = vmatmul.mubr.bf16.vlgmr.msra.gmra.mrb[8].mxu1 %v6823_v2 }
 0x37b   : > { %3839 = vmatpush1.bf16.xpose.msra.mxu1 %v6042_v57  ;;  %3870 = vmatprep.mubr.bf16.mxu1 %v6825_v3  ;;  %v6875_v57 = vsub.s32 %v4357_v53, %v6864_v62  ;;  %v6135_v53 = vld [vmem:[#allocation2 + $0x810] ss:$8 sps:$4 sm:$0xff]  }
 0x37c   : > { %3840 = vmatprep.subr.bf16.mxu1 %v6050_v58 }
 0x37d   : > { %3884 = vmatpush1.bf16.xpose.msra.mxu0 %v6045_v59  ;;  %v6096_v59 = vld [vmem:[#allocation2 + $0x590] ss:$8 sps:$4 sm:$0xff]  }
 0x37e   : > { %3885 = vmatprep.subr.bf16.mxu0 %v6053_v60 }
 0x383   : > { %3841 = vmatpush1.bf16.xpose.msra.mxu1 %v6048_v61 }
 0x384   : > { %3842 = vmatprep.subr.bf16.mxu1 %v6056_v63  ;;  %v6104_v63 = vld [vmem:[#allocation2 + $0x5a4] ss:$8 sps:$4 sm:$0xff]  }
 0x385   : > { %3886 = vmatpush1.bf16.xpose.msra.mxu0 %v6051_v0 }
 0x386   : > { %3887 = vmatprep.subr.bf16.mxu0 %v6059_v1 }
 0x38b   : > { %3843 = vmatpush1.bf16.xpose.msra.mxu1 %v6054_v4  ;;  %v6099_v4 = vld [vmem:[#allocation2 + $0x6b0] ss:$8 sps:$4 sm:$0xff]  }
 0x38c   : > { %3844 = vmatprep.subr.bf16.mxu1 %v6062_v6 }
 0x38d   : > { %3888 = vmatpush1.bf16.xpose.msra.mxu0 %v6057_v7 }
 0x38e   : > { %3889 = vmatprep.subr.bf16.mxu0 %v6065_v9  ;;  %v6107_v9 = vld [vmem:[#allocation2 + $0x6c4] ss:$8 sps:$4 sm:$0xff]  }
 0x393   : > { %3845 = vmatpush1.bf16.xpose.msra.mxu1 %v6060_v11 }
 0x394   : > { %3846 = vmatprep.subr.bf16.mxu1 %v6068_v12  ;;  %v6102_v12 = vld [vmem:[#allocation2 + $0x5a0] ss:$8 sps:$4 sm:$0xff]  }
 0x395   : > { %3890 = vmatpush1.bf16.xpose.msra.mxu0 %v6063_v13  ;;  %v6105_v13 = vld [vmem:[#allocation2 + $0x6c0] ss:$8 sps:$4 sm:$0xff]  }
 0x396   : > { %3891 = vmatprep.subr.bf16.mxu0 %v6071_v14  ;;  %v6113_v14 = vld [vmem:[#allocation2 + $0x6d4] ss:$8 sps:$4 sm:$0xff]  }
 0x39b   : > { %3847 = vmatpush1.bf16.xpose.msra.mxu1 %v6066_v15 }
 0x39c   : > { %3848 = vmatprep.subr.bf16.mxu1 %v6074_v16 }
 0x39d   : > { %3892 = vmatpush1.bf16.xpose.msra.mxu0 %v6069_v17  ;;  %v6108_v17 = vld [vmem:[#allocation2 + $0x5b0] ss:$8 sps:$4 sm:$0xff]  }
 0x39e   : > { %3893 = vmatprep.subr.bf16.mxu0 %v6077_v18 }
 0x3a3   : > { %3849 = vmatpush1.bf16.xpose.msra.mxu1 %v6072_v20  ;;  %v6116_v20 = vld [vmem:[#allocation2 + $0x5c4] ss:$8 sps:$4 sm:$0xff]  }
 0x3a4   : > { %3850 = vmatprep.subr.bf16.mxu1 %v6080_v39  ;;  %v6111_v39 = vld [vmem:[#allocation2 + $0x6d0] ss:$8 sps:$4 sm:$0xff]  }
 0x3a5   : > { %3894 = vmatpush1.bf16.xpose.msra.mxu0 %v6075_v40  ;;  %v6119_v40 = vld [vmem:[#allocation2 + $0x6e4] ss:$8 sps:$4 sm:$0xff]  }
 0x3a6   : > { %3895 = vmatprep.subr.bf16.mxu0 %v6083_v41  ;;  %v6114_v41 = vld [vmem:[#allocation2 + $0x5c0] ss:$8 sps:$4 sm:$0xff]  }
 0x3ab   : > { %3851 = vmatpush1.bf16.xpose.msra.mxu1 %v6078_v42  ;;  %v6122_v42 = vld [vmem:[#allocation2 + $0x5d4] ss:$8 sps:$4 sm:$0xff]  }
 0x3ac   : > { %3852 = vmatprep.subr.bf16.mxu1 %v6086_v30  ;;  %v6117_v30 = vld [vmem:[#allocation2 + $0x6e0] ss:$8 sps:$4 sm:$0xff]  }
 0x3ad   : > { %3896 = vmatpush1.bf16.xpose.msra.mxu0 %v6081_v43  ;;  %v6125_v43 = vld [vmem:[#allocation2 + $0x6f4] ss:$8 sps:$4 sm:$0xff]  }
 0x3ae   : > { %3897 = vmatprep.subr.bf16.mxu0 %v6089_v44  ;;  %v6120_v44 = vld [vmem:[#allocation2 + $0x5d0] ss:$8 sps:$4 sm:$0xff]  }
 0x3b3   : > { %3853 = vmatpush1.bf16.xpose.msra.mxu1 %v6084_v45  ;;  %v6128_v45 = vld [vmem:[#allocation2 + $0x5e4] ss:$8 sps:$4 sm:$0xff]  }
 0x3b4   : > { %3854 = vmatprep.subr.bf16.mxu1 %v6092_v26  ;;  %v6123_v26 = vld [vmem:[#allocation2 + $0x6f0] ss:$8 sps:$4 sm:$0xff]  }
 0x3b5   : > { %3898 = vmatpush1.bf16.xpose.msra.mxu0 %v6087_v46  ;;  %v6131_v46 = vld [vmem:[#allocation2 + $0x804] ss:$8 sps:$4 sm:$0xff]  }
 0x3b6   : > { %3899 = vmatprep.subr.bf16.mxu0 %v6095_v47  ;;  %v6126_v47 = vld [vmem:[#allocation2 + $0x5e0] ss:$8 sps:$4 sm:$0xff]  }
 0x3bb   : > { %3855 = vmatpush1.bf16.xpose.msra.mxu1 %v6090_v50  ;;  %v6137_v50 = vld [vmem:[#allocation2 + $0x814] ss:$8 sps:$4 sm:$0xff]  }
 0x3bc   : > { %3856 = vmatprep.subr.bf16.mxu1 %v6098_v51  ;;  %v6132_v51 = vld [vmem:[#allocation2 + $0x5f0] ss:$8 sps:$4 sm:$0xff]  }
 0x3bd   : > { %3900 = vmatpush1.bf16.xpose.msra.mxu0 %v6093_v52  ;;  %v6140_v52 = vld [vmem:[#allocation2 + $0x704] ss:$8 sps:$4 sm:$0xff]  }
 0x3be   : > { %3901 = vmatprep.subr.bf16.mxu0 %v6101_v55  ;;  %v6143_v55 = vld [vmem:[#allocation2 + $0x824] ss:$8 sps:$4 sm:$0xff]  }
 0x3bf   : > { %v3749_v58 = vpop.f32.mrb[28].mxu0 }
 0x3c0   : > { %v5725_v60 = vcombine.low %v6860_v54, %v3749_v58  ;;  %v3751_v61 = vpop.f32.mrb[29].mxu0  ;;  %v6110_v54 = vld [vmem:[#allocation2 + $0x5b4] ss:$8 sps:$4 sm:$0xff]   ;;  %v6138_v58 = vld [vmem:[#allocation2 + $0x700] ss:$8 sps:$4 sm:$0xff]  }
 0x3c1   : > { %v5726_v0 = vcombine.low %v6862_v56, %v3751_v61  ;;  %v3753_v1 = vpop.f32.mrb[30].mxu0  ;;  %v6149_v61 = vld [vmem:[#allocation2 + $0x834] ss:$8 sps:$4 sm:$0xff]  }
 0x3c2   : > { %v6880_v6 = vrot.slane %v5725_v60, %v6875_v57  ;;  %v3754_v7 = vpop.f32.mrb[31].mxu0  ;;  %v6141_v60 = vld [vmem:[#allocation2 + $0x820] ss:$8 sps:$4 sm:$0xff]   ;;  %v6147_v1 = vld [vmem:[#allocation2 + $0x830] ss:$8 sps:$4 sm:$0xff]  }
 0x3c3   : > { %v6883_v11 = vrot.slane %v5726_v0, %v6875_v57  ;;  %3857 = vmatpush1.bf16.xpose.msra.mxu1 %v6096_v59  ;;  %v6146_v59 = vld [vmem:[#allocation2 + $0x714] ss:$8 sps:$4 sm:$0xff]   ;;  %v6152_v0 = vld [vmem:[#allocation2 + $0x724] ss:$8 sps:$4 sm:$0xff]   ;;  %v6150_v7 = vld [vmem:[#allocation2 + $0x720] ss:$8 sps:$4 sm:$0xff]  }
 0x3c4   : > { %3858 = vmatprep.subr.bf16.mxu1 %v6104_v63  ;;  %v6144_v63 = vld [vmem:[#allocation2 + $0x710] ss:$8 sps:$4 sm:$0xff]  }
 0x3c5   : > { %3902 = vmatpush1.bf16.xpose.msra.mxu0 %v6099_v4  ;;  %v6155_v4 = vld [vmem:[#allocation2 + $0x844] ss:$8 sps:$4 sm:$0xff]  }
 0x3c6   : > { %3903 = vmatprep.subr.bf16.mxu0 %v6107_v9  ;;  %v6158_v9 = vld [vmem:[#allocation2 + $0x734] ss:$8 sps:$4 sm:$0xff]  }
 0x3cb   : > { %3859 = vmatpush1.bf16.xpose.msra.mxu1 %v6102_v12  ;;  %v6153_v12 = vld [vmem:[#allocation2 + $0x840] ss:$8 sps:$4 sm:$0xff]  }
 0x3cc   : > { %3860 = vmatprep.subr.bf16.mxu1 %v6110_v54  ;;  %v6161_v54 = vld [vmem:[#allocation2 + $0x854] ss:$8 sps:$4 sm:$0xff]  }
 0x3cd   : > { %3904 = vmatpush1.bf16.xpose.msra.mxu0 %v6105_v13  ;;  %v6885_v56 = vpop.f32.mrb[4].mxu1  ;;  %v6156_v13 = vld [vmem:[#allocation2 + $0x730] ss:$8 sps:$4 sm:$0xff]  }
 0x3ce   : > { %v6887_v15 = vpop.f32.mrb[5].mxu1  ;;  %3905 = vmatprep.subr.bf16.mxu0 %v6113_v14  ;;  %v6164_v14 = vld [vmem:[#allocation2 + $0x744] ss:$8 sps:$4 sm:$0xff]  }
 0x3cf   : > { %v3712_v16 = vpop.f32.mrb[6].mxu1 }
 0x3d0   : > { %v3713_v18 = vpop.f32.mrb[7].mxu1  ;;  %v6159_v16 = vld [vmem:[#allocation2 + $0x850] ss:$8 sps:$4 sm:$0xff]  }
 0x3d1   : > { %v6162_v18 = vld [vmem:[#allocation2 + $0x740] ss:$8 sps:$4 sm:$0xff]  }
 0x3d3   : > { %3861 = vmatpush1.bf16.xpose.msra.mxu1 %v6108_v17  ;;  %v6167_v17 = vld [vmem:[#allocation2 + $0x864] ss:$8 sps:$4 sm:$0xff]  }
 0x3d4   : > { %3862 = vmatprep.subr.bf16.mxu1 %v6116_v20  ;;  %v6170_v20 = vld [vmem:[#allocation2 + $0x754] ss:$8 sps:$4 sm:$0xff]  }
 0x3d5   : > { %3906 = vmatpush1.bf16.xpose.msra.mxu0 %v6111_v39  ;;  %v6165_v39 = vld [vmem:[#allocation2 + $0x860] ss:$8 sps:$4 sm:$0xff]  }
 0x3d6   : > { %3907 = vmatprep.subr.bf16.mxu0 %v6119_v40  ;;  %v6173_v40 = vld [vmem:[#allocation2 + $0x874] ss:$8 sps:$4 sm:$0xff]  }
 0x3db   : > { %3863 = vmatpush1.bf16.xpose.msra.mxu1 %v6114_v41  ;;  %v6168_v41 = vld [vmem:[#allocation2 + $0x750] ss:$8 sps:$4 sm:$0xff]  }
 0x3dc   : > { %3864 = vmatprep.subr.bf16.mxu1 %v6122_v42  ;;  %v6176_v42 = vld [vmem:[#allocation2 + $0x764] ss:$8 sps:$4 sm:$0xff]  }
 0x3dd   : > { %3908 = vmatpush1.bf16.xpose.msra.mxu0 %v6117_v30  ;;  %v6171_v30 = vld [vmem:[#allocation2 + $0x870] ss:$8 sps:$4 sm:$0xff]  }
 0x3de   : > { %3909 = vmatprep.subr.bf16.mxu0 %v6125_v43  ;;  %v6179_v43 = vld [vmem:[#allocation2 + $0x884] ss:$8 sps:$4 sm:$0xff]  }
 0x3e3   : > { %3865 = vmatpush1.bf16.xpose.msra.mxu1 %v6120_v44  ;;  %v6174_v44 = vld [vmem:[#allocation2 + $0x760] ss:$8 sps:$4 sm:$0xff]  }
 0x3e4   : > { %3866 = vmatprep.subr.bf16.mxu1 %v6128_v45  ;;  %v6182_v45 = vld [vmem:[#allocation2 + $0x774] ss:$8 sps:$4 sm:$0xff]  }
 0x3e5   : > { %3910 = vmatpush1.bf16.xpose.msra.mxu0 %v6123_v26  ;;  %v6177_v26 = vld [vmem:[#allocation2 + $0x880] ss:$8 sps:$4 sm:$0xff]  }
 0x3e6   : > { %3961 = vmatprep.subr.bf16.mxu0 %v6131_v46  ;;  %v6185_v46 = vld [vmem:[#allocation2 + $0x894] ss:$8 sps:$4 sm:$0xff]  }
 0x3eb   : > { %3867 = vmatpush1.bf16.xpose.msra.mxu1 %v6126_v47  ;;  %v6180_v47 = vld [vmem:[#allocation2 + $0x770] ss:$8 sps:$4 sm:$0xff]  }
 0x3ec   : > { %3912 = vmatmul.mubr.bf16.vlgmr.msra.gmra.mrb[36].mxu0 %v6823_v2  ;;  %3868 = vmatprep.subr.bf16.mxu1 %v6134_v48  ;;  %v6188_v48 = vld [vmem:[#allocation2 + $0x784] ss:$8 sps:$4 sm:$0xff]  }
 0x3ed   : > { %3962 = vmatpush1.bf16.xpose.msra.mxu0 %v6129_v49  ;;  %3993 = vmatprep.mubr.bf16.mxu0 %v6825_v3  ;;  %v6183_v49 = vld [vmem:[#allocation2 + $0x890] ss:$8 sps:$4 sm:$0xff]  }
 0x3ee   : > { %3963 = vmatprep.subr.bf16.mxu0 %v6137_v50  ;;  %v6191_v50 = vld [vmem:[#allocation2 + $0x8a4] ss:$8 sps:$4 sm:$0xff]  }
 0x3f3   : > { %3869 = vmatpush1.bf16.xpose.msra.mxu1 %v6132_v51  ;;  %v6186_v51 = vld [vmem:[#allocation2 + $0x780] ss:$8 sps:$4 sm:$0xff]  }
 0x3f4   : > { %3920 = vmatprep.subr.bf16.mxu1 %v6140_v52  ;;  %v6194_v52 = vld [vmem:[#allocation2 + $0x794] ss:$8 sps:$4 sm:$0xff]  }
 0x3f5   : > { %3964 = vmatpush1.bf16.xpose.msra.mxu0 %v6135_v53  ;;  %v6189_v53 = vld [vmem:[#allocation2 + $0x8a0] ss:$8 sps:$4 sm:$0xff]  }
 0x3f6   : > { %3965 = vmatprep.subr.bf16.mxu0 %v6143_v55  ;;  %v6197_v55 = vld [vmem:[#allocation2 + $0x8b4] ss:$8 sps:$4 sm:$0xff]  }
 0x3fa   : > { %3871 = vmatmul.mubr.bf16.vlgmr.msra.gmra.mrb[12].mxu1 %v6823_v2 }
 0x3fb   : > { %3921 = vmatpush1.bf16.xpose.msra.mxu1 %v6138_v58  ;;  %3952 = vmatprep.mubr.bf16.mxu1 %v6825_v3 }
 0x3fc   : > { %3922 = vmatprep.subr.bf16.mxu1 %v6146_v59  ;;  %v6192_v59 = vld [vmem:[#allocation2 + $0x790] ss:$8 sps:$4 sm:$0xff]  }
 0x3fd   : > { %3966 = vmatpush1.bf16.xpose.msra.mxu0 %v6141_v60 }
 0x3fe   : > { %3967 = vmatprep.subr.bf16.mxu0 %v6149_v61  ;;  %v6200_v61 = vld [vmem:[#allocation2 + $0x7a4] ss:$8 sps:$4 sm:$0xff]  }
 0x403   : > { %3923 = vmatpush1.bf16.xpose.msra.mxu1 %v6144_v63 }
 0x404   : > { %3924 = vmatprep.subr.bf16.mxu1 %v6152_v0  ;;  %v6195_v0 = vld [vmem:[#allocation2 + $0x8b0] ss:$8 sps:$4 sm:$0xff]  }
 0x405   : > { %3968 = vmatpush1.bf16.xpose.msra.mxu0 %v6147_v1 }
 0x406   : > { %3969 = vmatprep.subr.bf16.mxu0 %v6155_v4  ;;  %v6203_v4 = vld [vmem:[#allocation2 + $0x8c4] ss:$8 sps:$4 sm:$0xff]  }
 0x40b   : > { %3925 = vmatpush1.bf16.xpose.msra.mxu1 %v6150_v7  ;;  %v6198_v7 = vld [vmem:[#allocation2 + $0x7a0] ss:$8 sps:$4 sm:$0xff]  }
 0x40c   : > { %3926 = vmatprep.subr.bf16.mxu1 %v6158_v9  ;;  %v6622_v9 = vmov 1934713408  }
 0x40d   : > { %3970 = vmatpush1.bf16.xpose.msra.mxu0 %v6153_v12  ;;  %v4388_v12 = vunpack.c.l.s4 %v6622_v9  ;;  %v6228_v9 = vld [vmem:[#allocation2 + $0x7f0] ss:$8 sps:$4 sm:$0xff]  }
 0x40e   : > { %3971 = vmatprep.subr.bf16.mxu0 %v6161_v54  ;;  %v6206_v54 = vld [vmem:[#allocation2 + $0x7b4] ss:$8 sps:$4 sm:$0xff]  }
 0x413   : > { %3927 = vmatpush1.bf16.xpose.msra.mxu1 %v6156_v13  ;;  %v6201_v13 = vld [vmem:[#allocation2 + $0x8c0] ss:$8 sps:$4 sm:$0xff]  }
 0x414   : > { %3928 = vmatprep.subr.bf16.mxu1 %v6164_v14  ;;  %v6209_v14 = vld [vmem:[#allocation2 + $0x8d4] ss:$8 sps:$4 sm:$0xff]  }
 0x415   : > { %3972 = vmatpush1.bf16.xpose.msra.mxu0 %v6159_v16  ;;  %v4389_v16 = vunpack.c.0.s8 %v4388_v12  ;;  %v6236_v12 = vld [vmem:[#allocation2 + $0x904] ss:$8 sps:$4 sm:$0xff]  }
 0x416   : > { %3973 = vmatprep.subr.bf16.mxu0 %v6167_v17 }
 0x41b   : > { %3929 = vmatpush1.bf16.xpose.msra.mxu1 %v6162_v18 }
 0x41c   : > { %3930 = vmatprep.subr.bf16.mxu1 %v6170_v20 }
 0x41d   : > { %3974 = vmatpush1.bf16.xpose.msra.mxu0 %v6165_v39 }
 0x41e   : > { %3975 = vmatprep.subr.bf16.mxu0 %v6173_v40 }
 0x423   : > { %3931 = vmatpush1.bf16.xpose.msra.mxu1 %v6168_v41  ;;  %v6204_v41 = vld [vmem:[#allocation2 + $0x7b0] ss:$8 sps:$4 sm:$0xff]  }
 0x424   : > { %3932 = vmatprep.subr.bf16.mxu1 %v6176_v42  ;;  %v6900_v42 = vsub.s32 %v4389_v16, %v6864_v62  ;;  %v6242_v16 = vld [vmem:[#allocation2 + $0x914] ss:$8 sps:$4 sm:$0xff]  }
 0x425   : > { %3976 = vmatpush1.bf16.xpose.msra.mxu0 %v6171_v30 }
 0x426   : > { %3977 = vmatprep.subr.bf16.mxu0 %v6179_v43 }
 0x42b   : > { %3933 = vmatpush1.bf16.xpose.msra.mxu1 %v6174_v44  ;;  %v6212_v44 = vld [vmem:[#allocation2 + $0x7c4] ss:$8 sps:$4 sm:$0xff]  }
 0x42c   : > { %3934 = vmatprep.subr.bf16.mxu1 %v6182_v45 }
 0x42d   : > { %3978 = vmatpush1.bf16.xpose.msra.mxu0 %v6177_v26  ;;  %v6207_v26 = vld [vmem:[#allocation2 + $0x8d0] ss:$8 sps:$4 sm:$0xff]  }
 0x42e   : > { %3979 = vmatprep.subr.bf16.mxu0 %v6185_v46 }
 0x433   : > { %3935 = vmatpush1.bf16.xpose.msra.mxu1 %v6180_v47  ;;  %v6215_v47 = vld [vmem:[#allocation2 + $0x8e4] ss:$8 sps:$4 sm:$0xff]  }
 0x434   : > { %3936 = vmatprep.subr.bf16.mxu1 %v6188_v48 }
 0x435   : > { %3980 = vmatpush1.bf16.xpose.msra.mxu0 %v6183_v49 }
 0x436   : > { %3981 = vmatprep.subr.bf16.mxu0 %v6191_v50 }
 0x43b   : > { %3937 = vmatpush1.bf16.xpose.msra.mxu1 %v6186_v51 }
 0x43c   : > { %3938 = vmatprep.subr.bf16.mxu1 %v6194_v52  ;;  %v6218_v52 = vld [vmem:[#allocation2 + $0x7d4] ss:$8 sps:$4 sm:$0xff]  }
 0x43d   : > { %3982 = vmatpush1.bf16.xpose.msra.mxu0 %v6189_v53  ;;  %v6213_v53 = vld [vmem:[#allocation2 + $0x8e0] ss:$8 sps:$4 sm:$0xff]  }
 0x43e   : > { %3983 = vmatprep.subr.bf16.mxu0 %v6197_v55  ;;  %v6216_v55 = vld [vmem:[#allocation2 + $0x7d0] ss:$8 sps:$4 sm:$0xff]  }
 0x43f   : > { %v6893_v58 = vpop.f32.mrb[32].mxu0 }
 0x440   : > { %v6895_v60 = vpop.f32.mrb[33].mxu0 }
 0x441   : > { %v3835_v63 = vpop.f32.mrb[34].mxu0 }
 0x442   : > { %v3836_v1 = vpop.f32.mrb[35].mxu0  ;;  %v6227_v63 = vld [vmem:[#allocation2 + $0xa04] ss:$8 sps:$4 sm:$0xff]  }
 0x443   : > { %3939 = vmatpush1.bf16.xpose.msra.mxu1 %v6192_v59  ;;  %v6224_v59 = vld [vmem:[#allocation2 + $0x7e4] ss:$8 sps:$4 sm:$0xff]   ;;  %v6230_v1 = vld [vmem:[#allocation2 + $0x7f4] ss:$8 sps:$4 sm:$0xff]  }
 0x444   : > { %3940 = vmatprep.subr.bf16.mxu1 %v6200_v61  ;;  %v6219_v61 = vld [vmem:[#allocation2 + $0x8f0] ss:$8 sps:$4 sm:$0xff]  }
 0x445   : > { %3984 = vmatpush1.bf16.xpose.msra.mxu0 %v6195_v0  ;;  %v6222_v0 = vld [vmem:[#allocation2 + $0x7e0] ss:$8 sps:$4 sm:$0xff]  }
 0x446   : > { %3985 = vmatprep.subr.bf16.mxu0 %v6203_v4  ;;  %v6225_v4 = vld [vmem:[#allocation2 + $0xa00] ss:$8 sps:$4 sm:$0xff]  }
 0x44b   : > { %3941 = vmatpush1.bf16.xpose.msra.mxu1 %v6198_v7  ;;  %v6233_v7 = vld [vmem:[#allocation2 + $0xa14] ss:$8 sps:$4 sm:$0xff]  }
 0x44c   : > { %3942 = vmatprep.subr.bf16.mxu1 %v6206_v54  ;;  %v6231_v54 = vld [vmem:[#allocation2 + $0xa10] ss:$8 sps:$4 sm:$0xff]  }
 0x44d   : > { %3986 = vmatpush1.bf16.xpose.msra.mxu0 %v6201_v13  ;;  %v3790_v17 = vpop.f32.mrb[8].mxu1  ;;  %v6239_v13 = vld [vmem:[#allocation2 + $0xa24] ss:$8 sps:$4 sm:$0xff]  }
 0x44e   : > { %v5727_v18 = vcombine.low %v6885_v56, %v3790_v17  ;;  %v3792_v20 = vpop.f32.mrb[9].mxu1  ;;  %3987 = vmatprep.subr.bf16.mxu0 %v6209_v14  ;;  %v6234_v14 = vld [vmem:[#allocation2 + $0x900] ss:$8 sps:$4 sm:$0xff]  }
 0x44f   : > { %v5728_v39 = vcombine.low %v6887_v15, %v3792_v20  ;;  %v3794_v40 = vpop.f32.mrb[10].mxu1  ;;  %v6237_v17 = vld [vmem:[#allocation2 + $0xa20] ss:$8 sps:$4 sm:$0xff]   ;;  %v6240_v20 = vld [vmem:[#allocation2 + $0x910] ss:$8 sps:$4 sm:$0xff]  }
 0x450   : > { %v4377_v30 = vrot.slane %v5727_v18, %v6875_v57  ;;  %v3795_v43 = vpop.f32.mrb[11].mxu1  ;;  %v6245_v18 = vld [vmem:[#allocation2 + $0xa34] ss:$8 sps:$4 sm:$0xff]   ;;  %v6243_v40 = vld [vmem:[#allocation2 + $0xa30] ss:$8 sps:$4 sm:$0xff]  }
 0x451   : > { %v4384_v45 = vrot.slane %v5728_v39, %v6875_v57  ;;  %v6248_v39 = vld [vmem:[#allocation2 + $0x924] ss:$8 sps:$4 sm:$0xff]   ;;  %v6254_v43 = vld [vmem:[#allocation2 + $0x934] ss:$8 sps:$4 sm:$0xff]  }
 0x452   : > { %v4385_v46 = vcombine.low %v6880_v6, %v4377_v30  ;;  %v4386_v56 = vcombine.high %v6880_v6, %v4377_v30  ;;  %v6210_v6 = vld [vmem:[#allocation2 + $0x7c0] ss:$8 sps:$4 sm:$0xff]  }
 0x453   : > { %v4401_v48 = vcombine.low %v6883_v11, %v4384_v45  ;;  %v4402_v15 = vcombine.high %v6883_v11, %v4384_v45  ;;  %3943 = vmatpush1.bf16.xpose.msra.mxu1 %v6204_v41  ;;  %v6221_v11 = vld [vmem:[#allocation2 + $0x8f4] ss:$8 sps:$4 sm:$0xff]   ;;  %v6251_v41 = vld [vmem:[#allocation2 + $0xa44] ss:$8 sps:$4 sm:$0xff]   ;;  %v6246_v30 = vld [vmem:[#allocation2 + $0x920] ss:$8 sps:$4 sm:$0xff]  }
 0x454   : > { %v6909_v62 = vrot.slane %v4385_v46, %v6900_v42  ;;  %v6912_v49 = vrot.slane %v4386_v56, %v6900_v42  ;;  %3944 = vmatprep.subr.bf16.mxu1 %v6212_v44  ;;  %v6249_v44 = vld [vmem:[#allocation2 + $0xa40] ss:$8 sps:$4 sm:$0xff]   ;;  %v6257_v45 = vld [vmem:[#allocation2 + $0xa54] ss:$8 sps:$4 sm:$0xff]   ;;  %v6260_v46 = vld [vmem:[#allocation2 + $0x944] ss:$8 sps:$4 sm:$0xff]  }
 0x455   : > { %v6915_v50 = vrot.slane %v4401_v48, %v6900_v42  ;;  %v6918_v51 = vrot.slane %v4402_v15, %v6900_v42  ;;  %3988 = vmatpush1.bf16.xpose.msra.mxu0 %v6207_v26  ;;  %v6252_v26 = vld [vmem:[#allocation2 + $0x930] ss:$8 sps:$4 sm:$0xff]   ;;  %v6258_v48 = vld [vmem:[#allocation2 + $0x940] ss:$8 sps:$4 sm:$0xff]   ;;  %v6266_v15 = vld [vmem:[#allocation2 + $0x954] ss:$8 sps:$4 sm:$0xff]  }
 0x456   : > { %3989 = vmatprep.subr.bf16.mxu0 %v6215_v47  ;;  %v6255_v56 = vld [vmem:[#allocation2 + $0xa50] ss:$8 sps:$4 sm:$0xff]   ;;  %v6263_v47 = vld [vmem:[#allocation2 + $0xa64] ss:$8 sps:$4 sm:$0xff]  }
 0x45b   : > { %3945 = vmatpush1.bf16.xpose.msra.mxu1 %v6210_v6  ;;  %v6261_v6 = vld [vmem:[#allocation2 + $0xa60] ss:$8 sps:$4 sm:$0xff]  }
 0x45c   : > { %3946 = vmatprep.subr.bf16.mxu1 %v6218_v52  ;;  %v6269_v52 = vld [vmem:[#allocation2 + $0xa74] ss:$8 sps:$4 sm:$0xff]  }
 0x45d   : > { %3990 = vmatpush1.bf16.xpose.msra.mxu0 %v6213_v53  ;;  %v6264_v53 = vld [vmem:[#allocation2 + $0x950] ss:$8 sps:$4 sm:$0xff]  }
 0x45e   : > { %3991 = vmatprep.subr.bf16.mxu0 %v6221_v11  ;;  %v6272_v11 = vld [vmem:[#allocation2 + $0x964] ss:$8 sps:$4 sm:$0xff]  }
 0x463   : > { %3947 = vmatpush1.bf16.xpose.msra.mxu1 %v6216_v55  ;;  %v6267_v55 = vld [vmem:[#allocation2 + $0xa70] ss:$8 sps:$4 sm:$0xff]  }
 0x464   : > { %3948 = vmatprep.subr.bf16.mxu1 %v6224_v59  ;;  %v6275_v59 = vld [vmem:[#allocation2 + $0xa84] ss:$8 sps:$4 sm:$0xff]  }
 0x465   : > { %3992 = vmatpush1.bf16.xpose.msra.mxu0 %v6219_v61  ;;  %v6270_v61 = vld [vmem:[#allocation2 + $0x960] ss:$8 sps:$4 sm:$0xff]  }
 0x466   : > { %4043 = vmatprep.subr.bf16.mxu0 %v6227_v63  ;;  %v6278_v63 = vld [vmem:[#allocation2 + $0x974] ss:$8 sps:$4 sm:$0xff]  }
 0x46b   : > { %3949 = vmatpush1.bf16.xpose.msra.mxu1 %v6222_v0  ;;  %v6273_v0 = vld [vmem:[#allocation2 + $0xa80] ss:$8 sps:$4 sm:$0xff]  }
 0x46c   : > { %3994 = vmatmul.mubr.bf16.vlgmr.msra.gmra.mrb[40].mxu0 %v6823_v2  ;;  %3950 = vmatprep.subr.bf16.mxu1 %v6230_v1  ;;  %v6281_v1 = vld [vmem:[#allocation2 + $0xa94] ss:$8 sps:$4 sm:$0xff]  }
 0x46d   : > { %4044 = vmatpush1.bf16.xpose.msra.mxu0 %v6225_v4  ;;  %4075 = vmatprep.mubr.bf16.mxu0 %v6825_v3  ;;  %v6276_v4 = vld [vmem:[#allocation2 + $0x970] ss:$8 sps:$4 sm:$0xff]  }
 0x46e   : > { %4045 = vmatprep.subr.bf16.mxu0 %v6233_v7  ;;  %v6284_v7 = vld [vmem:[#allocation2 + $0x984] ss:$8 sps:$4 sm:$0xff]  }
 0x473   : > { %3951 = vmatpush1.bf16.xpose.msra.mxu1 %v6228_v9  ;;  %v6279_v9 = vld [vmem:[#allocation2 + $0xa90] ss:$8 sps:$4 sm:$0xff]  }
 0x474   : > { %4002 = vmatprep.subr.bf16.mxu1 %v6236_v12  ;;  %v6287_v12 = vld [vmem:[#allocation2 + $0xaa4] ss:$8 sps:$4 sm:$0xff]  }
 0x475   : > { %4046 = vmatpush1.bf16.xpose.msra.mxu0 %v6231_v54  ;;  %v6282_v54 = vld [vmem:[#allocation2 + $0x980] ss:$8 sps:$4 sm:$0xff]  }
 0x476   : > { %4047 = vmatprep.subr.bf16.mxu0 %v6239_v13  ;;  %v6290_v13 = vld [vmem:[#allocation2 + $0x994] ss:$8 sps:$4 sm:$0xff]  }
 0x47a   : > { %3953 = vmatmul.mubr.bf16.vlgmr.msra.gmra.mrb[16].mxu1 %v6823_v2 }
 0x47b   : > { %4003 = vmatpush1.bf16.xpose.msra.mxu1 %v6234_v14  ;;  %4034 = vmatprep.mubr.bf16.mxu1 %v6825_v3  ;;  %v6285_v14 = vld [vmem:[#allocation2 + $0xaa0] ss:$8 sps:$4 sm:$0xff]  }
 0x47c   : > { %4004 = vmatprep.subr.bf16.mxu1 %v6242_v16  ;;  %v6293_v16 = vld [vmem:[#allocation2 + $0xab4] ss:$8 sps:$4 sm:$0xff]  }
 0x47d   : > { %4048 = vmatpush1.bf16.xpose.msra.mxu0 %v6237_v17 }
 0x47e   : > { %4049 = vmatprep.subr.bf16.mxu0 %v6245_v18  ;;  %v6288_v18 = vld [vmem:[#allocation2 + $0x990] ss:$8 sps:$4 sm:$0xff]  }
 0x483   : > { %4005 = vmatpush1.bf16.xpose.msra.mxu1 %v6240_v20 }
 0x484   : > { %4006 = vmatprep.subr.bf16.mxu1 %v6248_v39 }
 0x485   : > { %4050 = vmatpush1.bf16.xpose.msra.mxu0 %v6243_v40  ;;  %v6296_v40 = vld [vmem:[#allocation2 + $0x9a4] ss:$8 sps:$4 sm:$0xff]  }
 0x486   : > { %4051 = vmatprep.subr.bf16.mxu0 %v6251_v41 }
 0x48b   : > { %4007 = vmatpush1.bf16.xpose.msra.mxu1 %v6246_v30 }
 0x48c   : > { %4008 = vmatprep.subr.bf16.mxu1 %v6254_v43  ;;  %v6291_v43 = vld [vmem:[#allocation2 + $0xab0] ss:$8 sps:$4 sm:$0xff]  }
 0x48d   : > { %4052 = vmatpush1.bf16.xpose.msra.mxu0 %v6249_v44 }
 0x48e   : > { %4053 = vmatprep.subr.bf16.mxu0 %v6257_v45 }
 0x493   : > { %4009 = vmatpush1.bf16.xpose.msra.mxu1 %v6252_v26  ;;  %v6299_v26 = vld [vmem:[#allocation2 + $0xac4] ss:$8 sps:$4 sm:$0xff]  }
 0x494   : > { %4010 = vmatprep.subr.bf16.mxu1 %v6260_v46 }
 0x495   : > { %4054 = vmatpush1.bf16.xpose.msra.mxu0 %v6255_v56  ;;  %v6294_v56 = vld [vmem:[#allocation2 + $0x9a0] ss:$8 sps:$4 sm:$0xff]  }
 0x496   : > { %4055 = vmatprep.subr.bf16.mxu0 %v6263_v47  ;;  %v6297_v47 = vld [vmem:[#allocation2 + $0xac0] ss:$8 sps:$4 sm:$0xff]  }
 0x49b   : > { %4011 = vmatpush1.bf16.xpose.msra.mxu1 %v6258_v48  ;;  %v6305_v48 = vld [vmem:[#allocation2 + $0xad4] ss:$8 sps:$4 sm:$0xff]  }
 0x49c   : > { %4012 = vmatprep.subr.bf16.mxu1 %v6266_v15 }
 0x49d   : > { %4056 = vmatpush1.bf16.xpose.msra.mxu0 %v6261_v6 }
 0x49e   : > { %4057 = vmatprep.subr.bf16.mxu0 %v6269_v52  ;;  %v6300_v52 = vld [vmem:[#allocation2 + $0x9b0] ss:$8 sps:$4 sm:$0xff]  }
 0x4a3   : > { %4013 = vmatpush1.bf16.xpose.msra.mxu1 %v6264_v53 }
 0x4a4   : > { %4014 = vmatprep.subr.bf16.mxu1 %v6272_v11  ;;  %v6308_v11 = vld [vmem:[#allocation2 + $0x9c4] ss:$8 sps:$4 sm:$0xff]  }
 0x4a5   : > { %4058 = vmatpush1.bf16.xpose.msra.mxu0 %v6267_v55  ;;  %v6303_v55 = vld [vmem:[#allocation2 + $0xad0] ss:$8 sps:$4 sm:$0xff]  }
 0x4a6   : > { %4059 = vmatprep.subr.bf16.mxu0 %v6275_v59  ;;  %v6311_v59 = vld [vmem:[#allocation2 + $0xae4] ss:$8 sps:$4 sm:$0xff]  }
 0x4ab   : > { %4015 = vmatpush1.bf16.xpose.msra.mxu1 %v6270_v61  ;;  %v6306_v61 = vld [vmem:[#allocation2 + $0x9c0] ss:$8 sps:$4 sm:$0xff]  }
 0x4ac   : > { %4016 = vmatprep.subr.bf16.mxu1 %v6278_v63  ;;  %v6314_v63 = vld [vmem:[#allocation2 + $0x9d4] ss:$8 sps:$4 sm:$0xff]  }
 0x4ad   : > { %4060 = vmatpush1.bf16.xpose.msra.mxu0 %v6273_v0  ;;  %v6309_v0 = vld [vmem:[#allocation2 + $0xae0] ss:$8 sps:$4 sm:$0xff]  }
 0x4ae   : > { %4061 = vmatprep.subr.bf16.mxu0 %v6281_v1  ;;  %v6317_v1 = vld [vmem:[#allocation2 + $0xaf4] ss:$8 sps:$4 sm:$0xff]  }
 0x4b3   : > { %4017 = vmatpush1.bf16.xpose.msra.mxu1 %v6276_v4  ;;  %v6312_v4 = vld [vmem:[#allocation2 + $0x9d0] ss:$8 sps:$4 sm:$0xff]  }
 0x4b4   : > { %4018 = vmatprep.subr.bf16.mxu1 %v6284_v7  ;;  %v6320_v7 = vld [vmem:[#allocation2 + $0x9e4] ss:$8 sps:$4 sm:$0xff]  }
 0x4b5   : > { %4062 = vmatpush1.bf16.xpose.msra.mxu0 %v6279_v9  ;;  %v6315_v9 = vld [vmem:[#allocation2 + $0xaf0] ss:$8 sps:$4 sm:$0xff]  }
 0x4b6   : > { %4063 = vmatprep.subr.bf16.mxu0 %v6287_v12  ;;  %v6323_v12 = vld [vmem:[#allocation2 + $0xc04] ss:$8 sps:$4 sm:$0xff]  }
 0x4bb   : > { %4019 = vmatpush1.bf16.xpose.msra.mxu1 %v6282_v54  ;;  %v6318_v54 = vld [vmem:[#allocation2 + $0x9e0] ss:$8 sps:$4 sm:$0xff]  }
 0x4bc   : > { %4020 = vmatprep.subr.bf16.mxu1 %v6290_v13  ;;  %v6326_v13 = vld [vmem:[#allocation2 + $0x9f4] ss:$8 sps:$4 sm:$0xff]  }
 0x4bd   : > { %4064 = vmatpush1.bf16.xpose.msra.mxu0 %v6285_v14  ;;  %v6321_v14 = vld [vmem:[#allocation2 + $0xc00] ss:$8 sps:$4 sm:$0xff]  }
 0x4be   : > { %4065 = vmatprep.subr.bf16.mxu0 %v6293_v16  ;;  %v6329_v16 = vld [vmem:[#allocation2 + $0xc14] ss:$8 sps:$4 sm:$0xff]  }
 0x4bf   : > { %v3913_v17 = vpop.f32.mrb[36].mxu0 }
 0x4c0   : > { %v5729_v20 = vcombine.low %v6893_v58, %v3913_v17  ;;  %v3915_v39 = vpop.f32.mrb[37].mxu0  ;;  %v6302_v58 = vld [vmem:[#allocation2 + $0x9b4] ss:$8 sps:$4 sm:$0xff]   ;;  %v6324_v17 = vld [vmem:[#allocation2 + $0x9f0] ss:$8 sps:$4 sm:$0xff]  }
 0x4c1   : > { %v5730_v41 = vcombine.low %v6895_v60, %v3915_v39  ;;  %v3917_v30 = vpop.f32.mrb[38].mxu0  ;;  %v6335_v39 = vld [vmem:[#allocation2 + $0xc24] ss:$8 sps:$4 sm:$0xff]  }
 0x4c2   : > { %v6927_v44 = vrot.slane %v5729_v20, %v6875_v57  ;;  %v3918_v45 = vpop.f32.mrb[39].mxu0  ;;  %v6327_v20 = vld [vmem:[#allocation2 + $0xc10] ss:$8 sps:$4 sm:$0xff]   ;;  %v6333_v30 = vld [vmem:[#allocation2 + $0xc20] ss:$8 sps:$4 sm:$0xff]  }
 0x4c3   : > { %v6930_v46 = vrot.slane %v5730_v41, %v6875_v57  ;;  %4021 = vmatpush1.bf16.xpose.msra.mxu1 %v6288_v18  ;;  %v6332_v18 = vld [vmem:[#allocation2 + $0xb04] ss:$8 sps:$4 sm:$0xff]   ;;  %v6338_v41 = vld [vmem:[#allocation2 + $0xb14] ss:$8 sps:$4 sm:$0xff]   ;;  %v6336_v45 = vld [vmem:[#allocation2 + $0xb10] ss:$8 sps:$4 sm:$0xff]  }
 0x4c4   : > { %4022 = vmatprep.subr.bf16.mxu1 %v6296_v40  ;;  %v6330_v40 = vld [vmem:[#allocation2 + $0xb00] ss:$8 sps:$4 sm:$0xff]  }
 0x4c5   : > { %4066 = vmatpush1.bf16.xpose.msra.mxu0 %v6291_v43  ;;  %v6341_v43 = vld [vmem:[#allocation2 + $0xc34] ss:$8 sps:$4 sm:$0xff]  }
 0x4c6   : > { %4067 = vmatprep.subr.bf16.mxu0 %v6299_v26  ;;  %v6344_v26 = vld [vmem:[#allocation2 + $0xb24] ss:$8 sps:$4 sm:$0xff]  }
 0x4cb   : > { %4023 = vmatpush1.bf16.xpose.msra.mxu1 %v6294_v56  ;;  %v6339_v56 = vld [vmem:[#allocation2 + $0xc30] ss:$8 sps:$4 sm:$0xff]  }
 0x4cc   : > { %4024 = vmatprep.subr.bf16.mxu1 %v6302_v58  ;;  %v6347_v58 = vld [vmem:[#allocation2 + $0xc44] ss:$8 sps:$4 sm:$0xff]  }
 0x4cd   : > { %4068 = vmatpush1.bf16.xpose.msra.mxu0 %v6297_v47  ;;  %v6932_v60 = vpop.f32.mrb[12].mxu1  ;;  %v6342_v47 = vld [vmem:[#allocation2 + $0xb20] ss:$8 sps:$4 sm:$0xff]  }
 0x4ce   : > { %v6934_v15 = vpop.f32.mrb[13].mxu1  ;;  %4069 = vmatprep.subr.bf16.mxu0 %v6305_v48  ;;  %v6350_v48 = vld [vmem:[#allocation2 + $0xb34] ss:$8 sps:$4 sm:$0xff]  }
 0x4cf   : > { %v3876_v6 = vpop.f32.mrb[14].mxu1 }
 0x4d0   : > { %v3877_v53 = vpop.f32.mrb[15].mxu1  ;;  %v6345_v6 = vld [vmem:[#allocation2 + $0xc40] ss:$8 sps:$4 sm:$0xff]  }
 0x4d1   : > { %v6348_v53 = vld [vmem:[#allocation2 + $0xb30] ss:$8 sps:$4 sm:$0xff]  }
 0x4d3   : > { %4025 = vmatpush1.bf16.xpose.msra.mxu1 %v6300_v52  ;;  %v6353_v52 = vld [vmem:[#allocation2 + $0xc54] ss:$8 sps:$4 sm:$0xff]  }
 0x4d4   : > { %4026 = vmatprep.subr.bf16.mxu1 %v6308_v11  ;;  %v6356_v11 = vld [vmem:[#allocation2 + $0xb44] ss:$8 sps:$4 sm:$0xff]  }
 0x4d5   : > { %4070 = vmatpush1.bf16.xpose.msra.mxu0 %v6303_v55  ;;  %v6351_v55 = vld [vmem:[#allocation2 + $0xc50] ss:$8 sps:$4 sm:$0xff]  }
 0x4d6   : > { %4071 = vmatprep.subr.bf16.mxu0 %v6311_v59  ;;  %v6359_v59 = vld [vmem:[#allocation2 + $0xc64] ss:$8 sps:$4 sm:$0xff]  }
 0x4db   : > { %4027 = vmatpush1.bf16.xpose.msra.mxu1 %v6306_v61  ;;  %v6354_v61 = vld [vmem:[#allocation2 + $0xb40] ss:$8 sps:$4 sm:$0xff]  }
 0x4dc   : > { %4028 = vmatprep.subr.bf16.mxu1 %v6314_v63  ;;  %v6362_v63 = vld [vmem:[#allocation2 + $0xb54] ss:$8 sps:$4 sm:$0xff]  }
 0x4dd   : > { %4072 = vmatpush1.bf16.xpose.msra.mxu0 %v6309_v0  ;;  %v6357_v0 = vld [vmem:[#allocation2 + $0xc60] ss:$8 sps:$4 sm:$0xff]  }
 0x4de   : > { %4073 = vmatprep.subr.bf16.mxu0 %v6317_v1  ;;  %v6365_v1 = vld [vmem:[#allocation2 + $0xc74] ss:$8 sps:$4 sm:$0xff]  }
 0x4e3   : > { %4029 = vmatpush1.bf16.xpose.msra.mxu1 %v6312_v4  ;;  %v6360_v4 = vld [vmem:[#allocation2 + $0xb50] ss:$8 sps:$4 sm:$0xff]  }
 0x4e4   : > { %4030 = vmatprep.subr.bf16.mxu1 %v6320_v7  ;;  %v6368_v7 = vld [vmem:[#allocation2 + $0xb64] ss:$8 sps:$4 sm:$0xff]  }
 0x4e5   : > { %4074 = vmatpush1.bf16.xpose.msra.mxu0 %v6315_v9  ;;  %v6363_v9 = vld [vmem:[#allocation2 + $0xc70] ss:$8 sps:$4 sm:$0xff]  }
 0x4e6   : > { %4125 = vmatprep.subr.bf16.mxu0 %v6323_v12  ;;  %v6371_v12 = vld [vmem:[#allocation2 + $0xc84] ss:$8 sps:$4 sm:$0xff]  }
 0x4eb   : > { %4031 = vmatpush1.bf16.xpose.msra.mxu1 %v6318_v54  ;;  %v6366_v54 = vld [vmem:[#allocation2 + $0xb60] ss:$8 sps:$4 sm:$0xff]  }
 0x4ec   : > { %4076 = vmatmul.mubr.bf16.vlgmr.msra.gmra.mrb[44].mxu0 %v6823_v2  ;;  %4032 = vmatprep.subr.bf16.mxu1 %v6326_v13  ;;  %v6374_v13 = vld [vmem:[#allocation2 + $0xb74] ss:$8 sps:$4 sm:$0xff]  }
 0x4ed   : > { %4126 = vmatpush1.bf16.xpose.msra.mxu0 %v6321_v14  ;;  %4157 = vmatprep.mubr.bf16.mxu0 %v6825_v3  ;;  %v6369_v14 = vld [vmem:[#allocation2 + $0xc80] ss:$8 sps:$4 sm:$0xff]  }
 0x4ee   : > { %4127 = vmatprep.subr.bf16.mxu0 %v6329_v16  ;;  %v6377_v16 = vld [vmem:[#allocation2 + $0xc94] ss:$8 sps:$4 sm:$0xff]  }
 0x4f3   : > { %4033 = vmatpush1.bf16.xpose.msra.mxu1 %v6324_v17  ;;  %v6372_v17 = vld [vmem:[#allocation2 + $0xb70] ss:$8 sps:$4 sm:$0xff]  }
 0x4f4   : > { %4084 = vmatprep.subr.bf16.mxu1 %v6332_v18  ;;  %v6380_v18 = vld [vmem:[#allocation2 + $0xb84] ss:$8 sps:$4 sm:$0xff]  }
 0x4f5   : > { %4128 = vmatpush1.bf16.xpose.msra.mxu0 %v6327_v20  ;;  %v6375_v20 = vld [vmem:[#allocation2 + $0xc90] ss:$8 sps:$4 sm:$0xff]  }
 0x4f6   : > { %4129 = vmatprep.subr.bf16.mxu0 %v6335_v39  ;;  %v6383_v39 = vld [vmem:[#allocation2 + $0xca4] ss:$8 sps:$4 sm:$0xff]  }
 0x4fa   : > { %4035 = vmatmul.mubr.bf16.vlgmr.msra.gmra.mrb[20].mxu1 %v6823_v2 }
 0x4fb   : > { %4085 = vmatpush1.bf16.xpose.msra.mxu1 %v6330_v40  ;;  %4116 = vmatprep.mubr.bf16.mxu1 %v6825_v3  ;;  %v6940_v40 = vpop.permute.xlu1 %256 }
 0x4fc   : > { %4086 = vmatprep.subr.bf16.mxu1 %v6338_v41  ;;  %v6378_v41 = vld [vmem:[#allocation2 + $0xb80] ss:$8 sps:$4 sm:$0xff]  }
 0x4fd   : > { %4130 = vmatpush1.bf16.xpose.msra.mxu0 %v6333_v30  ;;  %v6386_v30 = vld [vmem:[#allocation2 + $0xb94] ss:$8 sps:$4 sm:$0xff]  }
 0x4fe   : > { %4131 = vmatprep.subr.bf16.mxu0 %v6341_v43  ;;  %v6381_v43 = vld [vmem:[#allocation2 + $0xca0] ss:$8 sps:$4 sm:$0xff]  }
 0x503   : > { %4087 = vmatpush1.bf16.xpose.msra.mxu1 %v6336_v45  ;;  %v6389_v45 = vld [vmem:[#allocation2 + $0xcb4] ss:$8 sps:$4 sm:$0xff]  }
 0x504   : > { %4088 = vmatprep.subr.bf16.mxu1 %v6344_v26  ;;  %v272_v26 = vpop.permute.xlu1 %271 }
 0x505   : > { %4132 = vmatpush1.bf16.xpose.msra.mxu0 %v6339_v56 }
 0x506   : > { %4133 = vmatprep.subr.bf16.mxu0 %v6347_v58  ;;  %v6384_v58 = vld [vmem:[#allocation2 + $0xb90] ss:$8 sps:$4 sm:$0xff]  }
 0x50b   : > { %4089 = vmatpush1.bf16.xpose.msra.mxu1 %v6342_v47 }
 0x50c   : > { %4090 = vmatprep.subr.bf16.mxu1 %v6350_v48  ;;  %v6392_v48 = vld [vmem:[#allocation2 + $0xba4] ss:$8 sps:$4 sm:$0xff]  }
 0x50d   : > { %4134 = vmatpush1.bf16.xpose.msra.mxu0 %v6345_v6  ;;  %v6946_v6 = vpop.permute.xlu1 %276 }
 0x50e   : > { %4135 = vmatprep.subr.bf16.mxu0 %v6353_v52  ;;  %7329 = vst [vmem:[#allocation7_spill] sm:$0xff] %v6946_v6 }
 0x513   : > { %4091 = vmatpush1.bf16.xpose.msra.mxu1 %v6348_v53  ;;  %v6387_v53 = vld [vmem:[#allocation2 + $0xcb0] ss:$8 sps:$4 sm:$0xff]  }
 0x514   : > { %4092 = vmatprep.subr.bf16.mxu1 %v6356_v11 }
 0x515   : > { %4136 = vmatpush1.bf16.xpose.msra.mxu0 %v6351_v55  ;;  %v6395_v55 = vld [vmem:[#allocation2 + $0xcc4] ss:$8 sps:$4 sm:$0xff]  }
 0x516   : > { %4137 = vmatprep.subr.bf16.mxu0 %v6359_v59  ;;  %v4642_v59 = vpop.permute.xlu1 %4641 }
 0x51b   : > { %4093 = vmatpush1.bf16.xpose.msra.mxu1 %v6354_v61  ;;  %v6390_v61 = vld [vmem:[#allocation2 + $0xba0] ss:$8 sps:$4 sm:$0xff]  }
 0x51c   : > { %4094 = vmatprep.subr.bf16.mxu1 %v6362_v63  ;;  %v6398_v63 = vld [vmem:[#allocation2 + $0xbb4] ss:$8 sps:$4 sm:$0xff]  }
 0x51d   : > { %4138 = vmatpush1.bf16.xpose.msra.mxu0 %v6357_v0  ;;  %v6393_v0 = vld [vmem:[#allocation2 + $0xcc0] ss:$8 sps:$4 sm:$0xff]  }
 0x51e   : > { %4139 = vmatprep.subr.bf16.mxu0 %v6365_v1  ;;  %v6401_v1 = vld [vmem:[#allocation2 + $0xcd4] ss:$8 sps:$4 sm:$0xff]  }
 0x523   : > { %4095 = vmatpush1.bf16.xpose.msra.mxu1 %v6360_v4  ;;  %v4653_v4 = vpop.permute.xlu1 %4652 }
 0x524   : > { %4096 = vmatprep.subr.bf16.mxu1 %v6368_v7 }
 0x525   : > { %4140 = vmatpush1.bf16.xpose.msra.mxu0 %v6363_v9 }
 0x526   : > { %4141 = vmatprep.subr.bf16.mxu0 %v6371_v12 }
 0x52b   : > { %4097 = vmatpush1.bf16.xpose.msra.mxu1 %v6366_v54 }
 0x52c   : > { %4098 = vmatprep.subr.bf16.mxu1 %v6374_v13 }
 0x52d   : > { %4142 = vmatpush1.bf16.xpose.msra.mxu0 %v6369_v14  ;;  %v6396_v14 = vld [vmem:[#allocation2 + $0xbb0] ss:$8 sps:$4 sm:$0xff]  }
 0x52e   : > { %4143 = vmatprep.subr.bf16.mxu0 %v6377_v16 }
 0x533   : > { %4099 = vmatpush1.bf16.xpose.msra.mxu1 %v6372_v17 }
 0x534   : > { %4100 = vmatprep.subr.bf16.mxu1 %v6380_v18  ;;  %v6404_v18 = vld [vmem:[#allocation2 + $0xbc4] ss:$8 sps:$4 sm:$0xff]  }
 0x535   : > { %4144 = vmatpush1.bf16.xpose.msra.mxu0 %v6375_v20  ;;  %v4631_v20 = vpop.permute.xlu1 %4630 }
 0x536   : > { %4145 = vmatprep.subr.bf16.mxu0 %v6383_v39 }
 0x53b   : > { %4101 = vmatpush1.bf16.xpose.msra.mxu1 %v6378_v41  ;;  %v6399_v41 = vld [vmem:[#allocation2 + $0xcd0] ss:$8 sps:$4 sm:$0xff]  }
 0x53c   : > { %4102 = vmatprep.subr.bf16.mxu1 %v6386_v30 }
 0x53d   : > { %4146 = vmatpush1.bf16.xpose.msra.mxu0 %v6381_v43 }
 0x53e   : > { %4147 = vmatprep.subr.bf16.mxu0 %v6389_v45  ;;  %v6407_v45 = vld [vmem:[#allocation2 + $0xce4] ss:$8 sps:$4 sm:$0xff]  }
 0x53f   : > { %v6942_v56 = vpop.f32.mrb[40].mxu0 }
 0x540   : > { %v6944_v47 = vpop.f32.mrb[41].mxu0 }
 0x541   : > { %v3999_v52 = vpop.f32.mrb[42].mxu0 }
 0x542   : > { %v4000_v11 = vpop.f32.mrb[43].mxu0  ;;  %v407_v52 = vadd.f32 %v6761_v25, %v6849_v38 }
 0x543   : > { %4103 = vmatpush1.bf16.xpose.msra.mxu1 %v6384_v58 }
 0x544   : > { %4104 = vmatprep.subr.bf16.mxu1 %v6392_v48  ;;  %v419_v48 = vadd.f32 %v6769_v29, %v6843_v19 }
 0x545   : > { %4148 = vmatpush1.bf16.xpose.msra.mxu0 %v6387_v53 }
 0x546   : > { %4149 = vmatprep.subr.bf16.mxu0 %v6395_v55  ;;  %v4664_v55 = vpop.permute.xlu1 %4663 }
 0x54b   : > { %4105 = vmatpush1.bf16.xpose.msra.mxu1 %v6390_v61 }
 0x54c   : > { %4106 = vmatprep.subr.bf16.mxu1 %v6398_v63  ;;  %v6402_v63 = vld [vmem:[#allocation2 + $0xbc0] ss:$8 sps:$4 sm:$0xff]  }
 0x54d   : > { %4150 = vmatpush1.bf16.xpose.msra.mxu0 %v6393_v0  ;;  %v3954_v7 = vpop.f32.mrb[16].mxu1 }
 0x54e   : > { %v5731_v9 = vcombine.low %v6932_v60, %v3954_v7  ;;  %v3956_v12 = vpop.f32.mrb[17].mxu1  ;;  %4151 = vmatprep.subr.bf16.mxu0 %v6401_v1  ;;  %v395_v60 = vadd.f32 %v6753_v21, %v6827_v5  ;;  %v6966_v21 = vadd.f32 %v6779_v34, %v272_v26 }
 0x54f   : > { %v5732_v54 = vcombine.low %v6934_v15, %v3956_v12  ;;  %v3958_v13 = vpop.f32.mrb[18].mxu1 }
 0x550   : > { %v4445_v16 = vrot.slane %v5731_v9, %v6875_v57  ;;  %v3959_v17 = vpop.f32.mrb[19].mxu1 }
 0x551   : > { %v4452_v39 = vrot.slane %v5732_v54, %v6875_v57 }
 0x552   : > { %v4453_v30 = vcombine.low %v6927_v44, %v4445_v16  ;;  %v4454_v43 = vcombine.high %v6927_v44, %v4445_v16  ;;  %v431_v44 = vadd.f32 %v6777_v33, %v272_v26 }
 0x553   : > { %v4469_v15 = vcombine.low %v6930_v46, %v4452_v39  ;;  %v4470_v58 = vcombine.high %v6930_v46, %v4452_v39  ;;  %4107 = vmatpush1.bf16.xpose.msra.mxu1 %v6396_v14  ;;  %v6405_v14 = vld [vmem:[#allocation2 + $0xce0] ss:$8 sps:$4 sm:$0xff]  }
 0x554   : > { %v4461_v53 = vrot.slane %v4453_v30, %v6900_v42  ;;  %v4468_v11 = vrot.slane %v4454_v43, %v6900_v42  ;;  %4108 = vmatprep.subr.bf16.mxu1 %v6404_v18 }
 0x555   : > { %v4477_v5 = vrot.slane %v4469_v15, %v6900_v42  ;;  %v4484_v46 = vrot.slane %v4470_v58, %v6900_v42  ;;  %4152 = vmatpush1.bf16.xpose.msra.mxu0 %v6399_v41 }
 0x556   : > { %v5741_v29 = vcombine.low %v6909_v62, %v4461_v53  ;;  %v5745_v19 = vcombine.high %v6909_v62, %v4461_v53  ;;  %v5749_v25 = vcombine.low %v6912_v49, %v4468_v11  ;;  %v5753_v38 = vcombine.high %v6912_v49, %v4468_v11  ;;  %4153 = vmatprep.subr.bf16.mxu0 %v6407_v45  ;;  %v6410_v62 = vld [vmem:[#allocation2 + $0xbd4] ss:$8 sps:$4 sm:$0xff]  }
 0x557   : > { %v5742_v33 = vcombine.low %v6915_v50, %v4477_v5  ;;  %v5746_v34 = vcombine.high %v6915_v50, %v4477_v5  ;;  %v5750_v26 = vcombine.low %v6918_v51, %v4484_v46  ;;  %v5754_v61 = vcombine.high %v6918_v51, %v4484_v46  ;;  %v6413_v51 = vld [vmem:[#allocation2 + $0xcf4] ss:$8 sps:$4 sm:$0xff]  }
 0x558   : > { %v4717_v0 = vadd.f32 %v5741_v29, %v4631_v20  ;;  %v4721_v1 = vadd.f32 %v5745_v19, %v4642_v59  ;;  %v4725_v7 = vadd.f32 %v5749_v25, %v4653_v4  ;;  %v4729_v9 = vadd.f32 %v5753_v38, %v4664_v55  ;;  %v6408_v25 = vld [vmem:[#allocation2 + $0xbd0] ss:$8 sps:$4 sm:$0xff]  }
 0x559   : > { %v4718_v12 = vadd.f32 %v5742_v33, %v4631_v20  ;;  %v4722_v54 = vadd.f32 %v5746_v34, %v4642_v59  ;;  %v4726_v13 = vadd.f32 %v5750_v26, %v4653_v4  ;;  %v4730_v49 = vadd.f32 %v5754_v61, %v4664_v55  ;;  %v6416_v34 = vld [vmem:[#allocation2 + $0xbe4] ss:$8 sps:$4 sm:$0xff]  }
 0x55a   : > { %v6978_v16 = vmul.f32 %v4717_v0, %v395_v60  ;;  %v6980_v17 = vmul.f32 %v4721_v1, %v395_v60  ;;  %v6982_v50 = vmul.f32 %v4725_v7, %v395_v60  ;;  %v6984_v18 = vmul.f32 %v4729_v9, %v395_v60 }
 0x55b   : > { %v6986_v39 = vmul.f32 %v4717_v0, %v407_v52  ;;  %v6988_v41 = vmul.f32 %v4721_v1, %v407_v52  ;;  %v6990_v30 = vmul.f32 %v4725_v7, %v407_v52  ;;  %v6992_v20 = vmul.f32 %v4729_v9, %v407_v52  ;;  %4109 = vmatpush1.bf16.xpose.msra.mxu1 %v6402_v63 }
 0x55c   : > { %v6994_v59 = vmul.f32 %v4717_v0, %v419_v48  ;;  %v6996_v4 = vmul.f32 %v4721_v1, %v419_v48  ;;  %v6998_v43 = vmul.f32 %v4725_v7, %v419_v48  ;;  %v7000_v45 = vmul.f32 %v4729_v9, %v419_v48  ;;  %4110 = vmatprep.subr.bf16.mxu1 %v6410_v62  ;;  %v6425_v62 = vld [vmem:[#allocation2 + $0xe14] ss:$8 sps:$4 sm:$0xff]  }
 0x55d   : > { %v7002_v60 = vmul.f32 %v4717_v0, %v431_v44  ;;  %v7004_v15 = vmul.f32 %v4721_v1, %v431_v44  ;;  %v7006_v58 = vmul.f32 %v4725_v7, %v431_v44  ;;  %v7008_v53 = vmul.f32 %v4729_v9, %v431_v44  ;;  %4154 = vmatpush1.bf16.xpose.msra.mxu0 %v6405_v14  ;;  %v6411_v0 = vld [vmem:[#allocation2 + $0xcf0] ss:$8 sps:$4 sm:$0xff]   ;;  %v6419_v1 = vld [vmem:[#allocation2 + $0xe04] ss:$8 sps:$4 sm:$0xff]   ;;  %v6422_v7 = vld [vmem:[#allocation2 + $0xbf4] ss:$8 sps:$4 sm:$0xff]  }
 0x55e   : > { %v7011_v52 = vmul.f32 %v4718_v12, %v6831_v8  ;;  %v7014_v11 = vmul.f32 %v4722_v54, %v6831_v8  ;;  %v7017_v5 = vmul.f32 %v4726_v13, %v6831_v8  ;;  %v7020_v48 = vmul.f32 %v4730_v49, %v6831_v8  ;;  %4155 = vmatprep.subr.bf16.mxu0 %v6413_v51  ;;  %v6417_v9 = vld [vmem:[#allocation2 + $0xe00] ss:$8 sps:$4 sm:$0xff]   ;;  %v6434_v14 = vld [vmem:[#allocation2 + $0xd14] ss:$8 sps:$4 sm:$0xff]  }
 0x55f   : > { %v7023_v46 = vmul.f32 %v4718_v12, %v6853_v24  ;;  %v7026_v44 = vmul.f32 %v4722_v54, %v6853_v24  ;;  %v7029_v29 = vmul.f32 %v4726_v13, %v6853_v24  ;;  %v7032_v19 = vmul.f32 %v4730_v49, %v6853_v24  ;;  %v6429_v51 = vld [vmem:[#allocation2 + $0xe20] ss:$8 sps:$4 sm:$0xff]  }
 0x560   : > { %v7035_v38 = vmul.f32 %v4718_v12, %v6847_v37  ;;  %v7038_v8 = vmul.f32 %v4722_v54, %v6847_v37  ;;  %v7041_v55 = vmul.f32 %v4726_v13, %v6847_v37  ;;  %v7044_v33 = vmul.f32 %v4730_v49, %v6847_v37  ;;  %v6414_v37 = vld [vmem:[#allocation2 + $0xbe0] ss:$8 sps:$4 sm:$0xff]  }
 0x561   : > { %v7047_v26 = vmul.f32 %v4718_v12, %v6966_v21  ;;  %v7050_v24 = vmul.f32 %v4722_v54, %v6966_v21  ;;  %v7053_v61 = vmul.f32 %v4726_v13, %v6966_v21  ;;  %v7056_v63 = vmul.f32 %v4730_v49, %v6966_v21  ;;  %v6420_v21 = vld [vmem:[#allocation2 + $0xbf0] ss:$8 sps:$4 sm:$0xff]   ;;  %v6428_v12 = vld [vmem:[#allocation2 + $0xd04] ss:$8 sps:$4 sm:$0xff]   ;;  %v6426_v49 = vld [vmem:[#allocation2 + $0xd00] ss:$8 sps:$4 sm:$0xff]  }
 0x562   : > { %7330 = vst [vmem:[#allocation8_spill] sm:$0xff] %v7035_v38  ;;  %7331 = vst [vmem:[#allocation9_spill] sm:$0xff] %v7038_v8  ;;  %v6423_v54 = vld [vmem:[#allocation2 + $0xe10] ss:$8 sps:$4 sm:$0xff]   ;;  %v6431_v13 = vld [vmem:[#allocation2 + $0xe24] ss:$8 sps:$4 sm:$0xff]  }
 0x563   : > { %7332 = vst [vmem:[#allocation10_spill] sm:$0xff] %v7041_v55  ;;  %7333 = vst [vmem:[#allocation11_spill] sm:$0xff] %v7044_v33  ;;  %4111 = vmatpush1.bf16.xpose.msra.mxu1 %v6408_v25  ;;  %v6437_v25 = vld [vmem:[#allocation2 + $0xe34] ss:$8 sps:$4 sm:$0xff]  }
 0x564   : > { %7334 = vst [vmem:[#allocation12_spill] sm:$0xff] %v7047_v26  ;;  %7335 = vst [vmem:[#allocation13_spill] sm:$0xff] %v7050_v24  ;;  %4112 = vmatprep.subr.bf16.mxu1 %v6416_v34  ;;  %v6432_v34 = vld [vmem:[#allocation2 + $0xd10] ss:$8 sps:$4 sm:$0xff]   ;;  %v6554_v24 = vld [vmem:[#allocation2 + $0xfc4] ss:$8 sps:$4 sm:$0xff]  }
 0x565   : > { %7336 = vst [vmem:[#allocation14_spill] sm:$0xff] %v7053_v61  ;;  %7337 = vst [vmem:[#allocation15_spill] sm:$0xff] %v7056_v63  ;;  %4156 = vmatpush1.bf16.xpose.msra.mxu0 %v6411_v0  ;;  %v6440_v0 = vld [vmem:[#allocation2 + $0xd24] ss:$8 sps:$4 sm:$0xff]  }
 0x566   : > { %4207 = vmatprep.subr.bf16.mxu0 %v6419_v1  ;;  %v6435_v1 = vld [vmem:[#allocation2 + $0xe30] ss:$8 sps:$4 sm:$0xff]  }
 0x56b   : > { %4113 = vmatpush1.bf16.xpose.msra.mxu1 %v6414_v37  ;;  %v6443_v37 = vld [vmem:[#allocation2 + $0xe44] ss:$8 sps:$4 sm:$0xff]  }
 0x56c   : > { %4158 = vmatmul.mubr.bf16.vlgmr.msra.gmra.mrb[48].mxu0 %v6823_v2  ;;  %4114 = vmatprep.subr.bf16.mxu1 %v6422_v7  ;;  %v6438_v7 = vld [vmem:[#allocation2 + $0xd20] ss:$8 sps:$4 sm:$0xff]  }
 0x56d   : > { %4208 = vmatpush1.bf16.xpose.msra.mxu0 %v6417_v9  ;;  %4239 = vmatprep.mubr.bf16.mxu0 %v6825_v3  ;;  %v6446_v9 = vld [vmem:[#allocation2 + $0xd34] ss:$8 sps:$4 sm:$0xff]  }
 0x56e   : > { %4209 = vmatprep.subr.bf16.mxu0 %v6425_v62  ;;  %v6441_v62 = vld [vmem:[#allocation2 + $0xe40] ss:$8 sps:$4 sm:$0xff]  }
 0x573   : > { %4115 = vmatpush1.bf16.xpose.msra.mxu1 %v6420_v21  ;;  %v6449_v21 = vld [vmem:[#allocation2 + $0xe54] ss:$8 sps:$4 sm:$0xff]  }
 0x574   : > { %4166 = vmatprep.subr.bf16.mxu1 %v6428_v12  ;;  %v6444_v12 = vld [vmem:[#allocation2 + $0xd30] ss:$8 sps:$4 sm:$0xff]  }
 0x575   : > { %4210 = vmatpush1.bf16.xpose.msra.mxu0 %v6423_v54  ;;  %v6452_v54 = vld [vmem:[#allocation2 + $0xd44] ss:$8 sps:$4 sm:$0xff]  }
 0x576   : > { %4211 = vmatprep.subr.bf16.mxu0 %v6431_v13  ;;  %v6447_v13 = vld [vmem:[#allocation2 + $0xe50] ss:$8 sps:$4 sm:$0xff]  }
 0x57a   : > { %4117 = vmatmul.mubr.bf16.vlgmr.msra.gmra.mrb[24].mxu1 %v6823_v2 }
 0x57b   : > { %4167 = vmatpush1.bf16.xpose.msra.mxu1 %v6426_v49  ;;  %4198 = vmatprep.mubr.bf16.mxu1 %v6825_v3  ;;  %v6455_v49 = vld [vmem:[#allocation2 + $0xe64] ss:$8 sps:$4 sm:$0xff]  }
 0x57c   : > { %4168 = vmatprep.subr.bf16.mxu1 %v6434_v14  ;;  %v6450_v14 = vld [vmem:[#allocation2 + $0xd40] ss:$8 sps:$4 sm:$0xff]  }
 0x57d   : > { %4212 = vmatpush1.bf16.xpose.msra.mxu0 %v6429_v51  ;;  %v6458_v51 = vld [vmem:[#allocation2 + $0xd54] ss:$8 sps:$4 sm:$0xff]  }
 0x57e   : > { %4213 = vmatprep.subr.bf16.mxu0 %v6437_v25  ;;  %v6453_v25 = vld [vmem:[#allocation2 + $0xe60] ss:$8 sps:$4 sm:$0xff]  }
 0x583   : > { %4169 = vmatpush1.bf16.xpose.msra.mxu1 %v6432_v34  ;;  %v6461_v34 = vld [vmem:[#allocation2 + $0xe74] ss:$8 sps:$4 sm:$0xff]  }
 0x584   : > { %4170 = vmatprep.subr.bf16.mxu1 %v6440_v0  ;;  %v6456_v0 = vld [vmem:[#allocation2 + $0xd50] ss:$8 sps:$4 sm:$0xff]  }
 0x585   : > { %4214 = vmatpush1.bf16.xpose.msra.mxu0 %v6435_v1  ;;  %v6464_v1 = vld [vmem:[#allocation2 + $0xd64] ss:$8 sps:$4 sm:$0xff]  }
 0x586   : > { %4215 = vmatprep.subr.bf16.mxu0 %v6443_v37  ;;  %v6459_v37 = vld [vmem:[#allocation2 + $0xe70] ss:$8 sps:$4 sm:$0xff]  }
 0x58b   : > { %4171 = vmatpush1.bf16.xpose.msra.mxu1 %v6438_v7  ;;  %v6467_v7 = vld [vmem:[#allocation2 + $0xe84] ss:$8 sps:$4 sm:$0xff]  }
 0x58c   : > { %4172 = vmatprep.subr.bf16.mxu1 %v6446_v9  ;;  %v6462_v9 = vld [vmem:[#allocation2 + $0xd60] ss:$8 sps:$4 sm:$0xff]  }
 0x58d   : > { %4216 = vmatpush1.bf16.xpose.msra.mxu0 %v6441_v62  ;;  %v6470_v62 = vld [vmem:[#allocation2 + $0xd74] ss:$8 sps:$4 sm:$0xff]  }
 0x58e   : > { %4217 = vmatprep.subr.bf16.mxu0 %v6449_v21  ;;  %v6465_v21 = vld [vmem:[#allocation2 + $0xe80] ss:$8 sps:$4 sm:$0xff]  }
 0x593   : > { %4173 = vmatpush1.bf16.xpose.msra.mxu1 %v6444_v12  ;;  %v6473_v12 = vld [vmem:[#allocation2 + $0xe94] ss:$8 sps:$4 sm:$0xff]  }
 0x594   : > { %4174 = vmatprep.subr.bf16.mxu1 %v6452_v54  ;;  %v6468_v54 = vld [vmem:[#allocation2 + $0xd70] ss:$8 sps:$4 sm:$0xff]  }
 0x595   : > { %4218 = vmatpush1.bf16.xpose.msra.mxu0 %v6447_v13  ;;  %v6476_v13 = vld [vmem:[#allocation2 + $0xd84] ss:$8 sps:$4 sm:$0xff]  }
 0x596   : > { %4219 = vmatprep.subr.bf16.mxu0 %v6455_v49  ;;  %v6471_v49 = vld [vmem:[#allocation2 + $0xe90] ss:$8 sps:$4 sm:$0xff]  }
 0x59b   : > { %4175 = vmatpush1.bf16.xpose.msra.mxu1 %v6450_v14  ;;  %v6479_v14 = vld [vmem:[#allocation2 + $0xea4] ss:$8 sps:$4 sm:$0xff]  }
 0x59c   : > { %4176 = vmatprep.subr.bf16.mxu1 %v6458_v51  ;;  %v6474_v51 = vld [vmem:[#allocation2 + $0xd80] ss:$8 sps:$4 sm:$0xff]  }
 0x59d   : > { %4220 = vmatpush1.bf16.xpose.msra.mxu0 %v6453_v25  ;;  %v6482_v25 = vld [vmem:[#allocation2 + $0xd94] ss:$8 sps:$4 sm:$0xff]  }
 0x59e   : > { %4221 = vmatprep.subr.bf16.mxu0 %v6461_v34  ;;  %v6477_v34 = vld [vmem:[#allocation2 + $0xea0] ss:$8 sps:$4 sm:$0xff]  }
 0x5a3   : > { %4177 = vmatpush1.bf16.xpose.msra.mxu1 %v6456_v0  ;;  %v6485_v0 = vld [vmem:[#allocation2 + $0xeb4] ss:$8 sps:$4 sm:$0xff]  }
 0x5a4   : > { %4178 = vmatprep.subr.bf16.mxu1 %v6464_v1 }
 0x5a5   : > { %4222 = vmatpush1.bf16.xpose.msra.mxu0 %v6459_v37  ;;  %v6480_v37 = vld [vmem:[#allocation2 + $0xd90] ss:$8 sps:$4 sm:$0xff]  }
 0x5a6   : > { %4223 = vmatprep.subr.bf16.mxu0 %v6467_v7 }
 0x5ab   : > { %4179 = vmatpush1.bf16.xpose.msra.mxu1 %v6462_v9 }
 0x5ac   : > { %4180 = vmatprep.subr.bf16.mxu1 %v6470_v62  ;;  %v6488_v62 = vld [vmem:[#allocation2 + $0xda4] ss:$8 sps:$4 sm:$0xff]  }
 0x5ad   : > { %4224 = vmatpush1.bf16.xpose.msra.mxu0 %v6465_v21 }
 0x5ae   : > { %4225 = vmatprep.subr.bf16.mxu0 %v6473_v12 }
 0x5b3   : > { %4181 = vmatpush1.bf16.xpose.msra.mxu1 %v6468_v54  ;;  %v6483_v54 = vld [vmem:[#allocation2 + $0xeb0] ss:$8 sps:$4 sm:$0xff]  }
 0x5b4   : > { %4182 = vmatprep.subr.bf16.mxu1 %v6476_v13 }
 0x5b5   : > { %4226 = vmatpush1.bf16.xpose.msra.mxu0 %v6471_v49 }
 0x5b6   : > { %4227 = vmatprep.subr.bf16.mxu0 %v6479_v14  ;;  %v6491_v14 = vld [vmem:[#allocation2 + $0xec4] ss:$8 sps:$4 sm:$0xff]  }
 0x5bb   : > { %4183 = vmatpush1.bf16.xpose.msra.mxu1 %v6474_v51 }
 0x5bc   : > { %4184 = vmatprep.subr.bf16.mxu1 %v6482_v25  ;;  %v6486_v25 = vld [vmem:[#allocation2 + $0xda0] ss:$8 sps:$4 sm:$0xff]  }
 0x5bd   : > { %4228 = vmatpush1.bf16.xpose.msra.mxu0 %v6477_v34  ;;  %v6489_v34 = vld [vmem:[#allocation2 + $0xec0] ss:$8 sps:$4 sm:$0xff]  }
 0x5be   : > { %4229 = vmatprep.subr.bf16.mxu0 %v6485_v0  ;;  %v6497_v0 = vld [vmem:[#allocation2 + $0xed4] ss:$8 sps:$4 sm:$0xff]  }
 0x5bf   : > { %v4077_v1 = vpop.f32.mrb[44].mxu0 }
 0x5c0   : > { %v5733_v7 = vcombine.low %v6942_v56, %v4077_v1  ;;  %v4079_v9 = vpop.f32.mrb[45].mxu0  ;;  %v6494_v56 = vld [vmem:[#allocation2 + $0xdb4] ss:$8 sps:$4 sm:$0xff]  }
 0x5c1   : > { %v5734_v21 = vcombine.low %v6944_v47, %v4079_v9  ;;  %v4081_v12 = vpop.f32.mrb[46].mxu0  ;;  %v6492_v9 = vld [vmem:[#allocation2 + $0xdb0] ss:$8 sps:$4 sm:$0xff]  }
 0x5c2   : > { %v7065_v13 = vrot.slane %v5733_v7, %v6875_v57  ;;  %v4082_v49 = vpop.f32.mrb[47].mxu0  ;;  %v6500_v12 = vld [vmem:[#allocation2 + $0xdc4] ss:$8 sps:$4 sm:$0xff]  }
 0x5c3   : > { %v7068_v51 = vrot.slane %v5734_v21, %v6875_v57  ;;  %4185 = vmatpush1.bf16.xpose.msra.mxu1 %v6480_v37  ;;  %v6495_v37 = vld [vmem:[#allocation2 + $0xed0] ss:$8 sps:$4 sm:$0xff]   ;;  %v6506_v49 = vld [vmem:[#allocation2 + $0xdd4] ss:$8 sps:$4 sm:$0xff]  }
 0x5c4   : > { %4186 = vmatprep.subr.bf16.mxu1 %v6488_v62  ;;  %v6503_v62 = vld [vmem:[#allocation2 + $0xee4] ss:$8 sps:$4 sm:$0xff]  }
 0x5c5   : > { %4230 = vmatpush1.bf16.xpose.msra.mxu0 %v6483_v54  ;;  %v6498_v54 = vld [vmem:[#allocation2 + $0xdc0] ss:$8 sps:$4 sm:$0xff]  }
 0x5c6   : > { %4231 = vmatprep.subr.bf16.mxu0 %v6491_v14  ;;  %v6501_v14 = vld [vmem:[#allocation2 + $0xee0] ss:$8 sps:$4 sm:$0xff]  }
 0x5cb   : > { %4187 = vmatpush1.bf16.xpose.msra.mxu1 %v6486_v25  ;;  %v6509_v25 = vld [vmem:[#allocation2 + $0xef4] ss:$8 sps:$4 sm:$0xff]  }
 0x5cc   : > { %4188 = vmatprep.subr.bf16.mxu1 %v6494_v56  ;;  %v6504_v56 = vld [vmem:[#allocation2 + $0xdd0] ss:$8 sps:$4 sm:$0xff]  }
 0x5cd   : > { %4232 = vmatpush1.bf16.xpose.msra.mxu0 %v6489_v34  ;;  %v7070_v47 = vpop.f32.mrb[20].mxu1  ;;  %v6512_v34 = vld [vmem:[#allocation2 + $0xde4] ss:$8 sps:$4 sm:$0xff]  }
 0x5ce   : > { %v7072_v1 = vpop.f32.mrb[21].mxu1  ;;  %4233 = vmatprep.subr.bf16.mxu0 %v6497_v0  ;;  %v6507_v0 = vld [vmem:[#allocation2 + $0xef0] ss:$8 sps:$4 sm:$0xff]  }
 0x5cf   : > { %v4040_v7 = vpop.f32.mrb[22].mxu1 }
 0x5d0   : > { %v4041_v21 = vpop.f32.mrb[23].mxu1  ;;  %v6510_v7 = vld [vmem:[#allocation2 + $0xde0] ss:$8 sps:$4 sm:$0xff]  }
 0x5d1   : > { %v6515_v21 = vld [vmem:[#allocation2 + $0xdf4] ss:$8 sps:$4 sm:$0xff]  }
 0x5d3   : > { %4189 = vmatpush1.bf16.xpose.msra.mxu1 %v6492_v9  ;;  %v6513_v9 = vld [vmem:[#allocation2 + $0xdf0] ss:$8 sps:$4 sm:$0xff]  }
 0x5d4   : > { %4190 = vmatprep.subr.bf16.mxu1 %v6500_v12  ;;  %v6518_v12 = vld [vmem:[#allocation2 + $0xf04] ss:$8 sps:$4 sm:$0xff]  }
 0x5d5   : > { %4234 = vmatpush1.bf16.xpose.msra.mxu0 %v6495_v37  ;;  %v6516_v37 = vld [vmem:[#allocation2 + $0xf00] ss:$8 sps:$4 sm:$0xff]  }
 0x5d6   : > { %4235 = vmatprep.subr.bf16.mxu0 %v6503_v62  ;;  %v6521_v62 = vld [vmem:[#allocation2 + $0xf14] ss:$8 sps:$4 sm:$0xff]  }
 0x5db   : > { %4191 = vmatpush1.bf16.xpose.msra.mxu1 %v6498_v54  ;;  %v6519_v54 = vld [vmem:[#allocation2 + $0xf10] ss:$8 sps:$4 sm:$0xff]  }
 0x5dc   : > { %4192 = vmatprep.subr.bf16.mxu1 %v6506_v49  ;;  %v6524_v49 = vld [vmem:[#allocation2 + $0xf24] ss:$8 sps:$4 sm:$0xff]  }
 0x5dd   : > { %4236 = vmatpush1.bf16.xpose.msra.mxu0 %v6501_v14  ;;  %v6522_v14 = vld [vmem:[#allocation2 + $0xf20] ss:$8 sps:$4 sm:$0xff]  }
 0x5de   : > { %4237 = vmatprep.subr.bf16.mxu0 %v6509_v25  ;;  %v6527_v25 = vld [vmem:[#allocation2 + $0xf34] ss:$8 sps:$4 sm:$0xff]  }
 0x5e3   : > { %4193 = vmatpush1.bf16.xpose.msra.mxu1 %v6504_v56  ;;  %v6525_v56 = vld [vmem:[#allocation2 + $0xf30] ss:$8 sps:$4 sm:$0xff]  }
 0x5e4   : > { %4194 = vmatprep.subr.bf16.mxu1 %v6512_v34  ;;  %v6530_v34 = vld [vmem:[#allocation2 + $0xf44] ss:$8 sps:$4 sm:$0xff]  }
 0x5e5   : > { %4238 = vmatpush1.bf16.xpose.msra.mxu0 %v6507_v0  ;;  %v6528_v0 = vld [vmem:[#allocation2 + $0xf40] ss:$8 sps:$4 sm:$0xff]  }
 0x5eb   : > { %4195 = vmatpush1.bf16.xpose.msra.mxu1 %v6510_v7  ;;  %v6533_v7 = vld [vmem:[#allocation2 + $0xf54] ss:$8 sps:$4 sm:$0xff]  }
 0x5ec   : > { %4240 = vmatmul.mubr.bf16.vlgmr.msra.gmra.mrb[52].mxu0 %v6823_v2  ;;  %4196 = vmatprep.subr.bf16.mxu1 %v6515_v21  ;;  %v6531_v21 = vld [vmem:[#allocation2 + $0xf50] ss:$8 sps:$4 sm:$0xff]  }
 0x5f3   : > { %4197 = vmatpush1.bf16.xpose.msra.mxu1 %v6513_v9  ;;  %v6536_v9 = vld [vmem:[#allocation2 + $0xf64] ss:$8 sps:$4 sm:$0xff]  }
 0x5f4   : > { %4248 = vmatprep.subr.bf16.mxu1 %v6518_v12  ;;  %v6539_v12 = vld [vmem:[#allocation2 + $0xf74] ss:$8 sps:$4 sm:$0xff]  }
 0x5fa   : > { %4199 = vmatmul.mubr.bf16.vlgmr.msra.gmra.mrb[28].mxu1 %v6823_v2 }
 0x5fb   : > { %4249 = vmatpush1.bf16.xpose.msra.mxu1 %v6516_v37  ;;  %4280 = vmatprep.mubr.bf16.mxu1 %v6825_v3  ;;  %v6534_v3 = vld [vmem:[#allocation2 + $0xf60] ss:$8 sps:$4 sm:$0xff]   ;;  %v6537_v37 = vld [vmem:[#allocation2 + $0xf70] ss:$8 sps:$4 sm:$0xff]  }
 0x5fc   : > { %4250 = vmatprep.subr.bf16.mxu1 %v6521_v62  ;;  %v6542_v62 = vld [vmem:[#allocation2 + $0xf84] ss:$8 sps:$4 sm:$0xff]  }
 0x603   : > { %4251 = vmatpush1.bf16.xpose.msra.mxu1 %v6519_v54  ;;  %v6540_v54 = vld [vmem:[#allocation2 + $0xf80] ss:$8 sps:$4 sm:$0xff]  }
 0x604   : > { %4252 = vmatprep.subr.bf16.mxu1 %v6524_v49  ;;  %v6545_v49 = vld [vmem:[#allocation2 + $0xf94] ss:$8 sps:$4 sm:$0xff]  }
 0x60b   : > { %4253 = vmatpush1.bf16.xpose.msra.mxu1 %v6522_v14 }
 0x60c   : > { %4254 = vmatprep.subr.bf16.mxu1 %v6527_v25  ;;  %v6543_v25 = vld [vmem:[#allocation2 + $0xf90] ss:$8 sps:$4 sm:$0xff]  }
 0x613   : > { %4255 = vmatpush1.bf16.xpose.msra.mxu1 %v6525_v56 }
 0x614   : > { %4256 = vmatprep.subr.bf16.mxu1 %v6530_v34  ;;  %v6548_v34 = vld [vmem:[#allocation2 + $0xfa4] ss:$8 sps:$4 sm:$0xff]  }
 0x61b   : > { %4257 = vmatpush1.bf16.xpose.msra.mxu1 %v6528_v0 }
 0x61c   : > { %4258 = vmatprep.subr.bf16.mxu1 %v6533_v7 }
 0x623   : > { %4259 = vmatpush1.bf16.xpose.msra.mxu1 %v6531_v21  ;;  %v6546_v21 = vld [vmem:[#allocation2 + $0xfa0] ss:$8 sps:$4 sm:$0xff]  }
 0x624   : > { %4260 = vmatprep.subr.bf16.mxu1 %v6536_v9  ;;  %v6551_v9 = vld [vmem:[#allocation2 + $0xfb4] ss:$8 sps:$4 sm:$0xff]  }
 0x62b   : > { %4261 = vmatpush1.bf16.xpose.msra.mxu1 %v6534_v3 }
 0x62c   : > { %4262 = vmatprep.subr.bf16.mxu1 %v6539_v12 }
 0x633   : > { %4263 = vmatpush1.bf16.xpose.msra.mxu1 %v6537_v37 }
 0x634   : > { %4264 = vmatprep.subr.bf16.mxu1 %v6542_v62 }
 0x63b   : > { %4265 = vmatpush1.bf16.xpose.msra.mxu1 %v6540_v54 }
 0x63c   : > { %4266 = vmatprep.subr.bf16.mxu1 %v6545_v49  ;;  %v6549_v49 = vld [vmem:[#allocation2 + $0xfb0] ss:$8 sps:$4 sm:$0xff]  }
 0x63f   : > { %v4159_v14 = vpop.f32.mrb[48].mxu0 }
 0x640   : > { %v4161_v56 = vpop.f32.mrb[49].mxu0 }
 0x641   : > { %v4163_v0 = vpop.f32.mrb[50].mxu0 }
 0x642   : > { %v4164_v7 = vpop.f32.mrb[51].mxu0 }
 0x643   : > { %4267 = vmatpush1.bf16.xpose.msra.mxu1 %v6543_v25 }
 0x644   : > { %4268 = vmatprep.subr.bf16.mxu1 %v6548_v34 }
 0x64b   : > { %4269 = vmatpush1.bf16.xpose.msra.mxu1 %v6546_v21 }
 0x64c   : > { %4270 = vmatprep.subr.bf16.mxu1 %v6551_v9 }
 0x64d   : > { %v4118_v3 = vpop.f32.mrb[24].mxu1 }
 0x64e   : > { %v5735_v12 = vcombine.low %v7070_v47, %v4118_v3  ;;  %v4120_v37 = vpop.f32.mrb[25].mxu1  ;;  %v6552_v3 = vld [vmem:[#allocation2 + $0xfc0] ss:$8 sps:$4 sm:$0xff]  }
 0x64f   : > { %v5736_v62 = vcombine.low %v7072_v1, %v4120_v37  ;;  %v4122_v54 = vpop.f32.mrb[26].mxu1  ;;  %v6563_v37 = vld [vmem:[#allocation2 + $0xff4] ss:$8 sps:$4 sm:$0xff]  }
 0x650   : > { %v4513_v63 = vrot.slane %v5735_v12, %v6875_v57  ;;  %v4123_v61 = vpop.f32.mrb[27].mxu1  ;;  %v6558_v12 = vld [vmem:[#allocation2 + $0xfe0] ss:$8 sps:$4 sm:$0xff]  }
 0x651   : > { %v4520_v0 = vrot.slane %v5736_v62, %v6875_v57  ;;  %v6561_v62 = vld [vmem:[#allocation2 + $0xff0] ss:$8 sps:$4 sm:$0xff]  }
 0x652   : > { %v4521_v25 = vcombine.low %v7065_v13, %v4513_v63  ;;  %v4522_v34 = vcombine.high %v7065_v13, %v4513_v63  ;;  %v6557_v63 = vld [vmem:[#allocation2 + $0xfd4] ss:$8 sps:$4 sm:$0xff]   ;;  %v6555_v13 = vld [vmem:[#allocation2 + $0xfd0] ss:$8 sps:$4 sm:$0xff]  }
 0x653   : > { %v4537_v7 = vcombine.low %v7068_v51, %v4520_v0  ;;  %v4538_v21 = vcombine.high %v7068_v51, %v4520_v0  ;;  %4271 = vmatpush1.bf16.xpose.msra.mxu1 %v6549_v49  ;;  %v6560_v51 = vld [vmem:[#allocation2 + $0xfe4] ss:$8 sps:$4 sm:$0xff]  }
 0x654   : > { %v7086_v47 = vrot.slane %v4521_v25, %v6900_v42  ;;  %v7089_v1 = vrot.slane %v4522_v34, %v6900_v42  ;;  %4272 = vmatprep.subr.bf16.mxu1 %v6554_v24 }
 0x655   : > { %v7092_v61 = vrot.slane %v4537_v7, %v6900_v42  ;;  %v7095_v9 = vrot.slane %v4538_v21, %v6900_v42 }
 0x65b   : > { %4273 = vmatpush1.bf16.xpose.msra.mxu1 %v6552_v3 }
 0x65c   : > { %4274 = vmatprep.subr.bf16.mxu1 %v6557_v63 }
 0x663   : > { %4275 = vmatpush1.bf16.xpose.msra.mxu1 %v6555_v13 }
 0x664   : > { %4276 = vmatprep.subr.bf16.mxu1 %v6560_v51 }
 0x66b   : > { %4277 = vmatpush1.bf16.xpose.msra.mxu1 %v6558_v12  ;;  %v7100_v12 = vpop.permute.xlu0 %266 }
 0x66c   : > { %4278 = vmatprep.subr.bf16.mxu1 %v6563_v37  ;;  %7338 = vst [vmem:[#allocation16_spill] sm:$0xff] %v7100_v12 }
 0x66f   : > { %v4646_v37 = vpop.permute.xlu0 %4645 }
 0x673   : > { %4279 = vmatpush1.bf16.xpose.msra.mxu1 %v6561_v62  ;;  %v4657_v62 = vpop.permute.xlu0 %4656 }
 0x67a   : > { %4281 = vmatmul.mubr.bf16.vlgmr.msra.gmra.mrb[32].mxu1 %v6823_v2 }
 0x6bf   : > { %v4241_v24 = vpop.f32.mrb[52].mxu0 }
 0x6c0   : > { %v5737_v54 = vcombine.low %v4159_v14, %v4241_v24  ;;  %v4243_v49 = vpop.f32.mrb[53].mxu0 }
 0x6c1   : > { %v5738_v0 = vcombine.low %v4161_v56, %v4243_v49  ;;  %v4245_v25 = vpop.f32.mrb[54].mxu0 }
 0x6c2   : > { %v4565_v34 = vrot.slane %v5737_v54, %v6875_v57  ;;  %v4246_v7 = vpop.f32.mrb[55].mxu0  ;;  %v4635_v54 = vpop.permute.xlu0 %4634 }
 0x6c3   : > { %v4572_v21 = vrot.slane %v5738_v0, %v6875_v57 }
 0x6cd   : > { %v4200_v3 = vpop.f32.mrb[28].mxu1 }
 0x6ce   : > { %v4202_v63 = vpop.f32.mrb[29].mxu1 }
 0x6cf   : > { %v4204_v13 = vpop.f32.mrb[30].mxu1 }
 0x6d0   : > { %v4205_v51 = vpop.f32.mrb[31].mxu1  ;;  %v7106_v13 = vadd.f32 %v6773_v31, %v7100_v12  ;;  %v7120_v31 = vadd.f32 %v6781_v35, %v6946_v6 }
 0x74d   : > { %v4282_v26 = vpop.f32.mrb[32].mxu1 }
 0x74e   : > { %v5739_v2 = vcombine.low %v4200_v3, %v4282_v26  ;;  %v4284_v33 = vpop.f32.mrb[33].mxu1  ;;  %v401_v26 = vadd.f32 %v6757_v23, %v6836_v10 }
 0x74f   : > { %v5740_v14 = vcombine.low %v4202_v63, %v4284_v33  ;;  %v4286_v24 = vpop.f32.mrb[34].mxu1  ;;  %v413_v33 = vadd.f32 %v6765_v27, %v6940_v40 }
 0x750   : > { %v4581_v56 = vrot.slane %v5739_v2, %v6875_v57  ;;  %v4287_v49 = vpop.f32.mrb[35].mxu1 }
 0x751   : > { %v4588_v25 = vrot.slane %v5740_v14, %v6875_v57  ;;  %v7116_v57 = vadd.f32 %v6767_v28, %v6940_v40  ;;  %v4668_v14 = vpop.permute.xlu0 %4667 }
 0x752   : > { %v4589_v0 = vcombine.low %v4565_v34, %v4581_v56  ;;  %v4590_v7 = vcombine.high %v4565_v34, %v4581_v56 }
 0x753   : > { %v4605_v51 = vcombine.low %v4572_v21, %v4588_v25  ;;  %v4606_v55 = vcombine.high %v4572_v21, %v4588_v25 }
 0x754   : > { %v4597_v3 = vrot.slane %v4589_v0, %v6900_v42  ;;  %v4604_v63 = vrot.slane %v4590_v7, %v6900_v42 }
 0x755   : > { %v4613_v34 = vrot.slane %v4605_v51, %v6900_v42  ;;  %v4620_v21 = vrot.slane %v4606_v55, %v6900_v42 }
 0x756   : > { %v5743_v23 = vcombine.low %v7086_v47, %v4597_v3  ;;  %v5747_v27 = vcombine.high %v7086_v47, %v4597_v3  ;;  %v5751_v10 = vcombine.low %v7089_v1, %v4604_v63  ;;  %v5755_v2 = vcombine.high %v7089_v1, %v4604_v63 }
 0x757   : > { %v5744_v28 = vcombine.low %v7092_v61, %v4613_v34  ;;  %v5748_v40 = vcombine.high %v7092_v61, %v4613_v34  ;;  %v5752_v35 = vcombine.low %v7095_v9, %v4620_v21  ;;  %v5756_v24 = vcombine.high %v7095_v9, %v4620_v21 }
 0x758   : > { %v7132_v56 = vadd.f32 %v5743_v23, %v4635_v54  ;;  %v7134_v42 = vadd.f32 %v5747_v27, %v4646_v37  ;;  %v7136_v55 = vadd.f32 %v5751_v10, %v4657_v62  ;;  %v7138_v47 = vadd.f32 %v5755_v2, %v4668_v14 }
 0x759   : > { %v7140_v49 = vadd.f32 %v5744_v28, %v4635_v54  ;;  %v7142_v1 = vadd.f32 %v5748_v40, %v4646_v37  ;;  %v7144_v25 = vadd.f32 %v5752_v35, %v4657_v62  ;;  %v7146_v0 = vadd.f32 %v5756_v24, %v4668_v14 }
 0x75a   : > { %v4735_v61 = vmul.f32 %v7132_v56, %v401_v26  ;;  %v4739_v9 = vmul.f32 %v7134_v42, %v401_v26  ;;  %v4743_v7 = vmul.f32 %v7136_v55, %v401_v26  ;;  %v4747_v51 = vmul.f32 %v7138_v47, %v401_v26 }
 0x75b   : > { %v4807_v3 = vmul.f32 %v7132_v56, %v413_v33  ;;  %v4811_v63 = vmul.f32 %v7134_v42, %v413_v33  ;;  %v4815_v54 = vmul.f32 %v7136_v55, %v413_v33  ;;  %v4819_v37 = vmul.f32 %v7138_v47, %v413_v33 }
 0x75c   : > { %v4749_v62 = vadd.f32 %v4735_v61, %v6978_v16  ;;  %v4763_v34 = vadd.f32 %v4739_v9, %v6980_v17  ;;  %v4777_v21 = vadd.f32 %v4743_v7, %v6982_v50  ;;  %v4791_v23 = vadd.f32 %v4747_v51, %v6984_v18 }
 0x75d   : > { %v4821_v27 = vadd.f32 %v4807_v3, %v6986_v39  ;;  %v4835_v26 = vadd.f32 %v4811_v63, %v6988_v41  ;;  %v4849_v10 = vadd.f32 %v4815_v54, %v6990_v30  ;;  %v4863_v2 = vadd.f32 %v4819_v37, %v6992_v20 }
 0x75e   : > { %v4750_v14 = vrot.slane %v4749_v62, 4  ;;  %v4764_v28 = vrot.slane %v4763_v34, 4  ;;  %v4778_v40 = vrot.slane %v4777_v21, 4  ;;  %v4792_v33 = vrot.slane %v4791_v23, 4 }
 0x75f   : > { %v4822_v35 = vrot.slane %v4821_v27, 4  ;;  %v4836_v16 = vrot.slane %v4835_v26, 4  ;;  %v4850_v24 = vrot.slane %v4849_v10, 4  ;;  %v4864_v17 = vrot.slane %v4863_v2, 4 }
 0x760   : > { %v4751_v61 = vadd.f32 %v4750_v14, %v4749_v62  ;;  %v4765_v50 = vadd.f32 %v4764_v28, %v4763_v34  ;;  %v4779_v9 = vadd.f32 %v4778_v40, %v4777_v21  ;;  %v4793_v18 = vadd.f32 %v4792_v33, %v4791_v23 }
 0x761   : > { %v4823_v7 = vadd.f32 %v4822_v35, %v4821_v27  ;;  %v4837_v39 = vadd.f32 %v4836_v16, %v4835_v26  ;;  %v4851_v51 = vadd.f32 %v4850_v24, %v4849_v10  ;;  %v4865_v41 = vadd.f32 %v4864_v17, %v4863_v2 }
 0x762   : > { %v4752_v3 = vrot.slane %v4751_v61, 2  ;;  %v4766_v30 = vrot.slane %v4765_v50, 2  ;;  %v4780_v63 = vrot.slane %v4779_v9, 2  ;;  %v4794_v20 = vrot.slane %v4793_v18, 2 }
 0x763   : > { %v4824_v54 = vrot.slane %v4823_v7, 2  ;;  %v4838_v37 = vrot.slane %v4837_v39, 2  ;;  %v4852_v8 = vrot.slane %v4851_v51, 2  ;;  %v4866_v38 = vrot.slane %v4865_v41, 2 }
 0x764   : > { %v4753_v36 = vadd.f32 %v4752_v3, %v4751_v61  ;;  %v4767_v6 = vadd.f32 %v4766_v30, %v4765_v50  ;;  %v4781_v32 = vadd.f32 %v4780_v63, %v4779_v9  ;;  %v4795_v12 = vadd.f32 %v4794_v20, %v4793_v18 }
 0x765   : > { %v4825_v62 = vadd.f32 %v4824_v54, %v4823_v7  ;;  %v4839_v34 = vadd.f32 %v4838_v37, %v4837_v39  ;;  %v4853_v21 = vadd.f32 %v4852_v8, %v4851_v51  ;;  %v4867_v23 = vadd.f32 %v4866_v38, %v4865_v41 }
 0x766   : > { %v4754_v27 = vrot.slane %v4753_v36, 1  ;;  %v4768_v26 = vrot.slane %v4767_v6, 1  ;;  %v4782_v10 = vrot.slane %v4781_v32, 1  ;;  %v4796_v2 = vrot.slane %v4795_v12, 1 }
 0x767   : > { %v4826_v14 = vrot.slane %v4825_v62, 1  ;;  %v4840_v28 = vrot.slane %v4839_v34, 1  ;;  %v4854_v40 = vrot.slane %v4853_v21, 1  ;;  %v4868_v33 = vrot.slane %v4867_v23, 1 }
 0x768   : > { %v7164_v35 = vadd.f32 %v4754_v27, %v4753_v36  ;;  %v7166_v16 = vadd.f32 %v4768_v26, %v4767_v6  ;;  %v7168_v24 = vadd.f32 %v4782_v10, %v4781_v32  ;;  %v7170_v17 = vadd.f32 %v4796_v2, %v4795_v12 }
 0x769   : > { %v7172_v61 = vadd.f32 %v4826_v14, %v4825_v62  ;;  %v7174_v8 = vadd.f32 %v4840_v28, %v4839_v34  ;;  %v7176_v38 = vadd.f32 %v4854_v40, %v4853_v21  ;;  %v7178_v50 = vadd.f32 %v4868_v33, %v4867_v23 }
 0x76a   : > { %v4879_v9 = vmul.f32 %v7132_v56, %v7106_v13  ;;  %v4883_v36 = vmul.f32 %v7134_v42, %v7106_v13  ;;  %v4887_v32 = vmul.f32 %v7136_v55, %v7106_v13  ;;  %v4891_v6 = vmul.f32 %v7138_v47, %v7106_v13 }
 0x76b   : > { %v4951_v12 = vmul.f32 %v7132_v56, %v7120_v31  ;;  %v4955_v18 = vmul.f32 %v7134_v42, %v7120_v31  ;;  %v4959_v7 = vmul.f32 %v7136_v55, %v7120_v31  ;;  %v4963_v39 = vmul.f32 %v7138_v47, %v7120_v31 }
 0x76c   : > { %v4893_v51 = vadd.f32 %v4879_v9, %v6994_v59  ;;  %v4907_v41 = vadd.f32 %v4883_v36, %v6996_v4  ;;  %v4921_v3 = vadd.f32 %v4887_v32, %v6998_v43  ;;  %v4935_v13 = vadd.f32 %v4891_v6, %v7000_v45 }
 0x76d   : > { %v4965_v30 = vadd.f32 %v4951_v12, %v7002_v60  ;;  %v4979_v56 = vadd.f32 %v4955_v18, %v7004_v15  ;;  %v4993_v42 = vadd.f32 %v4959_v7, %v7006_v58  ;;  %v5007_v63 = vadd.f32 %v4963_v39, %v7008_v53 }
 0x76e   : > { %v4894_v55 = vrot.slane %v4893_v51, 4  ;;  %v4908_v20 = vrot.slane %v4907_v41, 4  ;;  %v4922_v54 = vrot.slane %v4921_v3, 4  ;;  %v4936_v31 = vrot.slane %v4935_v13, 4 }
 0x76f   : > { %v4966_v47 = vrot.slane %v4965_v30, 4  ;;  %v4980_v59 = vrot.slane %v4979_v56, 4  ;;  %v4994_v37 = vrot.slane %v4993_v42, 4  ;;  %v5008_v4 = vrot.slane %v5007_v63, 4 }
 0x770   : > { %v4895_v62 = vadd.f32 %v4894_v55, %v4893_v51  ;;  %v4909_v43 = vadd.f32 %v4908_v20, %v4907_v41  ;;  %v4923_v34 = vadd.f32 %v4922_v54, %v4921_v3  ;;  %v4937_v45 = vadd.f32 %v4936_v31, %v4935_v13 }
 0x771   : > { %v4967_v21 = vadd.f32 %v4966_v47, %v4965_v30  ;;  %v4981_v60 = vadd.f32 %v4980_v59, %v4979_v56  ;;  %v4995_v23 = vadd.f32 %v4994_v37, %v4993_v42  ;;  %v5009_v15 = vadd.f32 %v5008_v4, %v5007_v63 }
 0x772   : > { %v4896_v58 = vrot.slane %v4895_v62, 2  ;;  %v4910_v27 = vrot.slane %v4909_v43, 2  ;;  %v4924_v53 = vrot.slane %v4923_v34, 2  ;;  %v4938_v26 = vrot.slane %v4937_v45, 2 }
 0x773   : > { %v4968_v10 = vrot.slane %v4967_v21, 2  ;;  %v4982_v2 = vrot.slane %v4981_v60, 2  ;;  %v4996_v14 = vrot.slane %v4995_v23, 2  ;;  %v5010_v28 = vrot.slane %v5009_v15, 2 }
 0x774   : > { %v4897_v40 = vadd.f32 %v4896_v58, %v4895_v62  ;;  %v4911_v33 = vadd.f32 %v4910_v27, %v4909_v43  ;;  %v4925_v9 = vadd.f32 %v4924_v53, %v4923_v34  ;;  %v4939_v36 = vadd.f32 %v4938_v26, %v4937_v45 }
 0x775   : > { %v4969_v32 = vadd.f32 %v4968_v10, %v4967_v21  ;;  %v4983_v6 = vadd.f32 %v4982_v2, %v4981_v60  ;;  %v4997_v12 = vadd.f32 %v4996_v14, %v4995_v23  ;;  %v5011_v18 = vadd.f32 %v5010_v28, %v5009_v15 }
 0x776   : > { %v4898_v7 = vrot.slane %v4897_v40, 1  ;;  %v4912_v39 = vrot.slane %v4911_v33, 1  ;;  %v4926_v51 = vrot.slane %v4925_v9, 1  ;;  %v4940_v41 = vrot.slane %v4939_v36, 1 }
 0x777   : > { %v4970_v3 = vrot.slane %v4969_v32, 1  ;;  %v4984_v13 = vrot.slane %v4983_v6, 1  ;;  %v4998_v30 = vrot.slane %v4997_v12, 1  ;;  %v5012_v56 = vrot.slane %v5011_v18, 1 }
 0x778   : > { %v4899_v42 = vadd.f32 %v4898_v7, %v4897_v40  ;;  %v4913_v63 = vadd.f32 %v4912_v39, %v4911_v33  ;;  %v4927_v55 = vadd.f32 %v4926_v51, %v4925_v9  ;;  %v4941_v20 = vadd.f32 %v4940_v41, %v4939_v36 }
 0x779   : > { %v4971_v54 = vadd.f32 %v4970_v3, %v4969_v32  ;;  %v4985_v31 = vadd.f32 %v4984_v13, %v4983_v6  ;;  %v4999_v47 = vadd.f32 %v4998_v30, %v4997_v12  ;;  %v5013_v59 = vadd.f32 %v5012_v56, %v5011_v18 }
 0x77a   : > { %v5053_v37 = vrot.slane %v7166_v16, 7  ;;  %v5056_v4 = vrot.slane %v7168_v24, 6  ;;  %v5059_v62 = vrot.slane %v7170_v17, 5  ;;  %v5062_v43 = vrot.slane %v7172_v61, 4 }
 0x77b   : > { %v5065_v34 = vrot.slane %v7174_v8, 3  ;;  %v5068_v45 = vrot.slane %v7176_v38, 2  ;;  %v5071_v21 = vrot.slane %v7178_v50, 1  ;;  %v5088_v60 = vrot.slane %v4913_v63, 7 }
 0x77c   : > { %v5055_v23 = vsel %vm5054_vm1, %v5053_v37, %v7164_v35  ;;  %v5090_v15 = vrot.slane %v4927_v55, 6  ;;  %v5092_v58 = vrot.slane %v4941_v20, 5  ;;  %v5094_v16 = vrot.slane %v4971_v54, 4 }
 0x77d   : > { %v5058_v24 = vsel %vm5057_vm2, %v5056_v4, %v5055_v23  ;;  %v5089_v17 = vsel %vm5054_vm1, %v5088_v60, %v4899_v42  ;;  %v5096_v27 = vrot.slane %v4985_v31, 3  ;;  %v5098_v61 = vrot.slane %v4999_v47, 2 }
 0x77e   : > { %v5061_v8 = vsel %vm5060_vm3, %v5059_v62, %v5058_v24  ;;  %v5091_v38 = vsel %vm5057_vm2, %v5090_v15, %v5089_v17  ;;  %v5100_v53 = vrot.slane %v5013_v59, 1  ;;  %v4736_v50 = vmul.f32 %v7140_v49, %v6841_v22 }
 0x77f   : > { %v5064_v35 = vsel %vm5063_vm4, %v5062_v43, %v5061_v8  ;;  %v5093_v26 = vsel %vm5060_vm3, %v5092_v58, %v5091_v38  ;;  %v4740_v10 = vmul.f32 %v7142_v1, %v6841_v22  ;;  %v4744_v2 = vmul.f32 %v7144_v25, %v6841_v22  ;;  %v7341_v38 = vld [vmem:[#allocation7_spill] sm:$0xff] }
 0x780   : > { %v5067_v14 = vsel %vm5066_vm5, %v5065_v34, %v5064_v35  ;;  %v5095_v28 = vsel %vm5063_vm4, %v5094_v16, %v5093_v26  ;;  %v4748_v40 = vmul.f32 %v7146_v0, %v6841_v22  ;;  %v4756_v33 = vadd.f32 %v4736_v50, %v7011_v52  ;;  %v7340_v16 = vld [vmem:[#allocation5_spill] sm:$0xff] }
 0x781   : > { %v5070_v9 = vsel %vm5069_vm6, %v5068_v45, %v5067_v14  ;;  %v5097_v36 = vsel %vm5066_vm5, %v5096_v27, %v5095_v28  ;;  %v4770_v32 = vadd.f32 %v4740_v10, %v7014_v11  ;;  %v4784_v6 = vadd.f32 %v4744_v2, %v7017_v5 }
 0x782   : > { %v5073_v12 = vsel %vm5072_vm7, %v5071_v21, %v5070_v9  ;;  %v5099_v18 = vsel %vm5069_vm6, %v5098_v61, %v5097_v36  ;;  %v4757_v7 = vrot.slane %v4756_v33, 4  ;;  %v4798_v39 = vadd.f32 %v4748_v40, %v7020_v48 }
 0x783   : > { %v5101_v51 = vsel %vm5072_vm7, %v5100_v53, %v5099_v18  ;;  %5120 = vst [vmem:[%s7230_s11] sm:$0xff] %v5073_v12  ;;  %v4771_v22 = vrot.slane %v4770_v32, 4  ;;  %v4785_v52 = vrot.slane %v4784_v6, 4  ;;  %v4808_v41 = vmul.f32 %v7140_v49, %v7116_v57  ;;  %v7342_v53 = vld [vmem:[#allocation6_spill] sm:$0xff] }
 0x784   : > { %5122 = vst [vmem:[%s7230_s11 + $0x10] sm:$0xff] %v5101_v51  ;;  %v4758_v3 = vadd.f32 %v4757_v7, %v4756_v33  ;;  %v4799_v11 = vrot.slane %v4798_v39, 4  ;;  %v4812_v5 = vmul.f32 %v7142_v1, %v7116_v57  ;;  %v4816_v13 = vmul.f32 %v7144_v25, %v7116_v57  ;;  %v7343_v7 = vld [vmem:[#allocation8_spill] sm:$0xff] }
 0x785   : > { %v4772_v30 = vadd.f32 %v4771_v22, %v4770_v32  ;;  %v4786_v56 = vadd.f32 %v4785_v52, %v4784_v6  ;;  %v4820_v48 = vmul.f32 %v7146_v0, %v7116_v57  ;;  %v4828_v42 = vadd.f32 %v4808_v41, %v7023_v46  ;;  %v7344_v52 = vld [vmem:[#allocation9_spill] sm:$0xff] }
 0x786   : > { %v4759_v63 = vrot.slane %v4758_v3, 2  ;;  %v4800_v55 = vadd.f32 %v4799_v11, %v4798_v39  ;;  %v4842_v20 = vadd.f32 %v4812_v5, %v7026_v44  ;;  %v4856_v54 = vadd.f32 %v4816_v13, %v7029_v29  ;;  %v7339_v44 = vld [vmem:[#allocation16_spill] sm:$0xff] }
 0x787   : > { %v4773_v31 = vrot.slane %v4772_v30, 2  ;;  %v4787_v47 = vrot.slane %v4786_v56, 2  ;;  %v4829_v59 = vrot.slane %v4828_v42, 4  ;;  %v4870_v37 = vadd.f32 %v4820_v48, %v7032_v19 }
 0x788   : > { %v4760_v4 = vadd.f32 %v4759_v63, %v4758_v3  ;;  %v4801_v62 = vrot.slane %v4800_v55, 2  ;;  %v4843_v43 = vrot.slane %v4842_v20, 4  ;;  %v4857_v34 = vrot.slane %v4856_v54, 4  ;;  %v7345_v3 = vld [vmem:[#allocation10_spill] sm:$0xff] }
 0x789   : > { %v4774_v45 = vadd.f32 %v4773_v31, %v4772_v30  ;;  %v4788_v21 = vadd.f32 %v4787_v47, %v4786_v56  ;;  %v4830_v57 = vadd.f32 %v4829_v59, %v4828_v42  ;;  %v4871_v60 = vrot.slane %v4870_v37, 4  ;;  %v7346_v56 = vld [vmem:[#allocation11_spill] sm:$0xff] }
 0x78a   : > { %v4761_v46 = vrot.slane %v4760_v4, 1  ;;  %v4802_v23 = vadd.f32 %v4801_v62, %v4800_v55  ;;  %v4844_v15 = vadd.f32 %v4843_v43, %v4842_v20  ;;  %v4858_v58 = vadd.f32 %v4857_v34, %v4856_v54  ;;  %v7347_v43 = vld [vmem:[#allocation12_spill] sm:$0xff] }
 0x78b   : > { %v427_v29 = vadd.f32 %v7340_v16, %v7339_v44  ;;  %v4831_v24 = vrot.slane %v4830_v57, 2  ;;  %v4872_v17 = vadd.f32 %v4871_v60, %v4870_v37  ;;  %v4775_v27 = vrot.slane %v4774_v45, 1  ;;  %v7350_v44 = vld [vmem:[#allocation15_spill] sm:$0xff] }
 0x78c   : > { %v4789_v61 = vrot.slane %v4788_v21, 1  ;;  %v4845_v19 = vrot.slane %v4844_v15, 2  ;;  %v4859_v8 = vrot.slane %v4858_v58, 2  ;;  %v439_v50 = vadd.f32 %v7342_v53, %v7341_v38 }
 0x78d   : > { %v4803_v35 = vrot.slane %v4802_v23, 1  ;;  %v4832_v26 = vadd.f32 %v4831_v24, %v4830_v57  ;;  %v4873_v10 = vrot.slane %v4872_v17, 2  ;;  %v7263_v2 = vadd.f32 %v4761_v46, %v4760_v4  ;;  %v7348_v57 = vld [vmem:[#allocation13_spill] sm:$0xff]  ;;  %v7349_v46 = vld [vmem:[#allocation14_spill] sm:$0xff] }
 0x78e   : > { %v4846_v14 = vadd.f32 %v4845_v19, %v4844_v15  ;;  %v4860_v28 = vadd.f32 %v4859_v8, %v4858_v58  ;;  %v4880_v40 = vmul.f32 %v7140_v49, %v427_v29  ;;  %v4884_v36 = vmul.f32 %v7142_v1, %v427_v29 }
 0x78f   : > { %v4833_v33 = vrot.slane %v4832_v26, 1  ;;  %v4874_v9 = vadd.f32 %v4873_v10, %v4872_v17  ;;  %v4888_v32 = vmul.f32 %v7144_v25, %v427_v29  ;;  %v7268_v6 = vadd.f32 %v4775_v27, %v4774_v45 }
 0x790   : > { %v7270_v12 = vadd.f32 %v4789_v61, %v4788_v21  ;;  %v4892_v18 = vmul.f32 %v7146_v0, %v427_v29  ;;  %v4900_v39 = vadd.f32 %v4880_v40, %v7343_v7  ;;  %v7274_v51 = vadd.f32 %v4803_v35, %v4802_v23 }
 0x791   : > { %v4847_v22 = vrot.slane %v4846_v14, 1  ;;  %v4914_v41 = vadd.f32 %v4884_v36, %v7344_v52  ;;  %v4928_v11 = vadd.f32 %v4888_v32, %v7345_v3  ;;  %v7278_v5 = vadd.f32 %v4833_v33, %v4832_v26 }
 0x792   : > { %v4861_v13 = vrot.slane %v4860_v28, 1  ;;  %v4901_v30 = vrot.slane %v4900_v39, 4  ;;  %v4942_v48 = vadd.f32 %v4892_v18, %v7346_v56  ;;  %v4875_v42 = vrot.slane %v4874_v9, 1 }
 0x793   : > { %v4915_v63 = vrot.slane %v4914_v41, 4  ;;  %v4929_v55 = vrot.slane %v4928_v11, 4  ;;  %v4952_v20 = vmul.f32 %v7140_v49, %v439_v50  ;;  %v4956_v47 = vmul.f32 %v7142_v1, %v439_v50 }
 0x794   : > { %v4902_v54 = vadd.f32 %v4901_v30, %v4900_v39  ;;  %v4943_v31 = vrot.slane %v4942_v48, 4  ;;  %v4960_v59 = vmul.f32 %v7144_v25, %v439_v50  ;;  %v4964_v62 = vmul.f32 %v7146_v0, %v439_v50 }
 0x795   : > { %v4916_v37 = vadd.f32 %v4915_v63, %v4914_v41  ;;  %v4930_v4 = vadd.f32 %v4929_v55, %v4928_v11  ;;  %v4972_v34 = vadd.f32 %v4952_v20, %v7347_v43  ;;  %v4986_v60 = vadd.f32 %v4956_v47, %v7348_v57 }
 0x796   : > { %v4903_v45 = vrot.slane %v4902_v54, 2  ;;  %v4944_v21 = vadd.f32 %v4943_v31, %v4942_v48  ;;  %v5000_v23 = vadd.f32 %v4960_v59, %v7349_v46  ;;  %v5014_v16 = vadd.f32 %v4964_v62, %v7350_v44 }
 0x797   : > { %v4917_v15 = vrot.slane %v4916_v37, 2  ;;  %v4931_v49 = vrot.slane %v4930_v4, 2  ;;  %v4973_v58 = vrot.slane %v4972_v34, 4  ;;  %v4987_v25 = vrot.slane %v4986_v60, 4 }
 0x798   : > { %v4904_v1 = vadd.f32 %v4903_v45, %v4902_v54  ;;  %v4945_v29 = vrot.slane %v4944_v21, 2  ;;  %v5001_v24 = vrot.slane %v5000_v23, 4  ;;  %v5015_v61 = vrot.slane %v5014_v16, 4 }
 0x799   : > { %v4918_v17 = vadd.f32 %v4917_v15, %v4916_v37  ;;  %v4932_v27 = vadd.f32 %v4931_v49, %v4930_v4  ;;  %v4974_v0 = vadd.f32 %v4973_v58, %v4972_v34  ;;  %v4848_v19 = vadd.f32 %v4847_v22, %v4846_v14 }
 0x79a   : > { %v4946_v8 = vadd.f32 %v4945_v29, %v4944_v21  ;;  %v4988_v38 = vadd.f32 %v4987_v25, %v4986_v60  ;;  %v5002_v53 = vadd.f32 %v5001_v24, %v5000_v23  ;;  %v5016_v10 = vadd.f32 %v5015_v61, %v5014_v16 }
 0x79b   : > { %v4919_v50 = vrot.slane %v4918_v17, 1  ;;  %v4933_v35 = vrot.slane %v4932_v27, 1  ;;  %v4975_v26 = vrot.slane %v4974_v0, 2  ;;  %v4862_v40 = vadd.f32 %v4861_v13, %v4860_v28 }
 0x79c   : > { %v4876_v33 = vadd.f32 %v4875_v42, %v4874_v9  ;;  %v4989_v36 = vrot.slane %v4988_v38, 2  ;;  %v5003_v32 = vrot.slane %v5002_v53, 2  ;;  %v4905_v18 = vrot.slane %v4904_v1, 1 }
 0x79d   : > { %v4947_v7 = vrot.slane %v4946_v8, 1  ;;  %v4976_v39 = vadd.f32 %v4975_v26, %v4974_v0  ;;  %v5017_v52 = vrot.slane %v5016_v10, 2  ;;  %v4920_v41 = vadd.f32 %v4919_v50, %v4918_v17 }
 0x79e   : > { %v4990_v3 = vadd.f32 %v4989_v36, %v4988_v38  ;;  %v5004_v11 = vadd.f32 %v5003_v32, %v5002_v53  ;;  %v5074_v14 = vrot.slane %v7268_v6, 7  ;;  %v4934_v22 = vadd.f32 %v4933_v35, %v4932_v27 }
 0x79f   : > { %v4977_v30 = vrot.slane %v4976_v39, 1  ;;  %v5018_v56 = vadd.f32 %v5017_v52, %v5016_v10  ;;  %v5076_v48 = vrot.slane %v7270_v12, 6  ;;  %v5078_v9 = vrot.slane %v7274_v51, 5 }
 0x7a0   : > { %v4991_v63 = vrot.slane %v4990_v3, 1  ;;  %v5005_v55 = vrot.slane %v5004_v11, 1  ;;  %v5075_v28 = vsel %vm5054_vm1, %v5074_v14, %v7263_v2  ;;  %v4948_v13 = vadd.f32 %v4947_v7, %v4946_v8 }
 0x7a1   : > { %v5019_v42 = vrot.slane %v5018_v56, 1  ;;  %v5077_v20 = vsel %vm5057_vm2, %v5076_v48, %v5075_v28  ;;  %v5080_v54 = vrot.slane %v7278_v5, 4  ;;  %v4906_v31 = vadd.f32 %v4905_v18, %v4904_v1 }
 0x7a2   : > { %v4978_v6 = vadd.f32 %v4977_v30, %v4976_v39  ;;  %v5079_v47 = vsel %vm5060_vm3, %v5078_v9, %v5077_v20  ;;  %v5082_v59 = vrot.slane %v4848_v19, 3  ;;  %v4992_v37 = vadd.f32 %v4991_v63, %v4990_v3 }
 0x7a3   : > { %v5081_v12 = vsel %vm5063_vm4, %v5080_v54, %v5079_v47  ;;  %v5084_v4 = vrot.slane %v4862_v40, 2  ;;  %v5102_v62 = vrot.slane %v4920_v41, 7  ;;  %v5006_v2 = vadd.f32 %v5005_v55, %v5004_v11 }
 0x7a4   : > { %v5083_v51 = vsel %vm5066_vm5, %v5082_v59, %v5081_v12  ;;  %v5086_v43 = vrot.slane %v4876_v33, 1  ;;  %v5104_v34 = vrot.slane %v4934_v22, 6  ;;  %v5020_v45 = vadd.f32 %v5019_v42, %v5018_v56 }
 0x7a5   : > { %v5085_v5 = vsel %vm5069_vm6, %v5084_v4, %v5083_v51  ;;  %v5103_v21 = vsel %vm5054_vm1, %v5102_v62, %v4906_v31  ;;  %v5106_v57 = vrot.slane %v4948_v13, 5  ;;  %v5108_v23 = vrot.slane %v4978_v6, 4 }
 0x7a6   : > { %v5087_v60 = vsel %vm5072_vm7, %v5086_v43, %v5085_v5  ;;  %v5105_v46 = vsel %vm5057_vm2, %v5104_v34, %v5103_v21  ;;  %v5110_v49 = vrot.slane %v4992_v37, 3  ;;  %v5112_v44 = vrot.slane %v5006_v2, 2 }
 0x7a7   : > { %v5107_v15 = vsel %vm5060_vm3, %v5106_v57, %v5105_v46  ;;  %5121 = vst [vmem:[%s7230_s11 + $0x8] sm:$0xff] %v5087_v60  ;;  %v5114_v1 = vrot.slane %v5020_v45, 1 }
 0x7a8   : > { %v5109_v58 = vsel %vm5063_vm4, %v5108_v23, %v5107_v15 }
 0x7a9   : > { %v5111_v16 = vsel %vm5066_vm5, %v5110_v49, %v5109_v58 }
 0x7aa   : > { %v5113_v29 = vsel %vm5069_vm6, %v5112_v44, %v5111_v16 }
 0x7ab   : > { %v5115_v25 = vsel %vm5072_vm7, %v5114_v1, %v5113_v29 }
 0x7ac   : > { %5123 = vst [vmem:[%s7230_s11 + $0x18] sm:$0xff] %v5115_v25 }
 0x7ad PF: > { %s15_s15 = sadd.s32 1, %s6614_s15  }
 0x7ae   : > { %p12_p3 = scmp.ge.s32.totalorder %s15_s15, 4  }
 0x7b0   :  { %14 = sbr.rel (!%p12_p3) target bundleno = 1 (0x1), region = 71 }
 0x7b7   :  { %5145 = vsyncpa [#allocation3], 1 }
 0x7b8   :  { %5147 = vsyncpa [#allocation3 + $0x1], 1 }

</bundles_post_ra>
